<compile_context>
chip_gen: v7x
topology: tpu7x:2x2x1
jax: 0.10.0
libtpu: 0.0.40
codegen_flags: <defaults>
</compile_context>

<pallas_src>
import functools

import jax
import jax.numpy as jnp
from jax.experimental import pallas as pl
from jax.experimental.pallas import tpu as pltpu


# ----------------------------------------------------------------------------
# Pallas kernel: fused point generation + positional encoding + NeRF MLP +
# volume rendering for one tile of TM rays (NS samples per ray).
# ----------------------------------------------------------------------------
def nerf_render_kernel(o_ref, d_ref, w1_ref, w2_ref, b2_ref, wo_ref, bo_ref,
                       rgb_ref, depth_ref, enc_ref,
                       *, ns, num_freqs, z_near, z_far):
    _, tm = o_ref.shape                                # (3, TM)
    hidden = w2_ref.shape[0]
    l3 = 3 * num_freqs
    d_in = 3 + 2 * l3 + 1                              # xyz | sin | cos | ones

    o = o_ref[...]                                     # (3, TM) f32
    d = d_ref[...]                                     # (3, TM) f32
    w1 = w1_ref[...]                                   # (H, d_in) bf16, b1 folded
    w2 = w2_ref[...]                                   # (H, H)  bf16
    wo = wo_ref[...]                                   # (4, H)  bf16

    # Hoisted lane-broadcasts of the layer-2 / head biases (once per tile,
    # not once per sample).
    b2 = jnp.broadcast_to(b2_ref[...], (hidden, tm))   # (H, TM)
    bo = jnp.broadcast_to(bo_ref[...], (4, tm))        # (4, TM)

    # Constant ones row of the fused layer-1 matmul (folds b1).
    enc_ref[d_in - 1:d_in, :] = jnp.ones((1, tm), jnp.float32)

    step = (z_far - z_near) / max(ns - 1, 1)

    trans = jnp.ones((1, tm), jnp.float32)
    acc_rgb = jnp.zeros((3, tm), jnp.float32)
    acc_d = jnp.zeros((1, tm), jnp.float32)

    for s in range(ns):                                # NS is small & static
        z_s = z_near + step * s                        # python constants
        delta_s = 1e10 if s == ns - 1 else step

        # ---- in-kernel point generation ------------------------------------
        pts = o + d * z_s                              # (3, TM) f32
        enc_ref[0:3, :] = pts

        # ---- positional encoding: base sin/cos + double-angle recurrence ----
        # freq bands are 2**l, base band is 1.0, so no scaling matmul needed.
        sin_l = jnp.sin(pts)                           # (3, TM) f32 (EUP)
        cos_l = jnp.cos(pts)
        for l in range(num_freqs):
            enc_ref[3 + 3 * l: 6 + 3 * l, :] = sin_l
            enc_ref[3 + l3 + 3 * l: 6 + l3 + 3 * l, :] = cos_l
            if l + 1 < num_freqs:                      # VPU-only band update
                sin_n = 2.0 * sin_l * cos_l            # sin(2x)
                cos_n = 1.0 - 2.0 * sin_l * sin_l      # cos(2x)
                sin_l, cos_l = sin_n, cos_n

        enc = enc_ref[...].astype(jnp.bfloat16)        # (d_in, TM)

        # ---- MLP: one fused layer-1 matmul (bias folded), relu, L2, head ----
        h = jnp.dot(w1, enc, preferred_element_type=jnp.float32)     # (H, TM)
        h = jnp.maximum(h, 0.0).astype(jnp.bfloat16)
        h = jnp.dot(w2, h, preferred_element_type=jnp.float32) + b2
        h = jnp.maximum(h, 0.0).astype(jnp.bfloat16)
        out = jnp.dot(wo, h, preferred_element_type=jnp.float32) + bo  # (4, TM)

        # ---- volume rendering (sigma is NOT sigmoided; rgb is) --------------
        sigma = jnp.maximum(out[3:4, :], 0.0)                          # (1, TM)
        alpha = 1.0 - jnp.exp(-sigma * delta_s)                        # (1, TM)
        w_s = trans * alpha                                            # (1, TM)
        acc_rgb = acc_rgb + w_s * jax.nn.sigmoid(out[0:3, :])          # (3, TM)
        acc_d = acc_d + w_s * z_s                                      # (1, TM)
        trans = trans * (1.0 - alpha + 1e-10)

    rgb_ref[...] = acc_rgb                             # lane-dense full stores
    depth_ref[...] = acc_d


# ----------------------------------------------------------------------------
# Pallas wrapper: tiling, lane-major ray layout, fused bf16 weights.
# ----------------------------------------------------------------------------
def _choose_ray_tile(n_rays, requested):
    """Power-of-two tile, >=128, with >=2 grid steps kept when possible
    (v7x has 2 TensorCores that shard the 'parallel' grid axis)."""
    tm = 128
    while tm * 2 <= int(requested):
        tm *= 2
    while tm > 128 and n_rays < 2 * tm:
        tm //= 2
    return tm


def _prep_weights(params, num_freqs):
    """Feature-major (out, in) bf16 weights.  The interleaved PE rows of w1
    ([xyz, per-freq (sin xyz, cos xyz)]) are regrouped to match the kernel's
    encoding order [xyz | sin bands | cos bands | ones]; b1 is folded into the
    extra 'ones' column of the fused layer-1 matrix."""
    hidden = params["w2"].shape[0]
    l3 = 3 * num_freqs
    w1 = params["w1"].astype(jnp.float32)                          # (3+6L, H)
    # TODO(synk): this assumes the checkpoint PE row order is
    # (freq, [sin xyz, cos xyz]); verify against a real nerf_pl checkpoint.
    bands = w1[3:].reshape(num_freqs, 2, 3, hidden)
    w1_full = jnp.concatenate(
        [w1[:3],
         bands[:, 0].reshape(l3, hidden),                          # sin bands
         bands[:, 1].reshape(l3, hidden),                          # cos bands
         params["b1"].reshape(1, hidden).astype(jnp.float32)],     # bias row
        axis=0)                                                    # (3+6L+1, H)
    w1_t = w1_full.T.astype(jnp.bfloat16)                          # (H, d_in)
    w2_t = params["w2"].T.astype(jnp.bfloat16)                     # (H, H)
    wo_t = params["wo"].T.astype(jnp.bfloat16)                     # (4, H)
    b2_t = params["b2"].reshape(hidden, 1).astype(jnp.float32)
    bo_t = params["bo"].reshape(4, 1).astype(jnp.float32)
    return w1_t, w2_t, b2_t, wo_t, bo_t


def render_rays_pallas(rays_o, rays_d, params, *, z_near, z_far, n_samples,
                       num_freqs, ray_tile=2048):
    """rays_o/rays_d: (n_rays, 3) f32 -> (rgb (n_rays,3) f32, depth (n_rays,))."""
    n_rays = rays_o.shape[0]
    hidden = params["w2"].shape[0]
    d_in = 3 + 6 * num_freqs + 1

    tm = _choose_ray_tile(n_rays, ray_tile)
    n_tiles = pl.cdiv(n_rays, tm)
    n_pad = n_tiles * tm

    # Lane-major (3, n_rays) rays; zero-padded tail rays (results discarded).
    o_k = jnp.pad(rays_o.astype(jnp.float32).T, ((0, 0), (0, n_pad - n_rays)))
    d_k = jnp.pad(rays_d.astype(jnp.float32).T, ((0, 0), (0, n_pad - n_rays)))

    w1_t, w2_t, b2_t, wo_t, bo_t = _prep_weights(params, num_freqs)

    kernel = functools.partial(nerf_render_kernel, ns=n_samples,
                               num_freqs=num_freqs,
                               z_near=float(z_near), z_far=float(z_far))
    const = lambda i: (0, 0)

    # Advisory cost estimate so XLA schedules the surrounding ray-gen / uint8
    # conversion sensibly around the custom call.
    p_total = n_pad * n_samples
    flops = 2 * p_total * (d_in * hidden + hidden * hidden + hidden * 4)
    transcendentals = p_total * 10          # 3 sin + 3 cos + 1 exp + 3 sigmoid
    bytes_accessed = int((6 * n_pad + 4 * n_pad) * 4
                         + (w1_t.size + w2_t.size + wo_t.size) * 2
                         + (b2_t.size + bo_t.size) * 4)

    rgb_p, depth_p = pl.pallas_call(
        kernel,
        out_shape=(jax.ShapeDtypeStruct((3, n_pad), jnp.float32),
                   jax.ShapeDtypeStruct((1, n_pad), jnp.float32)),
        grid_spec=pltpu.PrefetchScalarGridSpec(
            num_scalar_prefetch=0,
            grid=(n_tiles,),
            in_specs=[
                pl.BlockSpec((3, tm), lambda i: (0, i)),          # rays_o
                pl.BlockSpec((3, tm), lambda i: (0, i)),          # rays_d
                pl.BlockSpec((hidden, d_in), const),              # fused w1|b1
                pl.BlockSpec((hidden, hidden), const),            # w2
                pl.BlockSpec((hidden, 1), const),                 # b2
                pl.BlockSpec((4, hidden), const),                 # wo
                pl.BlockSpec((4, 1), const),                      # bo
            ],
            out_specs=[
                pl.BlockSpec((3, tm), lambda i: (0, i)),          # rgb
                pl.BlockSpec((1, tm), lambda i: (0, i)),          # depth
            ],
            scratch_shapes=[pltpu.VMEM((d_in, tm), jnp.float32)], # enc staging
        ),
        compiler_params=pltpu.CompilerParams(
            dimension_semantics=("parallel",),
            vmem_limit_bytes=32 * 1024 * 1024),
        cost_estimate=pl.CostEstimate(flops=flops,
                                      transcendentals=transcendentals,
                                      bytes_accessed=bytes_accessed),
    )(o_k, d_k, w1_t, w2_t, b2_t, wo_t, bo_t)

    rgb = rgb_p[:, :n_rays].T                       # (n_rays, 3)
    depth = depth_p[0, :n_rays]                     # (n_rays,)
    return rgb, depth


# ----------------------------------------------------------------------------
# Plain-JAX glue: ray generation and parameter init.
# ----------------------------------------------------------------------------
def make_nerf_params(key, d_enc, hidden):
    k1, k2, k3 = jax.random.split(key, 3)
    return {
        "w1": jax.random.normal(k1, (d_enc, hidden), jnp.float32) * 0.3,
        "b1": jnp.zeros((1, hidden), jnp.float32),
        "w2": jax.random.normal(k2, (hidden, hidden), jnp.float32) * 0.3,
        "b2": jnp.zeros((1, hidden), jnp.float32),
        "wo": jax.random.normal(k3, (hidden, 4), jnp.float32) * 0.3,
        "bo": jnp.zeros((1, 4), jnp.float32),
    }


def nerf_wrapper_forward(pose, Kin, params, *, height=None, near_min=0.1,
                         far=5.0, n_samples=8, num_freqs=4, ray_tile=2048):
    """Mirrors NeRFWrapper.forward(pose, Kin, height=None, near_min=0.1)."""
    c2w = jnp.asarray(pose, jnp.float32)[:3]                       # (3, 4)
    K = jnp.asarray(Kin, jnp.float32)                              # (3, 3)
    # TODO(synk): H/W come from concrete K values (same as the .item() calls in
    # the original); this outer wrapper is not meant to be jax.jit'ed end-to-end.
    H = int(round(float(K[1, 2]) * 2.0))
    W = int(round(float(K[0, 2]) * 2.0))
    # TODO(synk): the `height is not None` branch rescales K and cv2.resize's
    # the outputs; with height=None the resize is the identity, so it is skipped.

    fx, fy, cx, cy = K[0, 0], K[1, 1], K[0, 2], K[1, 2]
    jj, ii = jnp.meshgrid(jnp.arange(H, dtype=jnp.float32),
                          jnp.arange(W, dtype=jnp.float32), indexing="ij")
    # nerf_pl camera convention (x right, y up, z backwards)
    dirs = jnp.stack([(ii - cx) / fx, -(jj - cy) / fy, -jnp.ones_like(ii)],
                     axis=-1)                                      # (H, W, 3)
    rays_d = dirs @ c2w[:, :3].T                                   # (H, W, 3)
    rays_d = rays_d / jnp.linalg.norm(rays_d, axis=-1, keepdims=True)
    rays_o = jnp.broadcast_to(c2w[:, 3], (H, W, 3))

    rays_o = rays_o.reshape(-1, 3)
    rays_d = rays_d.reshape(-1, 3)

    # Sample points along each ray are generated inside the kernel from the
    # linear z schedule z_vals = linspace(near_min, far, n_samples).
    rgb, depth = render_rays_pallas(rays_o, rays_d, params,
                                    z_near=near_min, z_far=far,
                                    n_samples=n_samples, num_freqs=num_freqs,
                                    ray_tile=ray_tile)

    # image_depth_from_results semantics (uint8 truncation matches the original)
    image = (rgb.reshape(H, W, 3) * 255.0).astype(jnp.uint8)
    depth = depth.reshape(H, W)
    # TODO(synk): original depth is the median depth ('depth_fine_static_med');
    # expected depth from the volume-rendering weights is returned here.
    return image, depth


# ----------------------------------------------------------------------------
if __name__ == "__main__":
    key = jax.random.PRNGKey(0)
    k_params, k_pose = jax.random.split(key)

    # Small intrinsics -> H = W = 16 rendered image (256 rays).
    H = W = 16
    fx = fy = 20.0
    Kin = jnp.array([[fx, 0.0, W / 2.0],
                     [0.0, fy, H / 2.0],
                     [0.0, 0.0, 1.0]], jnp.float32)

    # Deterministic camera-to-world pose (identity rotation + small translation).
    trans = (jax.random.normal(k_pose, (3,), jnp.float32) * 0.1
             + jnp.array([0.0, 0.0, 1.0]))
    pose = jnp.concatenate([jnp.eye(3, dtype=jnp.float32), trans[:, None]], axis=1)
    pose = jnp.concatenate([pose, jnp.array([[0.0, 0.0, 0.0, 1.0]], jnp.float32)],
                           axis=0)

    num_freqs = 4
    d_enc = 3 + 3 * 2 * num_freqs   # xyz + 4 sin/cos frequency bands = 27
    hidden = 32
    params = make_nerf_params(k_params, d_enc, hidden)

    image, depth = nerf_wrapper_forward(pose, Kin, params, near_min=0.1,
                                        n_samples=8, num_freqs=num_freqs)
    jax.block_until_ready((image, depth))

    assert image.shape == (H, W, 3) and image.dtype == jnp.uint8
    assert depth.shape == (H, W) and depth.dtype == jnp.float32
    print("KERNEL_OK")
</pallas_src>

<mosaic_0001>
module attributes {stable_mosaic.version = 11 : i64} {
  func.func @nerf_render_kernel(%arg0: i32, %arg1: memref<3x128xf32, #tpu.memory_space<vmem>>, %arg2: memref<3x128xf32, #tpu.memory_space<vmem>>, %arg3: memref<32x28xbf16, #tpu.memory_space<vmem>>, %arg4: memref<32x32xbf16, #tpu.memory_space<vmem>>, %arg5: memref<32x1xf32, #tpu.memory_space<vmem>>, %arg6: memref<4x32xbf16, #tpu.memory_space<vmem>>, %arg7: memref<4x1xf32, #tpu.memory_space<vmem>>, %arg8: memref<3x128xf32, #tpu.memory_space<vmem>>, %arg9: memref<1x128xf32, #tpu.memory_space<vmem>>, %arg10: memref<28x128xf32, #tpu.memory_space<vmem>>) attributes {dimension_semantics = [#tpu.dimension_semantics<parallel>], iteration_bounds = array<i64: 2>, scalar_prefetch = 0 : i64, scratch_operands = 1 : i64, tpu.core_type = #tpu.core_type<tc>, window_params = [{transform_indices = @transform_0, window_bounds = array<i64: 3, 128>}, {transform_indices = @transform_1, window_bounds = array<i64: 3, 128>}, {pipeline_mode = #tpu.pipeline_mode<synchronous>, transform_indices = @transform_2, window_bounds = array<i64: 32, 28>}, {pipeline_mode = #tpu.pipeline_mode<synchronous>, transform_indices = @transform_3, window_bounds = array<i64: 32, 32>}, {pipeline_mode = #tpu.pipeline_mode<synchronous>, transform_indices = @transform_4, window_bounds = array<i64: 32, 1>}, {pipeline_mode = #tpu.pipeline_mode<synchronous>, transform_indices = @transform_5, window_bounds = array<i64: 4, 32>}, {pipeline_mode = #tpu.pipeline_mode<synchronous>, transform_indices = @transform_6, window_bounds = array<i64: 4, 1>}, {transform_indices = @transform_7, window_bounds = array<i64: 3, 128>}, {transform_indices = @transform_8, window_bounds = array<i64: 1, 128>}]} {
    %c0 = arith.constant 0 : index
    %c0_0 = arith.constant 0 : index
    %0 = vector.load %arg1[%c0, %c0_0] : memref<3x128xf32, #tpu.memory_space<vmem>>, vector<3x128xf32>
    %c0_1 = arith.constant 0 : index
    %c0_2 = arith.constant 0 : index
    %1 = vector.load %arg2[%c0_1, %c0_2] : memref<3x128xf32, #tpu.memory_space<vmem>>, vector<3x128xf32>
    %c0_3 = arith.constant 0 : index
    %c0_4 = arith.constant 0 : index
    %2 = vector.load %arg3[%c0_3, %c0_4] : memref<32x28xbf16, #tpu.memory_space<vmem>>, vector<32x28xbf16>
    %c0_5 = arith.constant 0 : index
    %c0_6 = arith.constant 0 : index
    %3 = vector.load %arg4[%c0_5, %c0_6] : memref<32x32xbf16, #tpu.memory_space<vmem>>, vector<32x32xbf16>
    %c0_7 = arith.constant 0 : index
    %c0_8 = arith.constant 0 : index
    %4 = vector.load %arg6[%c0_7, %c0_8] : memref<4x32xbf16, #tpu.memory_space<vmem>>, vector<4x32xbf16>
    %c0_9 = arith.constant 0 : index
    %c0_10 = arith.constant 0 : index
    %5 = vector.load %arg5[%c0_9, %c0_10] : memref<32x1xf32, #tpu.memory_space<vmem>>, vector<32x1xf32>
    %6 = vector.shape_cast %5 : vector<32x1xf32> to vector<32x1xf32>
    %7 = vector.broadcast %6 : vector<32x1xf32> to vector<32x128xf32>
    %c0_11 = arith.constant 0 : index
    %c0_12 = arith.constant 0 : index
    %8 = vector.load %arg7[%c0_11, %c0_12] : memref<4x1xf32, #tpu.memory_space<vmem>>, vector<4x1xf32>
    %9 = vector.shape_cast %8 : vector<4x1xf32> to vector<4x1xf32>
    %10 = vector.broadcast %9 : vector<4x1xf32> to vector<4x128xf32>
    %cst = arith.constant 1.000000e+00 : f32
    %11 = vector.broadcast %cst : f32 to vector<1x128xf32>
    %c27 = arith.constant 27 : index
    %c0_13 = arith.constant 0 : index
    %12 = vector.load %arg10[%c27, %c0_13] : memref<28x128xf32, #tpu.memory_space<vmem>>, vector<1x128xf32>
    tpu.vector_store %arg10[%c27, %c0_13], %11 {strides = array<i32>} : memref<28x128xf32, #tpu.memory_space<vmem>>, vector<1x128xf32>,
    %cst_14 = arith.constant 1.000000e+00 : f32
    %13 = vector.broadcast %cst_14 : f32 to vector<1x128xf32>
    %cst_15 = arith.constant 0.000000e+00 : f32
    %14 = vector.broadcast %cst_15 : f32 to vector<3x128xf32>
    %cst_16 = arith.constant 0.000000e+00 : f32
    %15 = vector.broadcast %cst_16 : f32 to vector<1x128xf32>
    %cst_17 = arith.constant 1.000000e-01 : f32
    %16 = vector.broadcast %cst_17 : f32 to vector<3x128xf32>
    %17 = arith.mulf %1, %16 : vector<3x128xf32>
    %18 = arith.addf %0, %17 : vector<3x128xf32>
    %c0_18 = arith.constant 0 : index
    %c0_19 = arith.constant 0 : index
    %19 = vector.load %arg10[%c0_18, %c0_19] : memref<28x128xf32, #tpu.memory_space<vmem>>, vector<3x128xf32>
    tpu.vector_store %arg10[%c0_18, %c0_19], %18 {strides = array<i32>} : memref<28x128xf32, #tpu.memory_space<vmem>>, vector<3x128xf32>,
    %20 = math.sin %18 : vector<3x128xf32>
    %21 = math.cos %18 : vector<3x128xf32>
    %c3 = arith.constant 3 : index
    %c0_20 = arith.constant 0 : index
    %22 = vector.load %arg10[%c3, %c0_20] : memref<28x128xf32, #tpu.memory_space<vmem>>, vector<3x128xf32>
    tpu.vector_store %arg10[%c3, %c0_20], %20 {strides = array<i32>} : memref<28x128xf32, #tpu.memory_space<vmem>>, vector<3x128xf32>,
    %c15 = arith.constant 15 : index
    %c0_21 = arith.constant 0 : index
    %23 = vector.load %arg10[%c15, %c0_21] : memref<28x128xf32, #tpu.memory_space<vmem>>, vector<3x128xf32>
    tpu.vector_store %arg10[%c15, %c0_21], %21 {strides = array<i32>} : memref<28x128xf32, #tpu.memory_space<vmem>>, vector<3x128xf32>,
    %cst_22 = arith.constant 2.000000e+00 : f32
    %24 = vector.broadcast %cst_22 : f32 to vector<3x128xf32>
    %25 = arith.mulf %24, %20 : vector<3x128xf32>
    %26 = arith.mulf %25, %21 : vector<3x128xf32>
    %cst_23 = arith.constant 2.000000e+00 : f32
    %27 = vector.broadcast %cst_23 : f32 to vector<3x128xf32>
    %28 = arith.mulf %27, %20 : vector<3x128xf32>
    %29 = arith.mulf %28, %20 : vector<3x128xf32>
    %cst_24 = arith.constant 1.000000e+00 : f32
    %30 = vector.broadcast %cst_24 : f32 to vector<3x128xf32>
    %31 = arith.subf %30, %29 : vector<3x128xf32>
    %c6 = arith.constant 6 : index
    %c0_25 = arith.constant 0 : index
    %32 = vector.load %arg10[%c6, %c0_25] : memref<28x128xf32, #tpu.memory_space<vmem>>, vector<3x128xf32>
    tpu.vector_store %arg10[%c6, %c0_25], %26 {strides = array<i32>} : memref<28x128xf32, #tpu.memory_space<vmem>>, vector<3x128xf32>,
    %c18 = arith.constant 18 : index
    %c0_26 = arith.constant 0 : index
    %33 = vector.load %arg10[%c18, %c0_26] : memref<28x128xf32, #tpu.memory_space<vmem>>, vector<3x128xf32>
    tpu.vector_store %arg10[%c18, %c0_26], %31 {strides = array<i32>} : memref<28x128xf32, #tpu.memory_space<vmem>>, vector<3x128xf32>,
    %cst_27 = arith.constant 2.000000e+00 : f32
    %34 = vector.broadcast %cst_27 : f32 to vector<3x128xf32>
    %35 = arith.mulf %34, %26 : vector<3x128xf32>
    %36 = arith.mulf %35, %31 : vector<3x128xf32>
    %cst_28 = arith.constant 2.000000e+00 : f32
    %37 = vector.broadcast %cst_28 : f32 to vector<3x128xf32>
    %38 = arith.mulf %37, %26 : vector<3x128xf32>
    %39 = arith.mulf %38, %26 : vector<3x128xf32>
    %cst_29 = arith.constant 1.000000e+00 : f32
    %40 = vector.broadcast %cst_29 : f32 to vector<3x128xf32>
    %41 = arith.subf %40, %39 : vector<3x128xf32>
    %c9 = arith.constant 9 : index
    %c0_30 = arith.constant 0 : index
    %42 = vector.load %arg10[%c9, %c0_30] : memref<28x128xf32, #tpu.memory_space<vmem>>, vector<3x128xf32>
    tpu.vector_store %arg10[%c9, %c0_30], %36 {strides = array<i32>} : memref<28x128xf32, #tpu.memory_space<vmem>>, vector<3x128xf32>,
    %c21 = arith.constant 21 : index
    %c0_31 = arith.constant 0 : index
    %43 = vector.load %arg10[%c21, %c0_31] : memref<28x128xf32, #tpu.memory_space<vmem>>, vector<3x128xf32>
    tpu.vector_store %arg10[%c21, %c0_31], %41 {strides = array<i32>} : memref<28x128xf32, #tpu.memory_space<vmem>>, vector<3x128xf32>,
    %cst_32 = arith.constant 2.000000e+00 : f32
    %44 = vector.broadcast %cst_32 : f32 to vector<3x128xf32>
    %45 = arith.mulf %44, %36 : vector<3x128xf32>
    %46 = arith.mulf %45, %41 : vector<3x128xf32>
    %cst_33 = arith.constant 2.000000e+00 : f32
    %47 = vector.broadcast %cst_33 : f32 to vector<3x128xf32>
    %48 = arith.mulf %47, %36 : vector<3x128xf32>
    %49 = arith.mulf %48, %36 : vector<3x128xf32>
    %cst_34 = arith.constant 1.000000e+00 : f32
    %50 = vector.broadcast %cst_34 : f32 to vector<3x128xf32>
    %51 = arith.subf %50, %49 : vector<3x128xf32>
    %c12 = arith.constant 12 : index
    %c0_35 = arith.constant 0 : index
    %52 = vector.load %arg10[%c12, %c0_35] : memref<28x128xf32, #tpu.memory_space<vmem>>, vector<3x128xf32>
    tpu.vector_store %arg10[%c12, %c0_35], %46 {strides = array<i32>} : memref<28x128xf32, #tpu.memory_space<vmem>>, vector<3x128xf32>,
    %c24 = arith.constant 24 : index
    %c0_36 = arith.constant 0 : index
    %53 = vector.load %arg10[%c24, %c0_36] : memref<28x128xf32, #tpu.memory_space<vmem>>, vector<3x128xf32>
    tpu.vector_store %arg10[%c24, %c0_36], %51 {strides = array<i32>} : memref<28x128xf32, #tpu.memory_space<vmem>>, vector<3x128xf32>,
    %c0_37 = arith.constant 0 : index
    %c0_38 = arith.constant 0 : index
    %54 = vector.load %arg10[%c0_37, %c0_38] : memref<28x128xf32, #tpu.memory_space<vmem>>, vector<28x128xf32>
    %55 = arith.truncf %54 : vector<28x128xf32> to vector<28x128xbf16>
    %cst_39 = arith.constant dense<0.000000e+00> : vector<32x128xf32>
    %56 = tpu.matmul %2, %55, %cst_39 {dimension_numbers = #tpu.dot_dimension_numbers<[1], [0], [0], [1], [0, 0, 1, 1], [], []>} : vector<32x28xbf16>, vector<28x128xbf16>, vector<32x128xf32> -> vector<32x128xf32>
    %cst_40 = arith.constant 0.000000e+00 : f32
    %57 = vector.broadcast %cst_40 : f32 to vector<32x128xf32>
    %58 = arith.maximumf %56, %57 : vector<32x128xf32>
    %59 = arith.truncf %58 : vector<32x128xf32> to vector<32x128xbf16>
    %cst_41 = arith.constant dense<0.000000e+00> : vector<32x128xf32>
    %60 = tpu.matmul %3, %59, %cst_41 {dimension_numbers = #tpu.dot_dimension_numbers<[1], [0], [0], [1], [0, 0, 1, 1], [], []>} : vector<32x32xbf16>, vector<32x128xbf16>, vector<32x128xf32> -> vector<32x128xf32>
    %61 = arith.addf %60, %7 : vector<32x128xf32>
    %cst_42 = arith.constant 0.000000e+00 : f32
    %62 = vector.broadcast %cst_42 : f32 to vector<32x128xf32>
    %63 = arith.maximumf %61, %62 : vector<32x128xf32>
    %64 = arith.truncf %63 : vector<32x128xf32> to vector<32x128xbf16>
    %cst_43 = arith.constant dense<0.000000e+00> : vector<4x128xf32>
    %65 = tpu.matmul %4, %64, %cst_43 {dimension_numbers = #tpu.dot_dimension_numbers<[1], [0], [0], [1], [0, 0, 1, 1], [], []>} : vector<4x32xbf16>, vector<32x128xbf16>, vector<4x128xf32> -> vector<4x128xf32>
    %66 = arith.addf %65, %10 : vector<4x128xf32>
    %67 = vector.extract_strided_slice %66 {offsets = [3, 0], sizes = [1, 128], strides = [1, 1]} : vector<4x128xf32> to vector<1x128xf32>
    %cst_44 = arith.constant 0.000000e+00 : f32
    %68 = vector.broadcast %cst_44 : f32 to vector<1x128xf32>
    %69 = arith.maximumf %67, %68 : vector<1x128xf32>
    %cst_45 = arith.constant 0.000000e+00 : f32
    %70 = vector.broadcast %cst_45 : f32 to vector<1x128xf32>
    %71 = arith.subf %70, %69 : vector<1x128xf32>
    %cst_46 = arith.constant 0.699999988 : f32
    %72 = vector.broadcast %cst_46 : f32 to vector<1x128xf32>
    %73 = arith.mulf %71, %72 : vector<1x128xf32>
    %74 = math.exp %73 : vector<1x128xf32>
    %cst_47 = arith.constant 1.000000e+00 : f32
    %75 = vector.broadcast %cst_47 : f32 to vector<1x128xf32>
    %76 = arith.subf %75, %74 : vector<1x128xf32>
    %77 = arith.mulf %13, %76 : vector<1x128xf32>
    %78 = vector.extract_strided_slice %66 {offsets = [0, 0], sizes = [3, 128], strides = [1, 1]} : vector<4x128xf32> to vector<3x128xf32>
    %79 = arith.negf %78 : vector<3x128xf32>
    %80 = math.exp %79 : vector<3x128xf32>
    %cst_48 = arith.constant 1.000000e+00 : f32
    %81 = vector.broadcast %cst_48 : f32 to vector<3x128xf32>
    %82 = arith.addf %81, %80 : vector<3x128xf32>
    %83 = arith.divf %81, %82 : vector<3x128xf32>
    %84 = vector.broadcast %77 : vector<1x128xf32> to vector<3x128xf32>
    %85 = arith.mulf %84, %83 : vector<3x128xf32>
    %86 = arith.addf %14, %85 : vector<3x128xf32>
    %cst_49 = arith.constant 1.000000e-01 : f32
    %87 = vector.broadcast %cst_49 : f32 to vector<1x128xf32>
    %88 = arith.mulf %77, %87 : vector<1x128xf32>
    %89 = arith.addf %15, %88 : vector<1x128xf32>
    %cst_50 = arith.constant 1.000000e+00 : f32
    %90 = vector.broadcast %cst_50 : f32 to vector<1x128xf32>
    %91 = arith.subf %90, %76 : vector<1x128xf32>
    %cst_51 = arith.constant 1.000000e-10 : f32
    %92 = vector.broadcast %cst_51 : f32 to vector<1x128xf32>
    %93 = arith.addf %91, %92 : vector<1x128xf32>
    %94 = arith.mulf %13, %93 : vector<1x128xf32>
    %cst_52 = arith.constant 8.000000e-01 : f32
    %95 = vector.broadcast %cst_52 : f32 to vector<3x128xf32>
    %96 = arith.mulf %1, %95 : vector<3x128xf32>
    %97 = arith.addf %0, %96 : vector<3x128xf32>
    %c0_53 = arith.constant 0 : index
    %c0_54 = arith.constant 0 : index
    %98 = vector.load %arg10[%c0_53, %c0_54] : memref<28x128xf32, #tpu.memory_space<vmem>>, vector<3x128xf32>
    tpu.vector_store %arg10[%c0_53, %c0_54], %97 {strides = array<i32>} : memref<28x128xf32, #tpu.memory_space<vmem>>, vector<3x128xf32>,
    %99 = math.sin %97 : vector<3x128xf32>
    %100 = math.cos %97 : vector<3x128xf32>
    %c3_55 = arith.constant 3 : index
    %c0_56 = arith.constant 0 : index
    %101 = vector.load %arg10[%c3_55, %c0_56] : memref<28x128xf32, #tpu.memory_space<vmem>>, vector<3x128xf32>
    tpu.vector_store %arg10[%c3_55, %c0_56], %99 {strides = array<i32>} : memref<28x128xf32, #tpu.memory_space<vmem>>, vector<3x128xf32>,
    %c15_57 = arith.constant 15 : index
    %c0_58 = arith.constant 0 : index
    %102 = vector.load %arg10[%c15_57, %c0_58] : memref<28x128xf32, #tpu.memory_space<vmem>>, vector<3x128xf32>
    tpu.vector_store %arg10[%c15_57, %c0_58], %100 {strides = array<i32>} : memref<28x128xf32, #tpu.memory_space<vmem>>, vector<3x128xf32>,
    %cst_59 = arith.constant 2.000000e+00 : f32
    %103 = vector.broadcast %cst_59 : f32 to vector<3x128xf32>
    %104 = arith.mulf %103, %99 : vector<3x128xf32>
    %105 = arith.mulf %104, %100 : vector<3x128xf32>
    %cst_60 = arith.constant 2.000000e+00 : f32
    %106 = vector.broadcast %cst_60 : f32 to vector<3x128xf32>
    %107 = arith.mulf %106, %99 : vector<3x128xf32>
    %108 = arith.mulf %107, %99 : vector<3x128xf32>
    %cst_61 = arith.constant 1.000000e+00 : f32
    %109 = vector.broadcast %cst_61 : f32 to vector<3x128xf32>
    %110 = arith.subf %109, %108 : vector<3x128xf32>
    %c6_62 = arith.constant 6 : index
    %c0_63 = arith.constant 0 : index
    %111 = vector.load %arg10[%c6_62, %c0_63] : memref<28x128xf32, #tpu.memory_space<vmem>>, vector<3x128xf32>
    tpu.vector_store %arg10[%c6_62, %c0_63], %105 {strides = array<i32>} : memref<28x128xf32, #tpu.memory_space<vmem>>, vector<3x128xf32>,
    %c18_64 = arith.constant 18 : index
    %c0_65 = arith.constant 0 : index
    %112 = vector.load %arg10[%c18_64, %c0_65] : memref<28x128xf32, #tpu.memory_space<vmem>>, vector<3x128xf32>
    tpu.vector_store %arg10[%c18_64, %c0_65], %110 {strides = array<i32>} : memref<28x128xf32, #tpu.memory_space<vmem>>, vector<3x128xf32>,
    %cst_66 = arith.constant 2.000000e+00 : f32
    %113 = vector.broadcast %cst_66 : f32 to vector<3x128xf32>
    %114 = arith.mulf %113, %105 : vector<3x128xf32>
    %115 = arith.mulf %114, %110 : vector<3x128xf32>
    %cst_67 = arith.constant 2.000000e+00 : f32
    %116 = vector.broadcast %cst_67 : f32 to vector<3x128xf32>
    %117 = arith.mulf %116, %105 : vector<3x128xf32>
    %118 = arith.mulf %117, %105 : vector<3x128xf32>
    %cst_68 = arith.constant 1.000000e+00 : f32
    %119 = vector.broadcast %cst_68 : f32 to vector<3x128xf32>
    %120 = arith.subf %119, %118 : vector<3x128xf32>
    %c9_69 = arith.constant 9 : index
    %c0_70 = arith.constant 0 : index
    %121 = vector.load %arg10[%c9_69, %c0_70] : memref<28x128xf32, #tpu.memory_space<vmem>>, vector<3x128xf32>
    tpu.vector_store %arg10[%c9_69, %c0_70], %115 {strides = array<i32>} : memref<28x128xf32, #tpu.memory_space<vmem>>, vector<3x128xf32>,
    %c21_71 = arith.constant 21 : index
    %c0_72 = arith.constant 0 : index
    %122 = vector.load %arg10[%c21_71, %c0_72] : memref<28x128xf32, #tpu.memory_space<vmem>>, vector<3x128xf32>
    tpu.vector_store %arg10[%c21_71, %c0_72], %120 {strides = array<i32>} : memref<28x128xf32, #tpu.memory_space<vmem>>, vector<3x128xf32>,
    %cst_73 = arith.constant 2.000000e+00 : f32
    %123 = vector.broadcast %cst_73 : f32 to vector<3x128xf32>
    %124 = arith.mulf %123, %115 : vector<3x128xf32>
    %125 = arith.mulf %124, %120 : vector<3x128xf32>
    %cst_74 = arith.constant 2.000000e+00 : f32
    %126 = vector.broadcast %cst_74 : f32 to vector<3x128xf32>
    %127 = arith.mulf %126, %115 : vector<3x128xf32>
    %128 = arith.mulf %127, %115 : vector<3x128xf32>
    %cst_75 = arith.constant 1.000000e+00 : f32
    %129 = vector.broadcast %cst_75 : f32 to vector<3x128xf32>
    %130 = arith.subf %129, %128 : vector<3x128xf32>
    %c12_76 = arith.constant 12 : index
    %c0_77 = arith.constant 0 : index
    %131 = vector.load %arg10[%c12_76, %c0_77] : memref<28x128xf32, #tpu.memory_space<vmem>>, vector<3x128xf32>
    tpu.vector_store %arg10[%c12_76, %c0_77], %125 {strides = array<i32>} : memref<28x128xf32, #tpu.memory_space<vmem>>, vector<3x128xf32>,
    %c24_78 = arith.constant 24 : index
    %c0_79 = arith.constant 0 : index
    %132 = vector.load %arg10[%c24_78, %c0_79] : memref<28x128xf32, #tpu.memory_space<vmem>>, vector<3x128xf32>
    tpu.vector_store %arg10[%c24_78, %c0_79], %130 {strides = array<i32>} : memref<28x128xf32, #tpu.memory_space<vmem>>, vector<3x128xf32>,
    %c0_80 = arith.constant 0 : index
    %c0_81 = arith.constant 0 : index
    %133 = vector.load %arg10[%c0_80, %c0_81] : memref<28x128xf32, #tpu.memory_space<vmem>>, vector<28x128xf32>
    %134 = arith.truncf %133 : vector<28x128xf32> to vector<28x128xbf16>
    %cst_82 = arith.constant dense<0.000000e+00> : vector<32x128xf32>
    %135 = tpu.matmul %2, %134, %cst_82 {dimension_numbers = #tpu.dot_dimension_numbers<[1], [0], [0], [1], [0, 0, 1, 1], [], []>} : vector<32x28xbf16>, vector<28x128xbf16>, vector<32x128xf32> -> vector<32x128xf32>
    %cst_83 = arith.constant 0.000000e+00 : f32
    %136 = vector.broadcast %cst_83 : f32 to vector<32x128xf32>
    %137 = arith.maximumf %135, %136 : vector<32x128xf32>
    %138 = arith.truncf %137 : vector<32x128xf32> to vector<32x128xbf16>
    %cst_84 = arith.constant dense<0.000000e+00> : vector<32x128xf32>
    %139 = tpu.matmul %3, %138, %cst_84 {dimension_numbers = #tpu.dot_dimension_numbers<[1], [0], [0], [1], [0, 0, 1, 1], [], []>} : vector<32x32xbf16>, vector<32x128xbf16>, vector<32x128xf32> -> vector<32x128xf32>
    %140 = arith.addf %139, %7 : vector<32x128xf32>
    %cst_85 = arith.constant 0.000000e+00 : f32
    %141 = vector.broadcast %cst_85 : f32 to vector<32x128xf32>
    %142 = arith.maximumf %140, %141 : vector<32x128xf32>
    %143 = arith.truncf %142 : vector<32x128xf32> to vector<32x128xbf16>
    %cst_86 = arith.constant dense<0.000000e+00> : vector<4x128xf32>
    %144 = tpu.matmul %4, %143, %cst_86 {dimension_numbers = #tpu.dot_dimension_numbers<[1], [0], [0], [1], [0, 0, 1, 1], [], []>} : vector<4x32xbf16>, vector<32x128xbf16>, vector<4x128xf32> -> vector<4x128xf32>
    %145 = arith.addf %144, %10 : vector<4x128xf32>
    %146 = vector.extract_strided_slice %145 {offsets = [3, 0], sizes = [1, 128], strides = [1, 1]} : vector<4x128xf32> to vector<1x128xf32>
    %cst_87 = arith.constant 0.000000e+00 : f32
    %147 = vector.broadcast %cst_87 : f32 to vector<1x128xf32>
    %148 = arith.maximumf %146, %147 : vector<1x128xf32>
    %cst_88 = arith.constant 0.000000e+00 : f32
    %149 = vector.broadcast %cst_88 : f32 to vector<1x128xf32>
    %150 = arith.subf %149, %148 : vector<1x128xf32>
    %cst_89 = arith.constant 0.699999988 : f32
    %151 = vector.broadcast %cst_89 : f32 to vector<1x128xf32>
    %152 = arith.mulf %150, %151 : vector<1x128xf32>
    %153 = math.exp %152 : vector<1x128xf32>
    %cst_90 = arith.constant 1.000000e+00 : f32
    %154 = vector.broadcast %cst_90 : f32 to vector<1x128xf32>
    %155 = arith.subf %154, %153 : vector<1x128xf32>
    %156 = arith.mulf %94, %155 : vector<1x128xf32>
    %157 = vector.extract_strided_slice %145 {offsets = [0, 0], sizes = [3, 128], strides = [1, 1]} : vector<4x128xf32> to vector<3x128xf32>
    %158 = arith.negf %157 : vector<3x128xf32>
    %159 = math.exp %158 : vector<3x128xf32>
    %cst_91 = arith.constant 1.000000e+00 : f32
    %160 = vector.broadcast %cst_91 : f32 to vector<3x128xf32>
    %161 = arith.addf %160, %159 : vector<3x128xf32>
    %162 = arith.divf %160, %161 : vector<3x128xf32>
    %163 = vector.broadcast %156 : vector<1x128xf32> to vector<3x128xf32>
    %164 = arith.mulf %163, %162 : vector<3x128xf32>
    %165 = arith.addf %86, %164 : vector<3x128xf32>
    %cst_92 = arith.constant 8.000000e-01 : f32
    %166 = vector.broadcast %cst_92 : f32 to vector<1x128xf32>
    %167 = arith.mulf %156, %166 : vector<1x128xf32>
    %168 = arith.addf %89, %167 : vector<1x128xf32>
    %cst_93 = arith.constant 1.000000e+00 : f32
    %169 = vector.broadcast %cst_93 : f32 to vector<1x128xf32>
    %170 = arith.subf %169, %155 : vector<1x128xf32>
    %cst_94 = arith.constant 1.000000e-10 : f32
    %171 = vector.broadcast %cst_94 : f32 to vector<1x128xf32>
    %172 = arith.addf %170, %171 : vector<1x128xf32>
    %173 = arith.mulf %94, %172 : vector<1x128xf32>
    %cst_95 = arith.constant 1.500000e+00 : f32
    %174 = vector.broadcast %cst_95 : f32 to vector<3x128xf32>
    %175 = arith.mulf %1, %174 : vector<3x128xf32>
    %176 = arith.addf %0, %175 : vector<3x128xf32>
    %c0_96 = arith.constant 0 : index
    %c0_97 = arith.constant 0 : index
    %177 = vector.load %arg10[%c0_96, %c0_97] : memref<28x128xf32, #tpu.memory_space<vmem>>, vector<3x128xf32>
    tpu.vector_store %arg10[%c0_96, %c0_97], %176 {strides = array<i32>} : memref<28x128xf32, #tpu.memory_space<vmem>>, vector<3x128xf32>,
    %178 = math.sin %176 : vector<3x128xf32>
    %179 = math.cos %176 : vector<3x128xf32>
    %c3_98 = arith.constant 3 : index
    %c0_99 = arith.constant 0 : index
    %180 = vector.load %arg10[%c3_98, %c0_99] : memref<28x128xf32, #tpu.memory_space<vmem>>, vector<3x128xf32>
    tpu.vector_store %arg10[%c3_98, %c0_99], %178 {strides = array<i32>} : memref<28x128xf32, #tpu.memory_space<vmem>>, vector<3x128xf32>,
    %c15_100 = arith.constant 15 : index
    %c0_101 = arith.constant 0 : index
    %181 = vector.load %arg10[%c15_100, %c0_101] : memref<28x128xf32, #tpu.memory_space<vmem>>, vector<3x128xf32>
    tpu.vector_store %arg10[%c15_100, %c0_101], %179 {strides = array<i32>} : memref<28x128xf32, #tpu.memory_space<vmem>>, vector<3x128xf32>,
    %cst_102 = arith.constant 2.000000e+00 : f32
    %182 = vector.broadcast %cst_102 : f32 to vector<3x128xf32>
    %183 = arith.mulf %182, %178 : vector<3x128xf32>
    %184 = arith.mulf %183, %179 : vector<3x128xf32>
    %cst_103 = arith.constant 2.000000e+00 : f32
    %185 = vector.broadcast %cst_103 : f32 to vector<3x128xf32>
    %186 = arith.mulf %185, %178 : vector<3x128xf32>
    %187 = arith.mulf %186, %178 : vector<3x128xf32>
    %cst_104 = arith.constant 1.000000e+00 : f32
    %188 = vector.broadcast %cst_104 : f32 to vector<3x128xf32>
    %189 = arith.subf %188, %187 : vector<3x128xf32>
    %c6_105 = arith.constant 6 : index
    %c0_106 = arith.constant 0 : index
    %190 = vector.load %arg10[%c6_105, %c0_106] : memref<28x128xf32, #tpu.memory_space<vmem>>, vector<3x128xf32>
    tpu.vector_store %arg10[%c6_105, %c0_106], %184 {strides = array<i32>} : memref<28x128xf32, #tpu.memory_space<vmem>>, vector<3x128xf32>,
    %c18_107 = arith.constant 18 : index
    %c0_108 = arith.constant 0 : index
    %191 = vector.load %arg10[%c18_107, %c0_108] : memref<28x128xf32, #tpu.memory_space<vmem>>, vector<3x128xf32>
    tpu.vector_store %arg10[%c18_107, %c0_108], %189 {strides = array<i32>} : memref<28x128xf32, #tpu.memory_space<vmem>>, vector<3x128xf32>,
    %cst_109 = arith.constant 2.000000e+00 : f32
    %192 = vector.broadcast %cst_109 : f32 to vector<3x128xf32>
    %193 = arith.mulf %192, %184 : vector<3x128xf32>
    %194 = arith.mulf %193, %189 : vector<3x128xf32>
    %cst_110 = arith.constant 2.000000e+00 : f32
    %195 = vector.broadcast %cst_110 : f32 to vector<3x128xf32>
    %196 = arith.mulf %195, %184 : vector<3x128xf32>
    %197 = arith.mulf %196, %184 : vector<3x128xf32>
    %cst_111 = arith.constant 1.000000e+00 : f32
    %198 = vector.broadcast %cst_111 : f32 to vector<3x128xf32>
    %199 = arith.subf %198, %197 : vector<3x128xf32>
    %c9_112 = arith.constant 9 : index
    %c0_113 = arith.constant 0 : index
    %200 = vector.load %arg10[%c9_112, %c0_113] : memref<28x128xf32, #tpu.memory_space<vmem>>, vector<3x128xf32>
    tpu.vector_store %arg10[%c9_112, %c0_113], %194 {strides = array<i32>} : memref<28x128xf32, #tpu.memory_space<vmem>>, vector<3x128xf32>,
    %c21_114 = arith.constant 21 : index
    %c0_115 = arith.constant 0 : index
    %201 = vector.load %arg10[%c21_114, %c0_115] : memref<28x128xf32, #tpu.memory_space<vmem>>, vector<3x128xf32>
    tpu.vector_store %arg10[%c21_114, %c0_115], %199 {strides = array<i32>} : memref<28x128xf32, #tpu.memory_space<vmem>>, vector<3x128xf32>,
    %cst_116 = arith.constant 2.000000e+00 : f32
    %202 = vector.broadcast %cst_116 : f32 to vector<3x128xf32>
    %203 = arith.mulf %202, %194 : vector<3x128xf32>
    %204 = arith.mulf %203, %199 : vector<3x128xf32>
    %cst_117 = arith.constant 2.000000e+00 : f32
    %205 = vector.broadcast %cst_117 : f32 to vector<3x128xf32>
    %206 = arith.mulf %205, %194 : vector<3x128xf32>
    %207 = arith.mulf %206, %194 : vector<3x128xf32>
    %cst_118 = arith.constant 1.000000e+00 : f32
    %208 = vector.broadcast %cst_118 : f32 to vector<3x128xf32>
    %209 = arith.subf %208, %207 : vector<3x128xf32>
    %c12_119 = arith.constant 12 : index
    %c0_120 = arith.constant 0 : index
    %210 = vector.load %arg10[%c12_119, %c0_120] : memref<28x128xf32, #tpu.memory_space<vmem>>, vector<3x128xf32>
    tpu.vector_store %arg10[%c12_119, %c0_120], %204 {strides = array<i32>} : memref<28x128xf32, #tpu.memory_space<vmem>>, vector<3x128xf32>,
    %c24_121 = arith.constant 24 : index
    %c0_122 = arith.constant 0 : index
    %211 = vector.load %arg10[%c24_121, %c0_122] : memref<28x128xf32, #tpu.memory_space<vmem>>, vector<3x128xf32>
    tpu.vector_store %arg10[%c24_121, %c0_122], %209 {strides = array<i32>} : memref<28x128xf32, #tpu.memory_space<vmem>>, vector<3x128xf32>,
    %c0_123 = arith.constant 0 : index
    %c0_124 = arith.constant 0 : index
    %212 = vector.load %arg10[%c0_123, %c0_124] : memref<28x128xf32, #tpu.memory_space<vmem>>, vector<28x128xf32>
    %213 = arith.truncf %212 : vector<28x128xf32> to vector<28x128xbf16>
    %cst_125 = arith.constant dense<0.000000e+00> : vector<32x128xf32>
    %214 = tpu.matmul %2, %213, %cst_125 {dimension_numbers = #tpu.dot_dimension_numbers<[1], [0], [0], [1], [0, 0, 1, 1], [], []>} : vector<32x28xbf16>, vector<28x128xbf16>, vector<32x128xf32> -> vector<32x128xf32>
    %cst_126 = arith.constant 0.000000e+00 : f32
    %215 = vector.broadcast %cst_126 : f32 to vector<32x128xf32>
    %216 = arith.maximumf %214, %215 : vector<32x128xf32>
    %217 = arith.truncf %216 : vector<32x128xf32> to vector<32x128xbf16>
    %cst_127 = arith.constant dense<0.000000e+00> : vector<32x128xf32>
    %218 = tpu.matmul %3, %217, %cst_127 {dimension_numbers = #tpu.dot_dimension_numbers<[1], [0], [0], [1], [0, 0, 1, 1], [], []>} : vector<32x32xbf16>, vector<32x128xbf16>, vector<32x128xf32> -> vector<32x128xf32>
    %219 = arith.addf %218, %7 : vector<32x128xf32>
    %cst_128 = arith.constant 0.000000e+00 : f32
    %220 = vector.broadcast %cst_128 : f32 to vector<32x128xf32>
    %221 = arith.maximumf %219, %220 : vector<32x128xf32>
    %222 = arith.truncf %221 : vector<32x128xf32> to vector<32x128xbf16>
    %cst_129 = arith.constant dense<0.000000e+00> : vector<4x128xf32>
    %223 = tpu.matmul %4, %222, %cst_129 {dimension_numbers = #tpu.dot_dimension_numbers<[1], [0], [0], [1], [0, 0, 1, 1], [], []>} : vector<4x32xbf16>, vector<32x128xbf16>, vector<4x128xf32> -> vector<4x128xf32>
    %224 = arith.addf %223, %10 : vector<4x128xf32>
    %225 = vector.extract_strided_slice %224 {offsets = [3, 0], sizes = [1, 128], strides = [1, 1]} : vector<4x128xf32> to vector<1x128xf32>
    %cst_130 = arith.constant 0.000000e+00 : f32
    %226 = vector.broadcast %cst_130 : f32 to vector<1x128xf32>
    %227 = arith.maximumf %225, %226 : vector<1x128xf32>
    %cst_131 = arith.constant 0.000000e+00 : f32
    %228 = vector.broadcast %cst_131 : f32 to vector<1x128xf32>
    %229 = arith.subf %228, %227 : vector<1x128xf32>
    %cst_132 = arith.constant 0.699999988 : f32
    %230 = vector.broadcast %cst_132 : f32 to vector<1x128xf32>
    %231 = arith.mulf %229, %230 : vector<1x128xf32>
    %232 = math.exp %231 : vector<1x128xf32>
    %cst_133 = arith.constant 1.000000e+00 : f32
    %233 = vector.broadcast %cst_133 : f32 to vector<1x128xf32>
    %234 = arith.subf %233, %232 : vector<1x128xf32>
    %235 = arith.mulf %173, %234 : vector<1x128xf32>
    %236 = vector.extract_strided_slice %224 {offsets = [0, 0], sizes = [3, 128], strides = [1, 1]} : vector<4x128xf32> to vector<3x128xf32>
    %237 = arith.negf %236 : vector<3x128xf32>
    %238 = math.exp %237 : vector<3x128xf32>
    %cst_134 = arith.constant 1.000000e+00 : f32
    %239 = vector.broadcast %cst_134 : f32 to vector<3x128xf32>
    %240 = arith.addf %239, %238 : vector<3x128xf32>
    %241 = arith.divf %239, %240 : vector<3x128xf32>
    %242 = vector.broadcast %235 : vector<1x128xf32> to vector<3x128xf32>
    %243 = arith.mulf %242, %241 : vector<3x128xf32>
    %244 = arith.addf %165, %243 : vector<3x128xf32>
    %cst_135 = arith.constant 1.500000e+00 : f32
    %245 = vector.broadcast %cst_135 : f32 to vector<1x128xf32>
    %246 = arith.mulf %235, %245 : vector<1x128xf32>
    %247 = arith.addf %168, %246 : vector<1x128xf32>
    %cst_136 = arith.constant 1.000000e+00 : f32
    %248 = vector.broadcast %cst_136 : f32 to vector<1x128xf32>
    %249 = arith.subf %248, %234 : vector<1x128xf32>
    %cst_137 = arith.constant 1.000000e-10 : f32
    %250 = vector.broadcast %cst_137 : f32 to vector<1x128xf32>
    %251 = arith.addf %249, %250 : vector<1x128xf32>
    %252 = arith.mulf %173, %251 : vector<1x128xf32>
    %cst_138 = arith.constant 2.200000e+00 : f32
    %253 = vector.broadcast %cst_138 : f32 to vector<3x128xf32>
    %254 = arith.mulf %1, %253 : vector<3x128xf32>
    %255 = arith.addf %0, %254 : vector<3x128xf32>
    %c0_139 = arith.constant 0 : index
    %c0_140 = arith.constant 0 : index
    %256 = vector.load %arg10[%c0_139, %c0_140] : memref<28x128xf32, #tpu.memory_space<vmem>>, vector<3x128xf32>
    tpu.vector_store %arg10[%c0_139, %c0_140], %255 {strides = array<i32>} : memref<28x128xf32, #tpu.memory_space<vmem>>, vector<3x128xf32>,
    %257 = math.sin %255 : vector<3x128xf32>
    %258 = math.cos %255 : vector<3x128xf32>
    %c3_141 = arith.constant 3 : index
    %c0_142 = arith.constant 0 : index
    %259 = vector.load %arg10[%c3_141, %c0_142] : memref<28x128xf32, #tpu.memory_space<vmem>>, vector<3x128xf32>
    tpu.vector_store %arg10[%c3_141, %c0_142], %257 {strides = array<i32>} : memref<28x128xf32, #tpu.memory_space<vmem>>, vector<3x128xf32>,
    %c15_143 = arith.constant 15 : index
    %c0_144 = arith.constant 0 : index
    %260 = vector.load %arg10[%c15_143, %c0_144] : memref<28x128xf32, #tpu.memory_space<vmem>>, vector<3x128xf32>
    tpu.vector_store %arg10[%c15_143, %c0_144], %258 {strides = array<i32>} : memref<28x128xf32, #tpu.memory_space<vmem>>, vector<3x128xf32>,
    %cst_145 = arith.constant 2.000000e+00 : f32
    %261 = vector.broadcast %cst_145 : f32 to vector<3x128xf32>
    %262 = arith.mulf %261, %257 : vector<3x128xf32>
    %263 = arith.mulf %262, %258 : vector<3x128xf32>
    %cst_146 = arith.constant 2.000000e+00 : f32
    %264 = vector.broadcast %cst_146 : f32 to vector<3x128xf32>
    %265 = arith.mulf %264, %257 : vector<3x128xf32>
    %266 = arith.mulf %265, %257 : vector<3x128xf32>
    %cst_147 = arith.constant 1.000000e+00 : f32
    %267 = vector.broadcast %cst_147 : f32 to vector<3x128xf32>
    %268 = arith.subf %267, %266 : vector<3x128xf32>
    %c6_148 = arith.constant 6 : index
    %c0_149 = arith.constant 0 : index
    %269 = vector.load %arg10[%c6_148, %c0_149] : memref<28x128xf32, #tpu.memory_space<vmem>>, vector<3x128xf32>
    tpu.vector_store %arg10[%c6_148, %c0_149], %263 {strides = array<i32>} : memref<28x128xf32, #tpu.memory_space<vmem>>, vector<3x128xf32>,
    %c18_150 = arith.constant 18 : index
    %c0_151 = arith.constant 0 : index
    %270 = vector.load %arg10[%c18_150, %c0_151] : memref<28x128xf32, #tpu.memory_space<vmem>>, vector<3x128xf32>
    tpu.vector_store %arg10[%c18_150, %c0_151], %268 {strides = array<i32>} : memref<28x128xf32, #tpu.memory_space<vmem>>, vector<3x128xf32>,
    %cst_152 = arith.constant 2.000000e+00 : f32
    %271 = vector.broadcast %cst_152 : f32 to vector<3x128xf32>
    %272 = arith.mulf %271, %263 : vector<3x128xf32>
    %273 = arith.mulf %272, %268 : vector<3x128xf32>
    %cst_153 = arith.constant 2.000000e+00 : f32
    %274 = vector.broadcast %cst_153 : f32 to vector<3x128xf32>
    %275 = arith.mulf %274, %263 : vector<3x128xf32>
    %276 = arith.mulf %275, %263 : vector<3x128xf32>
    %cst_154 = arith.constant 1.000000e+00 : f32
    %277 = vector.broadcast %cst_154 : f32 to vector<3x128xf32>
    %278 = arith.subf %277, %276 : vector<3x128xf32>
    %c9_155 = arith.constant 9 : index
    %c0_156 = arith.constant 0 : index
    %279 = vector.load %arg10[%c9_155, %c0_156] : memref<28x128xf32, #tpu.memory_space<vmem>>, vector<3x128xf32>
    tpu.vector_store %arg10[%c9_155, %c0_156], %273 {strides = array<i32>} : memref<28x128xf32, #tpu.memory_space<vmem>>, vector<3x128xf32>,
    %c21_157 = arith.constant 21 : index
    %c0_158 = arith.constant 0 : index
    %280 = vector.load %arg10[%c21_157, %c0_158] : memref<28x128xf32, #tpu.memory_space<vmem>>, vector<3x128xf32>
    tpu.vector_store %arg10[%c21_157, %c0_158], %278 {strides = array<i32>} : memref<28x128xf32, #tpu.memory_space<vmem>>, vector<3x128xf32>,
    %cst_159 = arith.constant 2.000000e+00 : f32
    %281 = vector.broadcast %cst_159 : f32 to vector<3x128xf32>
    %282 = arith.mulf %281, %273 : vector<3x128xf32>
    %283 = arith.mulf %282, %278 : vector<3x128xf32>
    %cst_160 = arith.constant 2.000000e+00 : f32
    %284 = vector.broadcast %cst_160 : f32 to vector<3x128xf32>
    %285 = arith.mulf %284, %273 : vector<3x128xf32>
    %286 = arith.mulf %285, %273 : vector<3x128xf32>
    %cst_161 = arith.constant 1.000000e+00 : f32
    %287 = vector.broadcast %cst_161 : f32 to vector<3x128xf32>
    %288 = arith.subf %287, %286 : vector<3x128xf32>
    %c12_162 = arith.constant 12 : index
    %c0_163 = arith.constant 0 : index
    %289 = vector.load %arg10[%c12_162, %c0_163] : memref<28x128xf32, #tpu.memory_space<vmem>>, vector<3x128xf32>
    tpu.vector_store %arg10[%c12_162, %c0_163], %283 {strides = array<i32>} : memref<28x128xf32, #tpu.memory_space<vmem>>, vector<3x128xf32>,
    %c24_164 = arith.constant 24 : index
    %c0_165 = arith.constant 0 : index
    %290 = vector.load %arg10[%c24_164, %c0_165] : memref<28x128xf32, #tpu.memory_space<vmem>>, vector<3x128xf32>
    tpu.vector_store %arg10[%c24_164, %c0_165], %288 {strides = array<i32>} : memref<28x128xf32, #tpu.memory_space<vmem>>, vector<3x128xf32>,
    %c0_166 = arith.constant 0 : index
    %c0_167 = arith.constant 0 : index
    %291 = vector.load %arg10[%c0_166, %c0_167] : memref<28x128xf32, #tpu.memory_space<vmem>>, vector<28x128xf32>
    %292 = arith.truncf %291 : vector<28x128xf32> to vector<28x128xbf16>
    %cst_168 = arith.constant dense<0.000000e+00> : vector<32x128xf32>
    %293 = tpu.matmul %2, %292, %cst_168 {dimension_numbers = #tpu.dot_dimension_numbers<[1], [0], [0], [1], [0, 0, 1, 1], [], []>} : vector<32x28xbf16>, vector<28x128xbf16>, vector<32x128xf32> -> vector<32x128xf32>
    %cst_169 = arith.constant 0.000000e+00 : f32
    %294 = vector.broadcast %cst_169 : f32 to vector<32x128xf32>
    %295 = arith.maximumf %293, %294 : vector<32x128xf32>
    %296 = arith.truncf %295 : vector<32x128xf32> to vector<32x128xbf16>
    %cst_170 = arith.constant dense<0.000000e+00> : vector<32x128xf32>
    %297 = tpu.matmul %3, %296, %cst_170 {dimension_numbers = #tpu.dot_dimension_numbers<[1], [0], [0], [1], [0, 0, 1, 1], [], []>} : vector<32x32xbf16>, vector<32x128xbf16>, vector<32x128xf32> -> vector<32x128xf32>
    %298 = arith.addf %297, %7 : vector<32x128xf32>
    %cst_171 = arith.constant 0.000000e+00 : f32
    %299 = vector.broadcast %cst_171 : f32 to vector<32x128xf32>
    %300 = arith.maximumf %298, %299 : vector<32x128xf32>
    %301 = arith.truncf %300 : vector<32x128xf32> to vector<32x128xbf16>
    %cst_172 = arith.constant dense<0.000000e+00> : vector<4x128xf32>
    %302 = tpu.matmul %4, %301, %cst_172 {dimension_numbers = #tpu.dot_dimension_numbers<[1], [0], [0], [1], [0, 0, 1, 1], [], []>} : vector<4x32xbf16>, vector<32x128xbf16>, vector<4x128xf32> -> vector<4x128xf32>
    %303 = arith.addf %302, %10 : vector<4x128xf32>
    %304 = vector.extract_strided_slice %303 {offsets = [3, 0], sizes = [1, 128], strides = [1, 1]} : vector<4x128xf32> to vector<1x128xf32>
    %cst_173 = arith.constant 0.000000e+00 : f32
    %305 = vector.broadcast %cst_173 : f32 to vector<1x128xf32>
    %306 = arith.maximumf %304, %305 : vector<1x128xf32>
    %cst_174 = arith.constant 0.000000e+00 : f32
    %307 = vector.broadcast %cst_174 : f32 to vector<1x128xf32>
    %308 = arith.subf %307, %306 : vector<1x128xf32>
    %cst_175 = arith.constant 0.699999988 : f32
    %309 = vector.broadcast %cst_175 : f32 to vector<1x128xf32>
    %310 = arith.mulf %308, %309 : vector<1x128xf32>
    %311 = math.exp %310 : vector<1x128xf32>
    %cst_176 = arith.constant 1.000000e+00 : f32
    %312 = vector.broadcast %cst_176 : f32 to vector<1x128xf32>
    %313 = arith.subf %312, %311 : vector<1x128xf32>
    %314 = arith.mulf %252, %313 : vector<1x128xf32>
    %315 = vector.extract_strided_slice %303 {offsets = [0, 0], sizes = [3, 128], strides = [1, 1]} : vector<4x128xf32> to vector<3x128xf32>
    %316 = arith.negf %315 : vector<3x128xf32>
    %317 = math.exp %316 : vector<3x128xf32>
    %cst_177 = arith.constant 1.000000e+00 : f32
    %318 = vector.broadcast %cst_177 : f32 to vector<3x128xf32>
    %319 = arith.addf %318, %317 : vector<3x128xf32>
    %320 = arith.divf %318, %319 : vector<3x128xf32>
    %321 = vector.broadcast %314 : vector<1x128xf32> to vector<3x128xf32>
    %322 = arith.mulf %321, %320 : vector<3x128xf32>
    %323 = arith.addf %244, %322 : vector<3x128xf32>
    %cst_178 = arith.constant 2.200000e+00 : f32
    %324 = vector.broadcast %cst_178 : f32 to vector<1x128xf32>
    %325 = arith.mulf %314, %324 : vector<1x128xf32>
    %326 = arith.addf %247, %325 : vector<1x128xf32>
    %cst_179 = arith.constant 1.000000e+00 : f32
    %327 = vector.broadcast %cst_179 : f32 to vector<1x128xf32>
    %328 = arith.subf %327, %313 : vector<1x128xf32>
    %cst_180 = arith.constant 1.000000e-10 : f32
    %329 = vector.broadcast %cst_180 : f32 to vector<1x128xf32>
    %330 = arith.addf %328, %329 : vector<1x128xf32>
    %331 = arith.mulf %252, %330 : vector<1x128xf32>
    %cst_181 = arith.constant 2.900000e+00 : f32
    %332 = vector.broadcast %cst_181 : f32 to vector<3x128xf32>
    %333 = arith.mulf %1, %332 : vector<3x128xf32>
    %334 = arith.addf %0, %333 : vector<3x128xf32>
    %c0_182 = arith.constant 0 : index
    %c0_183 = arith.constant 0 : index
    %335 = vector.load %arg10[%c0_182, %c0_183] : memref<28x128xf32, #tpu.memory_space<vmem>>, vector<3x128xf32>
    tpu.vector_store %arg10[%c0_182, %c0_183], %334 {strides = array<i32>} : memref<28x128xf32, #tpu.memory_space<vmem>>, vector<3x128xf32>,
    %336 = math.sin %334 : vector<3x128xf32>
    %337 = math.cos %334 : vector<3x128xf32>
    %c3_184 = arith.constant 3 : index
    %c0_185 = arith.constant 0 : index
    %338 = vector.load %arg10[%c3_184, %c0_185] : memref<28x128xf32, #tpu.memory_space<vmem>>, vector<3x128xf32>
    tpu.vector_store %arg10[%c3_184, %c0_185], %336 {strides = array<i32>} : memref<28x128xf32, #tpu.memory_space<vmem>>, vector<3x128xf32>,
    %c15_186 = arith.constant 15 : index
    %c0_187 = arith.constant 0 : index
    %339 = vector.load %arg10[%c15_186, %c0_187] : memref<28x128xf32, #tpu.memory_space<vmem>>, vector<3x128xf32>
    tpu.vector_store %arg10[%c15_186, %c0_187], %337 {strides = array<i32>} : memref<28x128xf32, #tpu.memory_space<vmem>>, vector<3x128xf32>,
    %cst_188 = arith.constant 2.000000e+00 : f32
    %340 = vector.broadcast %cst_188 : f32 to vector<3x128xf32>
    %341 = arith.mulf %340, %336 : vector<3x128xf32>
    %342 = arith.mulf %341, %337 : vector<3x128xf32>
    %cst_189 = arith.constant 2.000000e+00 : f32
    %343 = vector.broadcast %cst_189 : f32 to vector<3x128xf32>
    %344 = arith.mulf %343, %336 : vector<3x128xf32>
    %345 = arith.mulf %344, %336 : vector<3x128xf32>
    %cst_190 = arith.constant 1.000000e+00 : f32
    %346 = vector.broadcast %cst_190 : f32 to vector<3x128xf32>
    %347 = arith.subf %346, %345 : vector<3x128xf32>
    %c6_191 = arith.constant 6 : index
    %c0_192 = arith.constant 0 : index
    %348 = vector.load %arg10[%c6_191, %c0_192] : memref<28x128xf32, #tpu.memory_space<vmem>>, vector<3x128xf32>
    tpu.vector_store %arg10[%c6_191, %c0_192], %342 {strides = array<i32>} : memref<28x128xf32, #tpu.memory_space<vmem>>, vector<3x128xf32>,
    %c18_193 = arith.constant 18 : index
    %c0_194 = arith.constant 0 : index
    %349 = vector.load %arg10[%c18_193, %c0_194] : memref<28x128xf32, #tpu.memory_space<vmem>>, vector<3x128xf32>
    tpu.vector_store %arg10[%c18_193, %c0_194], %347 {strides = array<i32>} : memref<28x128xf32, #tpu.memory_space<vmem>>, vector<3x128xf32>,
    %cst_195 = arith.constant 2.000000e+00 : f32
    %350 = vector.broadcast %cst_195 : f32 to vector<3x128xf32>
    %351 = arith.mulf %350, %342 : vector<3x128xf32>
    %352 = arith.mulf %351, %347 : vector<3x128xf32>
    %cst_196 = arith.constant 2.000000e+00 : f32
    %353 = vector.broadcast %cst_196 : f32 to vector<3x128xf32>
    %354 = arith.mulf %353, %342 : vector<3x128xf32>
    %355 = arith.mulf %354, %342 : vector<3x128xf32>
    %cst_197 = arith.constant 1.000000e+00 : f32
    %356 = vector.broadcast %cst_197 : f32 to vector<3x128xf32>
    %357 = arith.subf %356, %355 : vector<3x128xf32>
    %c9_198 = arith.constant 9 : index
    %c0_199 = arith.constant 0 : index
    %358 = vector.load %arg10[%c9_198, %c0_199] : memref<28x128xf32, #tpu.memory_space<vmem>>, vector<3x128xf32>
    tpu.vector_store %arg10[%c9_198, %c0_199], %352 {strides = array<i32>} : memref<28x128xf32, #tpu.memory_space<vmem>>, vector<3x128xf32>,
    %c21_200 = arith.constant 21 : index
    %c0_201 = arith.constant 0 : index
    %359 = vector.load %arg10[%c21_200, %c0_201] : memref<28x128xf32, #tpu.memory_space<vmem>>, vector<3x128xf32>
    tpu.vector_store %arg10[%c21_200, %c0_201], %357 {strides = array<i32>} : memref<28x128xf32, #tpu.memory_space<vmem>>, vector<3x128xf32>,
    %cst_202 = arith.constant 2.000000e+00 : f32
    %360 = vector.broadcast %cst_202 : f32 to vector<3x128xf32>
    %361 = arith.mulf %360, %352 : vector<3x128xf32>
    %362 = arith.mulf %361, %357 : vector<3x128xf32>
    %cst_203 = arith.constant 2.000000e+00 : f32
    %363 = vector.broadcast %cst_203 : f32 to vector<3x128xf32>
    %364 = arith.mulf %363, %352 : vector<3x128xf32>
    %365 = arith.mulf %364, %352 : vector<3x128xf32>
    %cst_204 = arith.constant 1.000000e+00 : f32
    %366 = vector.broadcast %cst_204 : f32 to vector<3x128xf32>
    %367 = arith.subf %366, %365 : vector<3x128xf32>
    %c12_205 = arith.constant 12 : index
    %c0_206 = arith.constant 0 : index
    %368 = vector.load %arg10[%c12_205, %c0_206] : memref<28x128xf32, #tpu.memory_space<vmem>>, vector<3x128xf32>
    tpu.vector_store %arg10[%c12_205, %c0_206], %362 {strides = array<i32>} : memref<28x128xf32, #tpu.memory_space<vmem>>, vector<3x128xf32>,
    %c24_207 = arith.constant 24 : index
    %c0_208 = arith.constant 0 : index
    %369 = vector.load %arg10[%c24_207, %c0_208] : memref<28x128xf32, #tpu.memory_space<vmem>>, vector<3x128xf32>
    tpu.vector_store %arg10[%c24_207, %c0_208], %367 {strides = array<i32>} : memref<28x128xf32, #tpu.memory_space<vmem>>, vector<3x128xf32>,
    %c0_209 = arith.constant 0 : index
    %c0_210 = arith.constant 0 : index
    %370 = vector.load %arg10[%c0_209, %c0_210] : memref<28x128xf32, #tpu.memory_space<vmem>>, vector<28x128xf32>
    %371 = arith.truncf %370 : vector<28x128xf32> to vector<28x128xbf16>
    %cst_211 = arith.constant dense<0.000000e+00> : vector<32x128xf32>
    %372 = tpu.matmul %2, %371, %cst_211 {dimension_numbers = #tpu.dot_dimension_numbers<[1], [0], [0], [1], [0, 0, 1, 1], [], []>} : vector<32x28xbf16>, vector<28x128xbf16>, vector<32x128xf32> -> vector<32x128xf32>
    %cst_212 = arith.constant 0.000000e+00 : f32
    %373 = vector.broadcast %cst_212 : f32 to vector<32x128xf32>
    %374 = arith.maximumf %372, %373 : vector<32x128xf32>
    %375 = arith.truncf %374 : vector<32x128xf32> to vector<32x128xbf16>
    %cst_213 = arith.constant dense<0.000000e+00> : vector<32x128xf32>
    %376 = tpu.matmul %3, %375, %cst_213 {dimension_numbers = #tpu.dot_dimension_numbers<[1], [0], [0], [1], [0, 0, 1, 1], [], []>} : vector<32x32xbf16>, vector<32x128xbf16>, vector<32x128xf32> -> vector<32x128xf32>
    %377 = arith.addf %376, %7 : vector<32x128xf32>
    %cst_214 = arith.constant 0.000000e+00 : f32
    %378 = vector.broadcast %cst_214 : f32 to vector<32x128xf32>
    %379 = arith.maximumf %377, %378 : vector<32x128xf32>
    %380 = arith.truncf %379 : vector<32x128xf32> to vector<32x128xbf16>
    %cst_215 = arith.constant dense<0.000000e+00> : vector<4x128xf32>
    %381 = tpu.matmul %4, %380, %cst_215 {dimension_numbers = #tpu.dot_dimension_numbers<[1], [0], [0], [1], [0, 0, 1, 1], [], []>} : vector<4x32xbf16>, vector<32x128xbf16>, vector<4x128xf32> -> vector<4x128xf32>
    %382 = arith.addf %381, %10 : vector<4x128xf32>
    %383 = vector.extract_strided_slice %382 {offsets = [3, 0], sizes = [1, 128], strides = [1, 1]} : vector<4x128xf32> to vector<1x128xf32>
    %cst_216 = arith.constant 0.000000e+00 : f32
    %384 = vector.broadcast %cst_216 : f32 to vector<1x128xf32>
    %385 = arith.maximumf %383, %384 : vector<1x128xf32>
    %cst_217 = arith.constant 0.000000e+00 : f32
    %386 = vector.broadcast %cst_217 : f32 to vector<1x128xf32>
    %387 = arith.subf %386, %385 : vector<1x128xf32>
    %cst_218 = arith.constant 0.699999988 : f32
    %388 = vector.broadcast %cst_218 : f32 to vector<1x128xf32>
    %389 = arith.mulf %387, %388 : vector<1x128xf32>
    %390 = math.exp %389 : vector<1x128xf32>
    %cst_219 = arith.constant 1.000000e+00 : f32
    %391 = vector.broadcast %cst_219 : f32 to vector<1x128xf32>
    %392 = arith.subf %391, %390 : vector<1x128xf32>
    %393 = arith.mulf %331, %392 : vector<1x128xf32>
    %394 = vector.extract_strided_slice %382 {offsets = [0, 0], sizes = [3, 128], strides = [1, 1]} : vector<4x128xf32> to vector<3x128xf32>
    %395 = arith.negf %394 : vector<3x128xf32>
    %396 = math.exp %395 : vector<3x128xf32>
    %cst_220 = arith.constant 1.000000e+00 : f32
    %397 = vector.broadcast %cst_220 : f32 to vector<3x128xf32>
    %398 = arith.addf %397, %396 : vector<3x128xf32>
    %399 = arith.divf %397, %398 : vector<3x128xf32>
    %400 = vector.broadcast %393 : vector<1x128xf32> to vector<3x128xf32>
    %401 = arith.mulf %400, %399 : vector<3x128xf32>
    %402 = arith.addf %323, %401 : vector<3x128xf32>
    %cst_221 = arith.constant 2.900000e+00 : f32
    %403 = vector.broadcast %cst_221 : f32 to vector<1x128xf32>
    %404 = arith.mulf %393, %403 : vector<1x128xf32>
    %405 = arith.addf %326, %404 : vector<1x128xf32>
    %cst_222 = arith.constant 1.000000e+00 : f32
    %406 = vector.broadcast %cst_222 : f32 to vector<1x128xf32>
    %407 = arith.subf %406, %392 : vector<1x128xf32>
    %cst_223 = arith.constant 1.000000e-10 : f32
    %408 = vector.broadcast %cst_223 : f32 to vector<1x128xf32>
    %409 = arith.addf %407, %408 : vector<1x128xf32>
    %410 = arith.mulf %331, %409 : vector<1x128xf32>
    %cst_224 = arith.constant 3.600000e+00 : f32
    %411 = vector.broadcast %cst_224 : f32 to vector<3x128xf32>
    %412 = arith.mulf %1, %411 : vector<3x128xf32>
    %413 = arith.addf %0, %412 : vector<3x128xf32>
    %c0_225 = arith.constant 0 : index
    %c0_226 = arith.constant 0 : index
    %414 = vector.load %arg10[%c0_225, %c0_226] : memref<28x128xf32, #tpu.memory_space<vmem>>, vector<3x128xf32>
    tpu.vector_store %arg10[%c0_225, %c0_226], %413 {strides = array<i32>} : memref<28x128xf32, #tpu.memory_space<vmem>>, vector<3x128xf32>,
    %415 = math.sin %413 : vector<3x128xf32>
    %416 = math.cos %413 : vector<3x128xf32>
    %c3_227 = arith.constant 3 : index
    %c0_228 = arith.constant 0 : index
    %417 = vector.load %arg10[%c3_227, %c0_228] : memref<28x128xf32, #tpu.memory_space<vmem>>, vector<3x128xf32>
    tpu.vector_store %arg10[%c3_227, %c0_228], %415 {strides = array<i32>} : memref<28x128xf32, #tpu.memory_space<vmem>>, vector<3x128xf32>,
    %c15_229 = arith.constant 15 : index
    %c0_230 = arith.constant 0 : index
    %418 = vector.load %arg10[%c15_229, %c0_230] : memref<28x128xf32, #tpu.memory_space<vmem>>, vector<3x128xf32>
    tpu.vector_store %arg10[%c15_229, %c0_230], %416 {strides = array<i32>} : memref<28x128xf32, #tpu.memory_space<vmem>>, vector<3x128xf32>,
    %cst_231 = arith.constant 2.000000e+00 : f32
    %419 = vector.broadcast %cst_231 : f32 to vector<3x128xf32>
    %420 = arith.mulf %419, %415 : vector<3x128xf32>
    %421 = arith.mulf %420, %416 : vector<3x128xf32>
    %cst_232 = arith.constant 2.000000e+00 : f32
    %422 = vector.broadcast %cst_232 : f32 to vector<3x128xf32>
    %423 = arith.mulf %422, %415 : vector<3x128xf32>
    %424 = arith.mulf %423, %415 : vector<3x128xf32>
    %cst_233 = arith.constant 1.000000e+00 : f32
    %425 = vector.broadcast %cst_233 : f32 to vector<3x128xf32>
    %426 = arith.subf %425, %424 : vector<3x128xf32>
    %c6_234 = arith.constant 6 : index
    %c0_235 = arith.constant 0 : index
    %427 = vector.load %arg10[%c6_234, %c0_235] : memref<28x128xf32, #tpu.memory_space<vmem>>, vector<3x128xf32>
    tpu.vector_store %arg10[%c6_234, %c0_235], %421 {strides = array<i32>} : memref<28x128xf32, #tpu.memory_space<vmem>>, vector<3x128xf32>,
    %c18_236 = arith.constant 18 : index
    %c0_237 = arith.constant 0 : index
    %428 = vector.load %arg10[%c18_236, %c0_237] : memref<28x128xf32, #tpu.memory_space<vmem>>, vector<3x128xf32>
    tpu.vector_store %arg10[%c18_236, %c0_237], %426 {strides = array<i32>} : memref<28x128xf32, #tpu.memory_space<vmem>>, vector<3x128xf32>,
    %cst_238 = arith.constant 2.000000e+00 : f32
    %429 = vector.broadcast %cst_238 : f32 to vector<3x128xf32>
    %430 = arith.mulf %429, %421 : vector<3x128xf32>
    %431 = arith.mulf %430, %426 : vector<3x128xf32>
    %cst_239 = arith.constant 2.000000e+00 : f32
    %432 = vector.broadcast %cst_239 : f32 to vector<3x128xf32>
    %433 = arith.mulf %432, %421 : vector<3x128xf32>
    %434 = arith.mulf %433, %421 : vector<3x128xf32>
    %cst_240 = arith.constant 1.000000e+00 : f32
    %435 = vector.broadcast %cst_240 : f32 to vector<3x128xf32>
    %436 = arith.subf %435, %434 : vector<3x128xf32>
    %c9_241 = arith.constant 9 : index
    %c0_242 = arith.constant 0 : index
    %437 = vector.load %arg10[%c9_241, %c0_242] : memref<28x128xf32, #tpu.memory_space<vmem>>, vector<3x128xf32>
    tpu.vector_store %arg10[%c9_241, %c0_242], %431 {strides = array<i32>} : memref<28x128xf32, #tpu.memory_space<vmem>>, vector<3x128xf32>,
    %c21_243 = arith.constant 21 : index
    %c0_244 = arith.constant 0 : index
    %438 = vector.load %arg10[%c21_243, %c0_244] : memref<28x128xf32, #tpu.memory_space<vmem>>, vector<3x128xf32>
    tpu.vector_store %arg10[%c21_243, %c0_244], %436 {strides = array<i32>} : memref<28x128xf32, #tpu.memory_space<vmem>>, vector<3x128xf32>,
    %cst_245 = arith.constant 2.000000e+00 : f32
    %439 = vector.broadcast %cst_245 : f32 to vector<3x128xf32>
    %440 = arith.mulf %439, %431 : vector<3x128xf32>
    %441 = arith.mulf %440, %436 : vector<3x128xf32>
    %cst_246 = arith.constant 2.000000e+00 : f32
    %442 = vector.broadcast %cst_246 : f32 to vector<3x128xf32>
    %443 = arith.mulf %442, %431 : vector<3x128xf32>
    %444 = arith.mulf %443, %431 : vector<3x128xf32>
    %cst_247 = arith.constant 1.000000e+00 : f32
    %445 = vector.broadcast %cst_247 : f32 to vector<3x128xf32>
    %446 = arith.subf %445, %444 : vector<3x128xf32>
    %c12_248 = arith.constant 12 : index
    %c0_249 = arith.constant 0 : index
    %447 = vector.load %arg10[%c12_248, %c0_249] : memref<28x128xf32, #tpu.memory_space<vmem>>, vector<3x128xf32>
    tpu.vector_store %arg10[%c12_248, %c0_249], %441 {strides = array<i32>} : memref<28x128xf32, #tpu.memory_space<vmem>>, vector<3x128xf32>,
    %c24_250 = arith.constant 24 : index
    %c0_251 = arith.constant 0 : index
    %448 = vector.load %arg10[%c24_250, %c0_251] : memref<28x128xf32, #tpu.memory_space<vmem>>, vector<3x128xf32>
    tpu.vector_store %arg10[%c24_250, %c0_251], %446 {strides = array<i32>} : memref<28x128xf32, #tpu.memory_space<vmem>>, vector<3x128xf32>,
    %c0_252 = arith.constant 0 : index
    %c0_253 = arith.constant 0 : index
    %449 = vector.load %arg10[%c0_252, %c0_253] : memref<28x128xf32, #tpu.memory_space<vmem>>, vector<28x128xf32>
    %450 = arith.truncf %449 : vector<28x128xf32> to vector<28x128xbf16>
    %cst_254 = arith.constant dense<0.000000e+00> : vector<32x128xf32>
    %451 = tpu.matmul %2, %450, %cst_254 {dimension_numbers = #tpu.dot_dimension_numbers<[1], [0], [0], [1], [0, 0, 1, 1], [], []>} : vector<32x28xbf16>, vector<28x128xbf16>, vector<32x128xf32> -> vector<32x128xf32>
    %cst_255 = arith.constant 0.000000e+00 : f32
    %452 = vector.broadcast %cst_255 : f32 to vector<32x128xf32>
    %453 = arith.maximumf %451, %452 : vector<32x128xf32>
    %454 = arith.truncf %453 : vector<32x128xf32> to vector<32x128xbf16>
    %cst_256 = arith.constant dense<0.000000e+00> : vector<32x128xf32>
    %455 = tpu.matmul %3, %454, %cst_256 {dimension_numbers = #tpu.dot_dimension_numbers<[1], [0], [0], [1], [0, 0, 1, 1], [], []>} : vector<32x32xbf16>, vector<32x128xbf16>, vector<32x128xf32> -> vector<32x128xf32>
    %456 = arith.addf %455, %7 : vector<32x128xf32>
    %cst_257 = arith.constant 0.000000e+00 : f32
    %457 = vector.broadcast %cst_257 : f32 to vector<32x128xf32>
    %458 = arith.maximumf %456, %457 : vector<32x128xf32>
    %459 = arith.truncf %458 : vector<32x128xf32> to vector<32x128xbf16>
    %cst_258 = arith.constant dense<0.000000e+00> : vector<4x128xf32>
    %460 = tpu.matmul %4, %459, %cst_258 {dimension_numbers = #tpu.dot_dimension_numbers<[1], [0], [0], [1], [0, 0, 1, 1], [], []>} : vector<4x32xbf16>, vector<32x128xbf16>, vector<4x128xf32> -> vector<4x128xf32>
    %461 = arith.addf %460, %10 : vector<4x128xf32>
    %462 = vector.extract_strided_slice %461 {offsets = [3, 0], sizes = [1, 128], strides = [1, 1]} : vector<4x128xf32> to vector<1x128xf32>
    %cst_259 = arith.constant 0.000000e+00 : f32
    %463 = vector.broadcast %cst_259 : f32 to vector<1x128xf32>
    %464 = arith.maximumf %462, %463 : vector<1x128xf32>
    %cst_260 = arith.constant 0.000000e+00 : f32
    %465 = vector.broadcast %cst_260 : f32 to vector<1x128xf32>
    %466 = arith.subf %465, %464 : vector<1x128xf32>
    %cst_261 = arith.constant 0.699999988 : f32
    %467 = vector.broadcast %cst_261 : f32 to vector<1x128xf32>
    %468 = arith.mulf %466, %467 : vector<1x128xf32>
    %469 = math.exp %468 : vector<1x128xf32>
    %cst_262 = arith.constant 1.000000e+00 : f32
    %470 = vector.broadcast %cst_262 : f32 to vector<1x128xf32>
    %471 = arith.subf %470, %469 : vector<1x128xf32>
    %472 = arith.mulf %410, %471 : vector<1x128xf32>
    %473 = vector.extract_strided_slice %461 {offsets = [0, 0], sizes = [3, 128], strides = [1, 1]} : vector<4x128xf32> to vector<3x128xf32>
    %474 = arith.negf %473 : vector<3x128xf32>
    %475 = math.exp %474 : vector<3x128xf32>
    %cst_263 = arith.constant 1.000000e+00 : f32
    %476 = vector.broadcast %cst_263 : f32 to vector<3x128xf32>
    %477 = arith.addf %476, %475 : vector<3x128xf32>
    %478 = arith.divf %476, %477 : vector<3x128xf32>
    %479 = vector.broadcast %472 : vector<1x128xf32> to vector<3x128xf32>
    %480 = arith.mulf %479, %478 : vector<3x128xf32>
    %481 = arith.addf %402, %480 : vector<3x128xf32>
    %cst_264 = arith.constant 3.600000e+00 : f32
    %482 = vector.broadcast %cst_264 : f32 to vector<1x128xf32>
    %483 = arith.mulf %472, %482 : vector<1x128xf32>
    %484 = arith.addf %405, %483 : vector<1x128xf32>
    %cst_265 = arith.constant 1.000000e+00 : f32
    %485 = vector.broadcast %cst_265 : f32 to vector<1x128xf32>
    %486 = arith.subf %485, %471 : vector<1x128xf32>
    %cst_266 = arith.constant 1.000000e-10 : f32
    %487 = vector.broadcast %cst_266 : f32 to vector<1x128xf32>
    %488 = arith.addf %486, %487 : vector<1x128xf32>
    %489 = arith.mulf %410, %488 : vector<1x128xf32>
    %cst_267 = arith.constant 4.300000e+00 : f32
    %490 = vector.broadcast %cst_267 : f32 to vector<3x128xf32>
    %491 = arith.mulf %1, %490 : vector<3x128xf32>
    %492 = arith.addf %0, %491 : vector<3x128xf32>
    %c0_268 = arith.constant 0 : index
    %c0_269 = arith.constant 0 : index
    %493 = vector.load %arg10[%c0_268, %c0_269] : memref<28x128xf32, #tpu.memory_space<vmem>>, vector<3x128xf32>
    tpu.vector_store %arg10[%c0_268, %c0_269], %492 {strides = array<i32>} : memref<28x128xf32, #tpu.memory_space<vmem>>, vector<3x128xf32>,
    %494 = math.sin %492 : vector<3x128xf32>
    %495 = math.cos %492 : vector<3x128xf32>
    %c3_270 = arith.constant 3 : index
    %c0_271 = arith.constant 0 : index
    %496 = vector.load %arg10[%c3_270, %c0_271] : memref<28x128xf32, #tpu.memory_space<vmem>>, vector<3x128xf32>
    tpu.vector_store %arg10[%c3_270, %c0_271], %494 {strides = array<i32>} : memref<28x128xf32, #tpu.memory_space<vmem>>, vector<3x128xf32>,
    %c15_272 = arith.constant 15 : index
    %c0_273 = arith.constant 0 : index
    %497 = vector.load %arg10[%c15_272, %c0_273] : memref<28x128xf32, #tpu.memory_space<vmem>>, vector<3x128xf32>
    tpu.vector_store %arg10[%c15_272, %c0_273], %495 {strides = array<i32>} : memref<28x128xf32, #tpu.memory_space<vmem>>, vector<3x128xf32>,
    %cst_274 = arith.constant 2.000000e+00 : f32
    %498 = vector.broadcast %cst_274 : f32 to vector<3x128xf32>
    %499 = arith.mulf %498, %494 : vector<3x128xf32>
    %500 = arith.mulf %499, %495 : vector<3x128xf32>
    %cst_275 = arith.constant 2.000000e+00 : f32
    %501 = vector.broadcast %cst_275 : f32 to vector<3x128xf32>
    %502 = arith.mulf %501, %494 : vector<3x128xf32>
    %503 = arith.mulf %502, %494 : vector<3x128xf32>
    %cst_276 = arith.constant 1.000000e+00 : f32
    %504 = vector.broadcast %cst_276 : f32 to vector<3x128xf32>
    %505 = arith.subf %504, %503 : vector<3x128xf32>
    %c6_277 = arith.constant 6 : index
    %c0_278 = arith.constant 0 : index
    %506 = vector.load %arg10[%c6_277, %c0_278] : memref<28x128xf32, #tpu.memory_space<vmem>>, vector<3x128xf32>
    tpu.vector_store %arg10[%c6_277, %c0_278], %500 {strides = array<i32>} : memref<28x128xf32, #tpu.memory_space<vmem>>, vector<3x128xf32>,
    %c18_279 = arith.constant 18 : index
    %c0_280 = arith.constant 0 : index
    %507 = vector.load %arg10[%c18_279, %c0_280] : memref<28x128xf32, #tpu.memory_space<vmem>>, vector<3x128xf32>
    tpu.vector_store %arg10[%c18_279, %c0_280], %505 {strides = array<i32>} : memref<28x128xf32, #tpu.memory_space<vmem>>, vector<3x128xf32>,
    %cst_281 = arith.constant 2.000000e+00 : f32
    %508 = vector.broadcast %cst_281 : f32 to vector<3x128xf32>
    %509 = arith.mulf %508, %500 : vector<3x128xf32>
    %510 = arith.mulf %509, %505 : vector<3x128xf32>
    %cst_282 = arith.constant 2.000000e+00 : f32
    %511 = vector.broadcast %cst_282 : f32 to vector<3x128xf32>
    %512 = arith.mulf %511, %500 : vector<3x128xf32>
    %513 = arith.mulf %512, %500 : vector<3x128xf32>
    %cst_283 = arith.constant 1.000000e+00 : f32
    %514 = vector.broadcast %cst_283 : f32 to vector<3x128xf32>
    %515 = arith.subf %514, %513 : vector<3x128xf32>
    %c9_284 = arith.constant 9 : index
    %c0_285 = arith.constant 0 : index
    %516 = vector.load %arg10[%c9_284, %c0_285] : memref<28x128xf32, #tpu.memory_space<vmem>>, vector<3x128xf32>
    tpu.vector_store %arg10[%c9_284, %c0_285], %510 {strides = array<i32>} : memref<28x128xf32, #tpu.memory_space<vmem>>, vector<3x128xf32>,
    %c21_286 = arith.constant 21 : index
    %c0_287 = arith.constant 0 : index
    %517 = vector.load %arg10[%c21_286, %c0_287] : memref<28x128xf32, #tpu.memory_space<vmem>>, vector<3x128xf32>
    tpu.vector_store %arg10[%c21_286, %c0_287], %515 {strides = array<i32>} : memref<28x128xf32, #tpu.memory_space<vmem>>, vector<3x128xf32>,
    %cst_288 = arith.constant 2.000000e+00 : f32
    %518 = vector.broadcast %cst_288 : f32 to vector<3x128xf32>
    %519 = arith.mulf %518, %510 : vector<3x128xf32>
    %520 = arith.mulf %519, %515 : vector<3x128xf32>
    %cst_289 = arith.constant 2.000000e+00 : f32
    %521 = vector.broadcast %cst_289 : f32 to vector<3x128xf32>
    %522 = arith.mulf %521, %510 : vector<3x128xf32>
    %523 = arith.mulf %522, %510 : vector<3x128xf32>
    %cst_290 = arith.constant 1.000000e+00 : f32
    %524 = vector.broadcast %cst_290 : f32 to vector<3x128xf32>
    %525 = arith.subf %524, %523 : vector<3x128xf32>
    %c12_291 = arith.constant 12 : index
    %c0_292 = arith.constant 0 : index
    %526 = vector.load %arg10[%c12_291, %c0_292] : memref<28x128xf32, #tpu.memory_space<vmem>>, vector<3x128xf32>
    tpu.vector_store %arg10[%c12_291, %c0_292], %520 {strides = array<i32>} : memref<28x128xf32, #tpu.memory_space<vmem>>, vector<3x128xf32>,
    %c24_293 = arith.constant 24 : index
    %c0_294 = arith.constant 0 : index
    %527 = vector.load %arg10[%c24_293, %c0_294] : memref<28x128xf32, #tpu.memory_space<vmem>>, vector<3x128xf32>
    tpu.vector_store %arg10[%c24_293, %c0_294], %525 {strides = array<i32>} : memref<28x128xf32, #tpu.memory_space<vmem>>, vector<3x128xf32>,
    %c0_295 = arith.constant 0 : index
    %c0_296 = arith.constant 0 : index
    %528 = vector.load %arg10[%c0_295, %c0_296] : memref<28x128xf32, #tpu.memory_space<vmem>>, vector<28x128xf32>
    %529 = arith.truncf %528 : vector<28x128xf32> to vector<28x128xbf16>
    %cst_297 = arith.constant dense<0.000000e+00> : vector<32x128xf32>
    %530 = tpu.matmul %2, %529, %cst_297 {dimension_numbers = #tpu.dot_dimension_numbers<[1], [0], [0], [1], [0, 0, 1, 1], [], []>} : vector<32x28xbf16>, vector<28x128xbf16>, vector<32x128xf32> -> vector<32x128xf32>
    %cst_298 = arith.constant 0.000000e+00 : f32
    %531 = vector.broadcast %cst_298 : f32 to vector<32x128xf32>
    %532 = arith.maximumf %530, %531 : vector<32x128xf32>
    %533 = arith.truncf %532 : vector<32x128xf32> to vector<32x128xbf16>
    %cst_299 = arith.constant dense<0.000000e+00> : vector<32x128xf32>
    %534 = tpu.matmul %3, %533, %cst_299 {dimension_numbers = #tpu.dot_dimension_numbers<[1], [0], [0], [1], [0, 0, 1, 1], [], []>} : vector<32x32xbf16>, vector<32x128xbf16>, vector<32x128xf32> -> vector<32x128xf32>
    %535 = arith.addf %534, %7 : vector<32x128xf32>
    %cst_300 = arith.constant 0.000000e+00 : f32
    %536 = vector.broadcast %cst_300 : f32 to vector<32x128xf32>
    %537 = arith.maximumf %535, %536 : vector<32x128xf32>
    %538 = arith.truncf %537 : vector<32x128xf32> to vector<32x128xbf16>
    %cst_301 = arith.constant dense<0.000000e+00> : vector<4x128xf32>
    %539 = tpu.matmul %4, %538, %cst_301 {dimension_numbers = #tpu.dot_dimension_numbers<[1], [0], [0], [1], [0, 0, 1, 1], [], []>} : vector<4x32xbf16>, vector<32x128xbf16>, vector<4x128xf32> -> vector<4x128xf32>
    %540 = arith.addf %539, %10 : vector<4x128xf32>
    %541 = vector.extract_strided_slice %540 {offsets = [3, 0], sizes = [1, 128], strides = [1, 1]} : vector<4x128xf32> to vector<1x128xf32>
    %cst_302 = arith.constant 0.000000e+00 : f32
    %542 = vector.broadcast %cst_302 : f32 to vector<1x128xf32>
    %543 = arith.maximumf %541, %542 : vector<1x128xf32>
    %cst_303 = arith.constant 0.000000e+00 : f32
    %544 = vector.broadcast %cst_303 : f32 to vector<1x128xf32>
    %545 = arith.subf %544, %543 : vector<1x128xf32>
    %cst_304 = arith.constant 0.699999988 : f32
    %546 = vector.broadcast %cst_304 : f32 to vector<1x128xf32>
    %547 = arith.mulf %545, %546 : vector<1x128xf32>
    %548 = math.exp %547 : vector<1x128xf32>
    %cst_305 = arith.constant 1.000000e+00 : f32
    %549 = vector.broadcast %cst_305 : f32 to vector<1x128xf32>
    %550 = arith.subf %549, %548 : vector<1x128xf32>
    %551 = arith.mulf %489, %550 : vector<1x128xf32>
    %552 = vector.extract_strided_slice %540 {offsets = [0, 0], sizes = [3, 128], strides = [1, 1]} : vector<4x128xf32> to vector<3x128xf32>
    %553 = arith.negf %552 : vector<3x128xf32>
    %554 = math.exp %553 : vector<3x128xf32>
    %cst_306 = arith.constant 1.000000e+00 : f32
    %555 = vector.broadcast %cst_306 : f32 to vector<3x128xf32>
    %556 = arith.addf %555, %554 : vector<3x128xf32>
    %557 = arith.divf %555, %556 : vector<3x128xf32>
    %558 = vector.broadcast %551 : vector<1x128xf32> to vector<3x128xf32>
    %559 = arith.mulf %558, %557 : vector<3x128xf32>
    %560 = arith.addf %481, %559 : vector<3x128xf32>
    %cst_307 = arith.constant 4.300000e+00 : f32
    %561 = vector.broadcast %cst_307 : f32 to vector<1x128xf32>
    %562 = arith.mulf %551, %561 : vector<1x128xf32>
    %563 = arith.addf %484, %562 : vector<1x128xf32>
    %cst_308 = arith.constant 1.000000e+00 : f32
    %564 = vector.broadcast %cst_308 : f32 to vector<1x128xf32>
    %565 = arith.subf %564, %550 : vector<1x128xf32>
    %cst_309 = arith.constant 1.000000e-10 : f32
    %566 = vector.broadcast %cst_309 : f32 to vector<1x128xf32>
    %567 = arith.addf %565, %566 : vector<1x128xf32>
    %568 = arith.mulf %489, %567 : vector<1x128xf32>
    %cst_310 = arith.constant 5.000000e+00 : f32
    %569 = vector.broadcast %cst_310 : f32 to vector<3x128xf32>
    %570 = arith.mulf %1, %569 : vector<3x128xf32>
    %571 = arith.addf %0, %570 : vector<3x128xf32>
    %c0_311 = arith.constant 0 : index
    %c0_312 = arith.constant 0 : index
    %572 = vector.load %arg10[%c0_311, %c0_312] : memref<28x128xf32, #tpu.memory_space<vmem>>, vector<3x128xf32>
    tpu.vector_store %arg10[%c0_311, %c0_312], %571 {strides = array<i32>} : memref<28x128xf32, #tpu.memory_space<vmem>>, vector<3x128xf32>,
    %573 = math.sin %571 : vector<3x128xf32>
    %574 = math.cos %571 : vector<3x128xf32>
    %c3_313 = arith.constant 3 : index
    %c0_314 = arith.constant 0 : index
    %575 = vector.load %arg10[%c3_313, %c0_314] : memref<28x128xf32, #tpu.memory_space<vmem>>, vector<3x128xf32>
    tpu.vector_store %arg10[%c3_313, %c0_314], %573 {strides = array<i32>} : memref<28x128xf32, #tpu.memory_space<vmem>>, vector<3x128xf32>,
    %c15_315 = arith.constant 15 : index
    %c0_316 = arith.constant 0 : index
    %576 = vector.load %arg10[%c15_315, %c0_316] : memref<28x128xf32, #tpu.memory_space<vmem>>, vector<3x128xf32>
    tpu.vector_store %arg10[%c15_315, %c0_316], %574 {strides = array<i32>} : memref<28x128xf32, #tpu.memory_space<vmem>>, vector<3x128xf32>,
    %cst_317 = arith.constant 2.000000e+00 : f32
    %577 = vector.broadcast %cst_317 : f32 to vector<3x128xf32>
    %578 = arith.mulf %577, %573 : vector<3x128xf32>
    %579 = arith.mulf %578, %574 : vector<3x128xf32>
    %cst_318 = arith.constant 2.000000e+00 : f32
    %580 = vector.broadcast %cst_318 : f32 to vector<3x128xf32>
    %581 = arith.mulf %580, %573 : vector<3x128xf32>
    %582 = arith.mulf %581, %573 : vector<3x128xf32>
    %cst_319 = arith.constant 1.000000e+00 : f32
    %583 = vector.broadcast %cst_319 : f32 to vector<3x128xf32>
    %584 = arith.subf %583, %582 : vector<3x128xf32>
    %c6_320 = arith.constant 6 : index
    %c0_321 = arith.constant 0 : index
    %585 = vector.load %arg10[%c6_320, %c0_321] : memref<28x128xf32, #tpu.memory_space<vmem>>, vector<3x128xf32>
    tpu.vector_store %arg10[%c6_320, %c0_321], %579 {strides = array<i32>} : memref<28x128xf32, #tpu.memory_space<vmem>>, vector<3x128xf32>,
    %c18_322 = arith.constant 18 : index
    %c0_323 = arith.constant 0 : index
    %586 = vector.load %arg10[%c18_322, %c0_323] : memref<28x128xf32, #tpu.memory_space<vmem>>, vector<3x128xf32>
    tpu.vector_store %arg10[%c18_322, %c0_323], %584 {strides = array<i32>} : memref<28x128xf32, #tpu.memory_space<vmem>>, vector<3x128xf32>,
    %cst_324 = arith.constant 2.000000e+00 : f32
    %587 = vector.broadcast %cst_324 : f32 to vector<3x128xf32>
    %588 = arith.mulf %587, %579 : vector<3x128xf32>
    %589 = arith.mulf %588, %584 : vector<3x128xf32>
    %cst_325 = arith.constant 2.000000e+00 : f32
    %590 = vector.broadcast %cst_325 : f32 to vector<3x128xf32>
    %591 = arith.mulf %590, %579 : vector<3x128xf32>
    %592 = arith.mulf %591, %579 : vector<3x128xf32>
    %cst_326 = arith.constant 1.000000e+00 : f32
    %593 = vector.broadcast %cst_326 : f32 to vector<3x128xf32>
    %594 = arith.subf %593, %592 : vector<3x128xf32>
    %c9_327 = arith.constant 9 : index
    %c0_328 = arith.constant 0 : index
    %595 = vector.load %arg10[%c9_327, %c0_328] : memref<28x128xf32, #tpu.memory_space<vmem>>, vector<3x128xf32>
    tpu.vector_store %arg10[%c9_327, %c0_328], %589 {strides = array<i32>} : memref<28x128xf32, #tpu.memory_space<vmem>>, vector<3x128xf32>,
    %c21_329 = arith.constant 21 : index
    %c0_330 = arith.constant 0 : index
    %596 = vector.load %arg10[%c21_329, %c0_330] : memref<28x128xf32, #tpu.memory_space<vmem>>, vector<3x128xf32>
    tpu.vector_store %arg10[%c21_329, %c0_330], %594 {strides = array<i32>} : memref<28x128xf32, #tpu.memory_space<vmem>>, vector<3x128xf32>,
    %cst_331 = arith.constant 2.000000e+00 : f32
    %597 = vector.broadcast %cst_331 : f32 to vector<3x128xf32>
    %598 = arith.mulf %597, %589 : vector<3x128xf32>
    %599 = arith.mulf %598, %594 : vector<3x128xf32>
    %cst_332 = arith.constant 2.000000e+00 : f32
    %600 = vector.broadcast %cst_332 : f32 to vector<3x128xf32>
    %601 = arith.mulf %600, %589 : vector<3x128xf32>
    %602 = arith.mulf %601, %589 : vector<3x128xf32>
    %cst_333 = arith.constant 1.000000e+00 : f32
    %603 = vector.broadcast %cst_333 : f32 to vector<3x128xf32>
    %604 = arith.subf %603, %602 : vector<3x128xf32>
    %c12_334 = arith.constant 12 : index
    %c0_335 = arith.constant 0 : index
    %605 = vector.load %arg10[%c12_334, %c0_335] : memref<28x128xf32, #tpu.memory_space<vmem>>, vector<3x128xf32>
    tpu.vector_store %arg10[%c12_334, %c0_335], %599 {strides = array<i32>} : memref<28x128xf32, #tpu.memory_space<vmem>>, vector<3x128xf32>,
    %c24_336 = arith.constant 24 : index
    %c0_337 = arith.constant 0 : index
    %606 = vector.load %arg10[%c24_336, %c0_337] : memref<28x128xf32, #tpu.memory_space<vmem>>, vector<3x128xf32>
    tpu.vector_store %arg10[%c24_336, %c0_337], %604 {strides = array<i32>} : memref<28x128xf32, #tpu.memory_space<vmem>>, vector<3x128xf32>,
    %c0_338 = arith.constant 0 : index
    %c0_339 = arith.constant 0 : index
    %607 = vector.load %arg10[%c0_338, %c0_339] : memref<28x128xf32, #tpu.memory_space<vmem>>, vector<28x128xf32>
    %608 = arith.truncf %607 : vector<28x128xf32> to vector<28x128xbf16>
    %cst_340 = arith.constant dense<0.000000e+00> : vector<32x128xf32>
    %609 = tpu.matmul %2, %608, %cst_340 {dimension_numbers = #tpu.dot_dimension_numbers<[1], [0], [0], [1], [0, 0, 1, 1], [], []>} : vector<32x28xbf16>, vector<28x128xbf16>, vector<32x128xf32> -> vector<32x128xf32>
    %cst_341 = arith.constant 0.000000e+00 : f32
    %610 = vector.broadcast %cst_341 : f32 to vector<32x128xf32>
    %611 = arith.maximumf %609, %610 : vector<32x128xf32>
    %612 = arith.truncf %611 : vector<32x128xf32> to vector<32x128xbf16>
    %cst_342 = arith.constant dense<0.000000e+00> : vector<32x128xf32>
    %613 = tpu.matmul %3, %612, %cst_342 {dimension_numbers = #tpu.dot_dimension_numbers<[1], [0], [0], [1], [0, 0, 1, 1], [], []>} : vector<32x32xbf16>, vector<32x128xbf16>, vector<32x128xf32> -> vector<32x128xf32>
    %614 = arith.addf %613, %7 : vector<32x128xf32>
    %cst_343 = arith.constant 0.000000e+00 : f32
    %615 = vector.broadcast %cst_343 : f32 to vector<32x128xf32>
    %616 = arith.maximumf %614, %615 : vector<32x128xf32>
    %617 = arith.truncf %616 : vector<32x128xf32> to vector<32x128xbf16>
    %cst_344 = arith.constant dense<0.000000e+00> : vector<4x128xf32>
    %618 = tpu.matmul %4, %617, %cst_344 {dimension_numbers = #tpu.dot_dimension_numbers<[1], [0], [0], [1], [0, 0, 1, 1], [], []>} : vector<4x32xbf16>, vector<32x128xbf16>, vector<4x128xf32> -> vector<4x128xf32>
    %619 = arith.addf %618, %10 : vector<4x128xf32>
    %620 = vector.extract_strided_slice %619 {offsets = [3, 0], sizes = [1, 128], strides = [1, 1]} : vector<4x128xf32> to vector<1x128xf32>
    %cst_345 = arith.constant 0.000000e+00 : f32
    %621 = vector.broadcast %cst_345 : f32 to vector<1x128xf32>
    %622 = arith.maximumf %620, %621 : vector<1x128xf32>
    %cst_346 = arith.constant 0.000000e+00 : f32
    %623 = vector.broadcast %cst_346 : f32 to vector<1x128xf32>
    %624 = arith.subf %623, %622 : vector<1x128xf32>
    %cst_347 = arith.constant 1.000000e+10 : f32
    %625 = vector.broadcast %cst_347 : f32 to vector<1x128xf32>
    %626 = arith.mulf %624, %625 : vector<1x128xf32>
    %627 = math.exp %626 : vector<1x128xf32>
    %cst_348 = arith.constant 1.000000e+00 : f32
    %628 = vector.broadcast %cst_348 : f32 to vector<1x128xf32>
    %629 = arith.subf %628, %627 : vector<1x128xf32>
    %630 = arith.mulf %568, %629 : vector<1x128xf32>
    %631 = vector.extract_strided_slice %619 {offsets = [0, 0], sizes = [3, 128], strides = [1, 1]} : vector<4x128xf32> to vector<3x128xf32>
    %632 = arith.negf %631 : vector<3x128xf32>
    %633 = math.exp %632 : vector<3x128xf32>
    %cst_349 = arith.constant 1.000000e+00 : f32
    %634 = vector.broadcast %cst_349 : f32 to vector<3x128xf32>
    %635 = arith.addf %634, %633 : vector<3x128xf32>
    %636 = arith.divf %634, %635 : vector<3x128xf32>
    %637 = vector.broadcast %630 : vector<1x128xf32> to vector<3x128xf32>
    %638 = arith.mulf %637, %636 : vector<3x128xf32>
    %639 = arith.addf %560, %638 : vector<3x128xf32>
    %cst_350 = arith.constant 5.000000e+00 : f32
    %640 = vector.broadcast %cst_350 : f32 to vector<1x128xf32>
    %641 = arith.mulf %630, %640 : vector<1x128xf32>
    %642 = arith.addf %563, %641 : vector<1x128xf32>
    %c0_351 = arith.constant 0 : index
    %c0_352 = arith.constant 0 : index
    %643 = vector.load %arg8[%c0_351, %c0_352] : memref<3x128xf32, #tpu.memory_space<vmem>>, vector<3x128xf32>
    tpu.vector_store %arg8[%c0_351, %c0_352], %639 {strides = array<i32>} : memref<3x128xf32, #tpu.memory_space<vmem>>, vector<3x128xf32>,
    %c0_353 = arith.constant 0 : index
    %c0_354 = arith.constant 0 : index
    %644 = vector.load %arg9[%c0_353, %c0_354] : memref<1x128xf32, #tpu.memory_space<vmem>>, vector<1x128xf32>
    tpu.vector_store %arg9[%c0_353, %c0_354], %642 {strides = array<i32>} : memref<1x128xf32, #tpu.memory_space<vmem>>, vector<1x128xf32>,
    return
  }
  func.func @transform_0(%arg0: i32) -> (i32, i32) {
    %c0_i32 = arith.constant 0 : i32
    %c0_i32_0 = arith.constant 0 : i32
    return %c0_i32, %arg0 : i32, i32
  }
  func.func @transform_1(%arg0: i32) -> (i32, i32) {
    %c0_i32 = arith.constant 0 : i32
    %c0_i32_0 = arith.constant 0 : i32
    return %c0_i32, %arg0 : i32, i32
  }
  func.func @transform_2(%arg0: i32) -> (i32, i32) {
    %c0_i32 = arith.constant 0 : i32
    %c0_i32_0 = arith.constant 0 : i32
    %c0_i32_1 = arith.constant 0 : i32
    return %c0_i32, %c0_i32_0 : i32, i32
  }
  func.func @transform_3(%arg0: i32) -> (i32, i32) {
    %c0_i32 = arith.constant 0 : i32
    %c0_i32_0 = arith.constant 0 : i32
    %c0_i32_1 = arith.constant 0 : i32
    return %c0_i32, %c0_i32_0 : i32, i32
  }
  func.func @transform_4(%arg0: i32) -> (i32, i32) {
    %c0_i32 = arith.constant 0 : i32
    %c0_i32_0 = arith.constant 0 : i32
    %c0_i32_1 = arith.constant 0 : i32
    return %c0_i32, %c0_i32_0 : i32, i32
  }
  func.func @transform_5(%arg0: i32) -> (i32, i32) {
    %c0_i32 = arith.constant 0 : i32
    %c0_i32_0 = arith.constant 0 : i32
    %c0_i32_1 = arith.constant 0 : i32
    return %c0_i32, %c0_i32_0 : i32, i32
  }
  func.func @transform_6(%arg0: i32) -> (i32, i32) {
    %c0_i32 = arith.constant 0 : i32
    %c0_i32_0 = arith.constant 0 : i32
    %c0_i32_1 = arith.constant 0 : i32
    return %c0_i32, %c0_i32_0 : i32, i32
  }
  func.func @transform_7(%arg0: i32) -> (i32, i32) {
    %c0_i32 = arith.constant 0 : i32
    %c0_i32_0 = arith.constant 0 : i32
    return %c0_i32, %arg0 : i32, i32
  }
  func.func @transform_8(%arg0: i32) -> (i32, i32) {
    %c0_i32 = arith.constant 0 : i32
    %c0_i32_0 = arith.constant 0 : i32
    return %c0_i32, %arg0 : i32, i32
  }
}

</mosaic_0001>

<bundles_post_ra>
// kernel: tpu_custom_call.1
= control target key start
LH: loop header
LB: loop body
LE: loop exit
PB: predicated region body
PF: predicated region fallthrough
CT: control target
= control target key end

     0   :  { %s5534_s0 = inlined_call_operand.hbm [shape: f32[3,256], index: 0, kind: input, shape index: {}]   ;;  %s5535_s1 = inlined_call_operand.vmem [shape: f32[3,256], index: 1, kind: input, shape index: {}]   ;;  %s5536_s2 = inlined_call_operand.vmem [shape: bf16[32,28], index: 2, kind: input, shape index: {}]   ;;  %s5537_s3 = inlined_call_operand.vmem [shape: bf16[32,32], index: 3, kind: input, shape index: {}]   ;;  %s5538_s4 = inlined_call_operand.vmem [shape: f32[32,1], index: 4, kind: input, shape index: {}]   ;;  %s5539_s5 = inlined_call_operand.vmem [shape: bf16[4,32], index: 5, kind: input, shape index: {}]   ;;  %s5540_s6 = inlined_call_operand.vmem [shape: f32[4,1], index: 6, kind: input, shape index: {}]   ;;  %s5541_s7 = inlined_call_operand.hbm [shape: f32[3,256], index: 7, kind: output, shape index: {0}]   ;;  %s5542_s8 = inlined_call_operand.hbm [shape: f32[1,256], index: 8, kind: output, shape index: {1}]  }
   0x1   :  { %5544 = sst [smem:[#allocation12_spill]] %s5534_s0 }
   0x2   :  { %14 = vsyncpa [#allocation4], 0 }
   0x3   :  { %16 = vsyncpa [#allocation4 + $0x1], 0 }
   0x4   :  { %17 = vsyncpa [#allocation5], 0 }
   0x5   :  { %19 = vsyncpa [#allocation5 + $0x1], 0 }
   0x6   :  { %20 = vsyncpa [#allocation8], 0 }
   0x7   :  { %22 = vsyncpa [#allocation8 + $0x1], 0  ;;  %s4669_s27 = smov 0   ;;  %s4671_s28 = smov 0  }
   0x8   :  { %s4673_s29 = smov 0   ;;  %s4675_s30 = smov 0  }
   0x9 LB: > { %s4690_s9 = sadd.s32 4294967295, %s4609_s30   ;;  %s3871_s10 = sadd.s32 4294967294, %s4609_s30   ;;  %s4609_s30 = sphi %s4675_s30, %s5559_s30   ;;  %s4605_s29 = sphi %s4673_s29, %s5558_s29   ;;  %s4601_s28 = sphi %s4671_s28, %s5557_s28   ;;  %s4597_s27 = sphi %s4669_s27, %s5556_s27  }
   0xa   : > { %s4694_s11 = sadd.s32 1, %s4609_s30   ;;  %s35_s12 = sadd.s32 1, %s4605_s29 }
   0xb   : > { %s32_s13 = ssub.s32 %s4609_s30, %s4694_s11  ;;  %p42_p0 = scmp.ne.s32.totalorder %s4605_s29, %s4601_s28 }
   0xc   : > { %p33_p1 = scmp.eq.s32.totalorder %s32_s13, 0  ;;  %p43_p2 = scmp.eq.s32.totalorder %s4609_s30, 0 }
   0xd   : > { %p48_p3 = scmp.ne.s32.totalorder %s4601_s28, %s4597_s27  ;;  %p49_p4 = scmp.eq.s32.totalorder %s4690_s9, 0 }
   0xe   : > { %s4706_s14 = scalar_select %p33_p1, %s4605_s29, %s35_s12  }
   0xf   : > { %p4708_p5 = por %p43_p2, %p42_p0  ;;  %p4712_p6 = por %p49_p4, %p48_p3 }
  0x10   : > { %p203_p7 = scmp.eq.s32.totalorder %s4690_s9, 1  ;;  %p209_p8 = scmp.eq.s32.totalorder %s3871_s10, 1 }
  0x11   : > { %p4338_p10 = scmp.lt.s32.totalorder %s4609_s30, 2  ;;  %s270_s19 = sand.u32 1, %s4605_s29  }
  0x12   : > { %p4719_p11 = por %p203_p7, %p42_p0  ;;  %p4723_p12 = por %p209_p8, %p48_p3 }
  0x13   : > { %s3875_s20 = sshll.u32 %s4609_s30, 6  ;;  %s3874_s21 = sshll.u32 %s270_s19, 2 }
  0x14   : > { %s5547_s17 = scalar_select %p4719_p11, 1, 0 }
  0x15   : > { %s5548_s18 = scalar_select %p4723_p12, 1, 0 }
  0x16   : > { %s5549_s0 = sld [smem:[#allocation12_spill]]  ;;  %s274_s25 = scalar_lea.vmem [#allocation3], %s3874_s21 }
  0x17   : > { %s281_s26 = sshll.u32 %s274_s25, 4  ;;  %p4736_p13 = pnand %p4338_p10, %p4708_p5  ;;  %s4740_s26 = int_to_ptr.vmem [resolvable:$true] %s281_s26 }
  0x18   : > { %s271_s12 = scalar_lea.sflag [#allocation4], %s270_s19 }
  0x19   : > { %p4483_p3 = pneg %p4736_p13 }
  0x1c   : > { %s4732_s24 = scalar_lea.hbm %s5549_s0, %s3875_s20  ;;  %s4486_s21 = scalar_lea.hbm %s5549_s0, 128 }
  0x1d   : > { %s4481_s13 = scalar_lea.hbm %s4732_s24, 64  ;;  %p4487_p5 = scmp.lt.u32.totalorder %s4732_s24, %s5549_s0 }
  0x1e   : > { %p4482_p2 = scmp.ne.s32.totalorder %s4732_s24, %s4481_s13  ;;  %p4488_p8 = scmp.lt.u32.totalorder %s4486_s21, %s4481_s13 }
  0x1f   : > { %p4490_p9 = scmp.lt.u32.totalorder %s4481_s13, %s4732_s24 }
  0x20   : > { %p4484_p4 = pnand %p4483_p3, %p4482_p2  ;;  %p4489_p10 = por %p4488_p8, %p4487_p5 }
  0x22   : > { %p4485_p7 = pneg %p4484_p4  ;;  %p4491_p0 = por %p4490_p9, %p4489_p10 }
  0x24   : > { %p4492_p1 = pnand %p4491_p0, %p4485_p7 }
  0x26   : > { %4495 = shalt.err (!%p4492_p1)
}
  0x27   : > { %s4496_s19 = scalar_lea.vmem %s4740_s26, 64  ;;  %s4611_s25 = smov [#allocation3]  }
  0x28   : > { %p4497_p2 = scmp.ne.s32.totalorder %s4740_s26, %s4496_s19  ;;  %s4501_s15 = sshll.u32 %s4611_s25, 4  ;;  %s4502_s15 = int_to_ptr.vmem [resolvable:$false] %s4501_s15 }
  0x29   : > { %s4503_s20 = scalar_lea.vmem %s4502_s15, 128  ;;  %p4504_p11 = scmp.lt.s32.totalorder %s4740_s26, %s4502_s15 }
  0x2a   : > { %p4499_p4 = pnand %p4497_p2, %p4483_p3  ;;  %p4505_p5 = scmp.lt.s32.totalorder %s4503_s20, %s4496_s19 }
  0x2c   : > { %p4500_p12 = pneg %p4499_p4  ;;  %p4506_p8 = por %p4505_p5, %p4504_p11 }
  0x2e   : > { %p4507_p9 = pnand %p4506_p8, %p4500_p12 }
  0x30   : > { %4510 = shalt.err (!%p4507_p9)
}
  0x31   : > { %4330 = dma.hbm_to_vmem [thread:$0]  (!%p4736_p13), %s4732_s24, 64, %s4740_s26, %s271_s12  }
  0x32   : > { %p5551_p0 = scmp.lt.s32.totalorder %s4609_s30, 3  ;;  %p5552_p1 = scmp.ge.s32.totalorder %s4609_s30, 1 }
  0x34   : > { %p294_p3 = pnand %p5552_p1, %p5551_p0 }
  0x35   : > { %s4774_s13 = sand.u32 (!%p294_p3), 1, %s4601_s28  }
  0x36   : > { %297 = sbr.rel (%p294_p3) target bundleno = 2569 (0xa09), region = 48  ;;  %s3877_s21 = sshll.u32 (!%p294_p3), %s4774_s13, 2 }
  0x37   : > { %s300_s22 = scalar_lea.sflag (!%p294_p3), [#allocation4], %s4774_s13  ;;  %s4780_s10 = scalar_lea.vmem (!%p294_p3), [#allocation3], %s3877_s21 }
  0x3d   : > { %4584 = dma.done.wait (%p4712_p6), %s300_s22, 64  }
  0x3e   : > { %4586 = vsyncadd (%p4712_p6), %s300_s22, 4294967232  ;;  %p344_p11 = scmp.lt.s32.totalorder %s4690_s9, 1  ;;  %v4612_v0 = vmov 1.0   ;;  %vm637_vm0 = vcmask 228352   ;;  %v4794_v1 = vld [vmem:[%s4780_s10] sm:$0x7] }
  0x3f   : > { %390 = vst [vmem:[#allocation2 + $0x1b] sm:$0x1] %v4612_v0  ;;  %v4803_v4 = vld [vmem:[%s5536_s2] sm:$0xff]   ;;  %v4613_v17 = vmov 683565275   ;;  %s3998_s16 = sshll.u32 %s4690_s9, 4 }
  0x40   : > { %s345_s24 = scalar_select %p344_p11, %s4690_s9, 1  ;;  %4093 = vmatprep.mubr.msk.bf16.mxu0 %vm637_vm0, %v4803_v4  ;;  %v4614_v19 = vmov 2475754826   ;;  %v4615_v21 = vmov 2131351028  }
  0x41   : > { %v4616_v23 = vmov 2102212464   ;;  %v4617_v25 = vmov 920167782   ;;  %v4618_v32 = vmov 1326507024  }
  0x42   : > { %s3879_s26 = sshll.u32 %s345_s24, 2  ;;  %s343_s25 = scalar_lea.vmem [#allocation7], %s4774_s13 }
  0x43   : > { %s4791_s19 = scalar_lea.vmem %s5535_s1, %s3879_s26  ;;  %s3761_s15 = sshll.u32 %s343_s25, 4  ;;  %s5462_s15 = int_to_ptr.vmem [resolvable:$true] %s3761_s15 }
  0x44   : > { %v4797_v2 = vld [vmem:[%s4791_s19] sm:$0x7]  ;;  %s3997_s20 = sshll.u32 %s4690_s9, 6  ;;  %s5454_s22 = scalar_lea.vmem [#allocation6], %s3877_s21 }
  0x45   : > { %v391_v3 = vmul.f32 0.1, %v4797_v2  ;;  %s5460_s26 = scalar_lea.hbm %s5542_s8, %s3998_s16  ;;  %s5467_s21 = scalar_lea.hbm %s5541_s7, %s3997_s20 }
  0x46   : > { %s3736_s23 = scalar_lea.sflag [#allocation8], %s4774_s13  ;;  %s4511_s0 = scalar_lea.vmem %s5462_s15, 16 }
  0x47   : > { %v4806_v5 = vadd.f32 %v391_v3, %v4794_v1  ;;  %p4512_p6 = scmp.ne.s32.totalorder %s5462_s15, %s4511_s0  ;;  %p5553_p12 = scmp.ne.s32.totalorder %s5547_s17, 0 }
  0x48   : > { %s4622_s16 = smov [#allocation7]  }
  0x49   : > { %393 = vst [vmem:[#allocation2] sm:$0x7] %v4806_v5  ;;  %v397_v6 = vand.u32 2139095040, %v4806_v5  ;;  %v394_v8 = vand.u32 2147483647, %v4806_v5  ;;  %vm396_vm8 = vcmp.lt.s32.totalorder %v4806_v5, 0  ;;  %p4513_p13 = pnand %p4512_p6, %p5553_p12 }
  0x4b   : > { %v398_v7 = vshrl.u32 %v397_v6, 23  ;;  %v401_v11 = vand.u32 8388607, %v394_v8  ;;  %vm395_vm9 = vcmp.le.f32.partialorder %v394_v8, 0.7853982  ;;  %p4514_p7 = pneg %p4513_p13 }
  0x4d   : > { %v3880_v9 = vadd.s32 4294967169, %v398_v7  ;;  %v402_v14 = vor.u32 8388608, %v401_v11 }
  0x4f   : > { %v404_v10 = vadd.s32 1, %v3880_v9  ;;  %v442_v34 = vshll.u32 %v402_v14, 8 }
  0x51   : > { %vm405_vm1 = vcmp.gt.s32.totalorder %v404_v10, 0 }
  0x52   : > { %v406_v12 = vsel %vm405_vm1, %v404_v10, 0  ;;  %vm486_vm1 = vweird.f32 %v4806_v5 }
  0x53   : > { %v408_v13 = vand.u32 31, %v406_v12  ;;  %v407_v15 = vshrl.u32 %v406_v12, 5 }
  0x55   : > { %v409_v16 = vsub.s32 32, %v408_v13  ;;  %v411_v18 = vshll.u32 %v4613_v17, %v408_v13  ;;  %v414_v20 = vshll.u32 %v4614_v19, %v408_v13  ;;  %v417_v22 = vshll.u32 %v4615_v21, %v408_v13 }
  0x56   : > { %v420_v24 = vshll.u32 %v4616_v23, %v408_v13  ;;  %v423_v26 = vshll.u32 %v4617_v25, %v408_v13  ;;  %vm426_vm2 = vcmp.lt.s32.totalorder %v407_v15, 1  ;;  %vm429_vm3 = vcmp.lt.s32.totalorder %v407_v15, 4 }
  0x57   : > { %v410_v27 = vshrl.u32 %v4613_v17, %v409_v16  ;;  %v412_v28 = vshrl.u32 %v4614_v19, %v409_v16  ;;  %v415_v29 = vshrl.u32 %v4615_v21, %v409_v16  ;;  %v418_v30 = vshrl.u32 %v4616_v23, %v409_v16 }
  0x58   : > { %v421_v31 = vshrl.u32 %v4617_v25, %v409_v16  ;;  %v424_v33 = vshrl.u32 %v4618_v32, %v409_v16  ;;  %vm427_vm4 = vcmp.lt.s32.totalorder %v407_v15, 2  ;;  %vm428_vm5 = vcmp.lt.s32.totalorder %v407_v15, 3 }
  0x59   : > { %v413_v35 = vor.u32 %v412_v28, %v411_v18  ;;  %v416_v36 = vor.u32 %v415_v29, %v414_v20  ;;  %v419_v37 = vor.u32 %v418_v30, %v417_v22 }
  0x5a   : > { %v422_v38 = vor.u32 %v421_v31, %v420_v24  ;;  %v425_v39 = vor.u32 %v424_v33, %v423_v26 }
  0x5b   : > { %v430_v40 = vsel %vm426_vm2, %v410_v27, %v413_v35  ;;  %v431_v41 = vsel %vm429_vm3, %v419_v37, 2102212464  ;;  %v434_v42 = vsel %vm426_vm2, %v413_v35, %v416_v36  ;;  %v438_v43 = vsel %vm426_vm2, %v416_v36, %v419_v37 }
  0x5c   : > { %v432_v44 = vsel %vm428_vm5, %v416_v36, %v431_v41  ;;  %v435_v45 = vsel %vm429_vm3, %v422_v38, 920167782  ;;  %v439_v46 = vsel %vm429_vm3, %v425_v39, 1326507024  ;;  %vm644_vm2 = vcmask 1045504  }
  0x5d   : > { %v436_v47 = vsel %vm428_vm5, %v419_v37, %v435_v45  ;;  %v440_v48 = vsel %vm428_vm5, %v422_v38, %v439_v46  ;;  %v433_v49 = vsel %vm427_vm4, %v430_v40, %v432_v44 }
  0x5e   : > { %v437_v50 = vsel %vm427_vm4, %v434_v42, %v436_v47  ;;  %v441_v51 = vsel %vm427_vm4, %v438_v43, %v440_v48  ;;  %v449_v56 = vmul.u32 %v442_v34, %v433_v49 }
  0x5f   : > { %v4826_v52 = vmul.u32.u64.low %v442_v34, %v441_v51  ;;  %v4827_v53 = vmul.u32.u64.high %v442_v34, %v441_v51, %v4826_v52  ;;  %v4829_v54 = vmul.u32.u64.low %v442_v34, %v437_v50  ;;  %v4830_v55 = vmul.u32.u64.high %v442_v34, %v437_v50, %v4829_v54 }
  0x61   : > { %vm451_vm6 = vc.u32 %v4827_v53, %v4829_v54  ;;  %v452_v57 = vadd.s32 1, %v4830_v55  ;;  %v450_v9 = vadd.s32 %v4829_v54, %v4827_v53 }
  0x63   : > { %v453_v58 = vsel %vm451_vm6, %v452_v57, %v4830_v55 }
  0x64   : > { %v454_v59 = vadd.s32 %v453_v58, %v449_v56 }
  0x66   : > { %v455_v60 = vadd.s32 536870912, %v454_v59 }
  0x68   : > { %v456_v61 = vshrl.u32 %v455_v60, 30 }
  0x6a   : > { %v457_v62 = vshll.u32 %v456_v61, 30  ;;  %v480_v26 = vsub.s32 4, %v456_v61 }
  0x6c   : > { %v458_v63 = vsub.s32 %v454_v59, %v457_v62  ;;  %v481_v29 = vsel %vm396_vm8, %v480_v26, %v456_v61 }
  0x6d   : > { %v483_v33 = vsel %vm395_vm9, 0, %v481_v29 }
  0x6e   : > { %v460_v0 = vsub.s32 0, %v458_v63  ;;  %v487_v34 = vadd.s32 3, %v483_v33  ;;  %v591_v36 = vand.u32 3, %v483_v33 }
  0x70   : > { %v3881_v3 = vmin.u32 %v460_v0, %v458_v63  ;;  %v488_v35 = vand.u32 3, %v487_v34  ;;  %vm596_vm11 = vcmp.eq.s32.totalorder %v591_v36, 2  ;;  %vm593_vm13 = vcmp.eq.s32.totalorder %v591_v36, 0 }
  0x71   : > { %vm592_vm15 = vcmp.lt.s32.totalorder %v591_v36, 2 }
  0x72   : > { %v462_v6 = vclz %v3881_v3  ;;  %vm493_vm10 = vcmp.eq.s32.totalorder %v488_v35, 2  ;;  %vm490_vm12 = vcmp.eq.s32.totalorder %v488_v35, 0  ;;  %vm489_vm14 = vcmp.lt.s32.totalorder %v488_v35, 2 }
  0x73   : > { %v840_v3 = vmul.f32 0.8, %v4797_v2 }
  0x74   : > { %v3882_v7 = vadd.s32 4294967294, %v462_v6 }
  0x76   : > { %vm3883_vm7 = vcmp.lt.s32.totalorder %v3882_v7, 0 }
  0x77   : > { %v465_v10 = vsel %vm3883_vm7, 0, %v3882_v7  ;;  %v4845_v7 = vadd.f32 %v840_v3, %v4794_v1 }
  0x78   : > { %v466_v11 = vsub.s32 32, %v465_v10  ;;  %v467_v12 = vshll.u32 %v458_v63, %v465_v10  ;;  %v470_v13 = vsub.s32 4294967266, %v465_v10 }
  0x79   : > { %v846_v10 = vand.u32 2139095040, %v4845_v7 }
  0x7a   : > { %v468_v14 = vshrl.u32 %v450_v9, %v466_v11  ;;  %v471_v15 = vadd.s32 127, %v470_v13  ;;  %v4850_v9 = vld [vmem:[%s5536_s2 + $0x8] sm:$0xff]  }
  0x7b   : > { %v847_v11 = vshrl.u32 %v846_v10, 23 }
  0x7c   : > { %v469_v16 = vor.u32 %v468_v14, %v467_v12  ;;  %v472_v18 = vshll.u32 %v471_v15, 23 }
  0x7d   : > { %v3898_v12 = vadd.s32 4294967169, %v847_v11 }
  0x7e   : > { %v473_v20 = vor.u32 4788187, %v472_v18  ;;  %v476_v22 = vcvt.s32.f32 %v469_v16  ;;  %v843_v18 = vand.u32 2147483647, %v4845_v7 }
  0x7f   : > { %v853_v13 = vadd.s32 1, %v3898_v12 }
  0x80   : > { %v474_v24 = vand.u32 2147483647, %v473_v20 }
  0x81   : > { %vm854_vm3 = vcmp.gt.s32.totalorder %v853_v13, 0 }
  0x82   : > { %v477_v27 = vmul.f32 %v476_v22, %v474_v24  ;;  %v855_v14 = vsel %vm854_vm3, %v853_v13, 0  ;;  %v850_v24 = vand.u32 8388607, %v843_v18 }
  0x83   : > { %v857_v15 = vand.u32 31, %v855_v14  ;;  %v856_v26 = vshrl.u32 %v855_v14, 5 }
  0x84   : > { %v478_v28 = vxor.u32 2147483648, %v477_v27  ;;  %v851_v34 = vor.u32 8388608, %v850_v24 }
  0x85   : > { %v858_v16 = vsub.s32 32, %v857_v15  ;;  %v869_v20 = vshll.u32 %v4616_v23, %v857_v15  ;;  %v863_v29 = vshll.u32 %v4614_v19, %v857_v15  ;;  %vm875_vm4 = vcmp.lt.s32.totalorder %v856_v26, 1 }
  0x86   : > { %v479_v30 = vsel %vm396_vm8, %v478_v28, %v477_v27  ;;  %v860_v27 = vshll.u32 %v4613_v17, %v857_v15  ;;  %vm876_vm5 = vcmp.lt.s32.totalorder %v856_v26, 2  ;;  %vm877_vm6 = vcmp.lt.s32.totalorder %v856_v26, 3 }
  0x87   : > { %v482_v31 = vsel %vm395_vm9, %v4806_v5, %v479_v30  ;;  %v870_v22 = vshrl.u32 %v4617_v25, %v858_v16  ;;  %v861_v28 = vshrl.u32 %v4614_v19, %v858_v16  ;;  %v864_v30 = vshrl.u32 %v4615_v21, %v858_v16 }
  0x88   : > { %4388 = vcosq.f32 %v482_v31  ;;  %v867_v33 = vshrl.u32 %v4616_v23, %v858_v16  ;;  %vm878_vm7 = vcmp.lt.s32.totalorder %v856_v26, 4 }
  0x89   : > { %4390 = vsinq.f32 %v482_v31  ;;  %v866_v31 = vshll.u32 %v4615_v21, %v857_v15  ;;  %v862_v35 = vor.u32 %v861_v28, %v860_v27  ;;  %v871_v36 = vor.u32 %v870_v22, %v869_v20 }
  0x92   : > { %v4389_v37 = vpop.eup %4388 }
  0x93   : > { %v4391_v38 = vpop.eup %4390  ;;  %v494_v39 = vxor.u32 2147483648, %v4389_v37 }
  0x94   : > { %v491_v8 = vxor.u32 2147483648, %v4391_v38 }
  0x95   : > { %v495_v40 = vsel %vm493_vm10, %v494_v39, %v4391_v38  ;;  %v598_v41 = vsel %vm596_vm11, %v494_v39, %v4391_v38  ;;  %v865_v38 = vor.u32 %v864_v30, %v863_v29  ;;  %v868_v39 = vor.u32 %v867_v33, %v866_v31 }
  0x96   : > { %v492_v42 = vsel %vm490_vm12, %v4389_v37, %v491_v8  ;;  %v595_v43 = vsel %vm593_vm13, %v4389_v37, %v491_v8  ;;  %v872_v37 = vshll.u32 %v4617_v25, %v857_v15  ;;  %v873_v8 = vshrl.u32 %v4618_v32, %v858_v16 }
  0x97   : > { %v496_v44 = vsel %vm489_vm14, %v492_v42, %v495_v40  ;;  %v599_v45 = vsel %vm592_vm15, %v595_v43, %v598_v41  ;;  %v891_v40 = vshll.u32 %v851_v34, 8  ;;  %v883_v42 = vsel %vm875_vm4, %v862_v35, %v865_v38 }
  0x98   : > { %v497_v46 = vsel %vm486_vm1, nan, %v496_v44  ;;  %v600_v47 = vsel %vm486_vm1, nan, %v599_v45  ;;  %v874_v41 = vor.u32 %v873_v8, %v872_v37  ;;  %v884_v43 = vsel %vm878_vm7, %v871_v36, 920167782 }
  0x99   : > { %601 = vst [vmem:[#allocation2 + $0x3] sm:$0x7] %v497_v46  ;;  %602 = vst [vmem:[#allocation2 + $0xf] sm:$0x7] %v600_v47  ;;  %v603_v48 = vmul.f32 2.0, %v497_v46  ;;  %v885_v44 = vsel %vm877_vm6, %v868_v39, %v884_v43  ;;  %v887_v45 = vsel %vm875_vm4, %v865_v38, %v868_v39  ;;  %vm845_vm10 = vcmp.lt.s32.totalorder %v4845_v7, 0 }
  0x9a   : > { %vm844_vm11 = vcmp.le.f32.partialorder %v843_v18, 0.7853982 }
  0x9b   : > { %v604_v49 = vmul.f32 %v603_v48, %v600_v47  ;;  %v605_v50 = vmul.f32 %v603_v48, %v497_v46  ;;  %v859_v46 = vshrl.u32 %v4613_v17, %v858_v16  ;;  %v886_v47 = vsel %vm876_vm5, %v883_v42, %v885_v44 }
  0x9c   : > { %v888_v48 = vsel %vm878_vm7, %v874_v41, 1326507024 }
  0x9d   : > { %v606_v51 = vsub.f32 1.0, %v605_v50  ;;  %607 = vst [vmem:[#allocation2 + $0x6] sm:$0x7] %v604_v49  ;;  %v609_v52 = vmul.f32 2.0, %v604_v49  ;;  %v889_v50 = vsel %vm877_vm6, %v871_v36, %v888_v48 }
  0x9f   : > { %v610_v53 = vmul.f32 %v609_v52, %v606_v51  ;;  %v611_v54 = vmul.f32 %v609_v52, %v604_v49  ;;  %608 = vst [vmem:[#allocation2 + $0x12] sm:$0x7] %v606_v51  ;;  %v880_v49 = vsel %vm878_vm7, %v868_v39, 2102212464 }
  0xa0   : > { %v4873_v51 = vmul.u32.u64.low %v891_v40, %v886_v47  ;;  %v4874_v52 = vmul.u32.u64.high %v891_v40, %v886_v47, %v4873_v51 }
  0xa1   : > { %v612_v5 = vsub.f32 1.0, %v611_v54  ;;  %613 = vst [vmem:[#allocation2 + $0x9] sm:$0x7] %v610_v53  ;;  %v615_v55 = vmul.f32 2.0, %v610_v53  ;;  %v881_v54 = vsel %vm877_vm6, %v865_v38, %v880_v49 }
  0xa3   : > { %v616_v56 = vmul.f32 %v615_v55, %v612_v5  ;;  %614 = vst [vmem:[#allocation2 + $0x15] sm:$0x7] %v612_v5  ;;  %v617_v57 = vmul.f32 %v615_v55, %v610_v53  ;;  %v879_v53 = vsel %vm875_vm4, %v859_v46, %v862_v35  ;;  %v890_v5 = vsel %vm876_vm5, %v887_v45, %v889_v50 }
  0xa4   : > { %v621_v59 = vld [vmem:[#allocation2] sm:$0xff]  ;;  %v882_v55 = vsel %vm876_vm5, %v879_v53, %v881_v54  ;;  %vm935_vm4 = vweird.f32 %v4845_v7  ;;  %vm713_vm5 = vcmask 261120  }
  0xa5   : > { %619 = vst [vmem:[#allocation2 + $0xc] sm:$0x7] %v616_v56  ;;  %v618_v58 = vsub.f32 1.0, %v617_v57  ;;  %842 = vst [vmem:[#allocation2] sm:$0x7] %v4845_v7  ;;  %v4879_v56 = vmul.u32.u64.low %v891_v40, %v890_v5  ;;  %v4880_v57 = vmul.u32.u64.high %v891_v40, %v890_v5, %v4879_v56 }
  0xa7   : > { %620 = vst [vmem:[#allocation2 + $0x18] sm:$0x7] %v618_v58  ;;  %v898_v58 = vmul.u32 %v891_v40, %v882_v55  ;;  %vm900_vm8 = vc.u32 %v4880_v57, %v4873_v51  ;;  %v899_v13 = vadd.s32 %v4873_v51, %v4880_v57 }
  0xaa   : > { %v623_v61 = vld [vmem:[#allocation2 + $0x10] sm:$0xff] }
  0xac   : > { %v622_v60 = vld [vmem:[#allocation2 + $0x8] sm:$0xff] }
  0xad   : > { %v625_v62 = vpack.c.bf16 %v622_v60, %v621_v59  ;;  %v901_v59 = vadd.s32 1, %v4874_v52 }
  0xae   : > { %v624_v63 = vld [vmem:[#allocation2 + $0x18] sm:$0xf] }
  0xaf   : > { %4089 = vmatprep.subr.bf16.mxu0 %v625_v62  ;;  %v626_v0 = vpack.c.bf16 %v624_v63, %v623_v61  ;;  %v902_v60 = vsel %vm900_vm8, %v901_v59, %v4874_v52 }
  0xb0   : > { %4090 = vmatpush3.bf16.msra.mxu0 %v625_v62  ;;  %v903_v61 = vadd.s32 %v902_v60, %v898_v58 }
  0xb1   : > { %4281 = vmatprep.subr.msk.bf16.mxu0 %vm644_vm2, %v626_v0  ;;  %v646_v6 = vsel %vm644_vm2, %v626_v0, 0 }
  0xb2   : > { %v904_v62 = vadd.s32 536870912, %v903_v61 }
  0xb4   : > { %4092 = vmatpush3.bf16.msra.mxu0 %v646_v6  ;;  %v905_v63 = vshrl.u32 %v904_v62, 30  ;;  %v4894_v62 = vld [vmem:[%s5537_s3] sm:$0xff]  }
  0xb5   : > { %4101 = vmatprep.mubr.msk.bf16.mxu1 %vm713_vm5, %v4894_v62 }
  0xb6   : > { %v906_v0 = vshll.u32 %v905_v63, 30  ;;  %v929_v36 = vsub.s32 4, %v905_v63 }
  0xb7   : > { %4094 = vmatmul.mubr.msk.bf16.vlgmr.msra.gmra.mrb[0].mxu0 %vm637_vm0, %v4850_v9 }
  0xb8   : > { %v907_v3 = vsub.s32 %v903_v61, %v906_v0  ;;  %v930_v37 = vsel %vm845_vm10, %v929_v36, %v905_v63  ;;  %v1253_v63 = vmul.f32 1.5, %v4797_v2 }
  0xb9   : > { %v932_v38 = vsel %vm844_vm11, 0, %v930_v37 }
  0xba   : > { %v909_v6 = vsub.s32 0, %v907_v3  ;;  %v936_v39 = vadd.s32 3, %v932_v38  ;;  %v1040_v40 = vand.u32 3, %v932_v38  ;;  %v4900_v0 = vadd.f32 %v1253_v63, %v4794_v1 }
  0xbc   : > { %v3899_v10 = vmin.u32 %v909_v6, %v907_v3  ;;  %v937_v8 = vand.u32 3, %v936_v39  ;;  %vm1042_vm14 = vcmp.eq.s32.totalorder %v1040_v40, 0  ;;  %vm1045_vm15 = vcmp.eq.s32.totalorder %v1040_v40, 2 }
  0xbd   : > { %vm1041_vm3 = vcmp.lt.s32.totalorder %v1040_v40, 2  ;;  %v1259_v6 = vand.u32 2139095040, %v4900_v0 }
  0xbe   : > { %v911_v11 = vclz %v3899_v10  ;;  %vm942_vm12 = vcmp.eq.s32.totalorder %v937_v8, 2  ;;  %vm939_vm13 = vcmp.eq.s32.totalorder %v937_v8, 0  ;;  %vm938_vm1 = vcmp.lt.s32.totalorder %v937_v8, 2 }
  0xbf   : > { %v1260_v10 = vshrl.u32 %v1259_v6, 23 }
  0xc0   : > { %v3900_v12 = vadd.s32 4294967294, %v911_v11  ;;  %v1256_v11 = vand.u32 2147483647, %v4900_v0 }
  0xc2   : > { %vm3901_vm9 = vcmp.lt.s32.totalorder %v3900_v12, 0 }
  0xc3   : > { %v914_v14 = vsel %vm3901_vm9, 0, %v3900_v12  ;;  %v4619_v12 = vmov 0  }
  0xc4   : > { %v915_v15 = vsub.s32 32, %v914_v14  ;;  %v919_v16 = vsub.s32 4294967266, %v914_v14  ;;  %v916_v20 = vshll.u32 %v907_v3, %v914_v14  ;;  %4382 = vset.pattern.permute.xlu0 %v4619_v12  ;;  %4383 = vset.pattern.permute.xlu1 %v4619_v12  ;;  %v362_v14 = vld [vmem:[%s5538_s4 + $0x10] sm:$0xff] }
  0xc5   : > { %376 = vperm.xlu1 %4383, %v362_v14  }
  0xc6   : > { %v917_v22 = vshrl.u32 %v899_v13, %v915_v15  ;;  %v920_v24 = vadd.s32 127, %v919_v16  ;;  %v360_v13 = vld [vmem:[%s5538_s4] sm:$0xff]  ;;  %v3912_v15 = vadd.s32 4294967169, %v1260_v10  ;;  %v361_v16 = vld [vmem:[%s5538_s4 + $0x8] sm:$0xff] }
  0xc7   : > { %366 = vperm.xlu0 %4382, %v360_v13  }
  0xc8   : > { %v918_v26 = vor.u32 %v917_v22, %v916_v20  ;;  %v921_v27 = vshll.u32 %v920_v24, 23  ;;  %v363_v20 = vld [vmem:[%s5538_s4 + $0x18] sm:$0xff]  ;;  %v1266_v22 = vadd.s32 1, %v3912_v15  ;;  %v1263_v24 = vand.u32 8388607, %v1256_v11 }
  0xc9   : > { %381 = vperm.xlu1 %4383, %v363_v20  }
  0xca   : > { %v922_v28 = vor.u32 4788187, %v921_v27  ;;  %v925_v29 = vcvt.s32.f32 %v918_v26  ;;  %vm1267_vm6 = vcmp.gt.s32.totalorder %v1266_v22, 0  ;;  %v384_v27 = vld [vmem:[%s5540_s6] sm:$0xf] }
  0xcb   : > { %371 = vperm.xlu0 %4382, %v361_v16   ;;  %v1268_v26 = vsel %vm1267_vm6, %v1266_v22, 0 }
  0xcc   : > { %v923_v30 = vand.u32 2147483647, %v922_v28  ;;  %v1270_v28 = vand.u32 31, %v1268_v26 }
  0xce   : > { %v926_v31 = vmul.f32 %v925_v29, %v923_v30  ;;  %v1264_v29 = vor.u32 8388608, %v1263_v24  ;;  %v1269_v30 = vshrl.u32 %v1268_v26, 5  ;;  %v1282_v36 = vshll.u32 %v4616_v23, %v1270_v28 }
  0xcf   : > { %387 = vperm.xlu0 %4382, %v384_v27   ;;  %v1285_v37 = vshll.u32 %v4617_v25, %v1270_v28 }
  0xd0   : > { %v927_v33 = vxor.u32 2147483648, %v926_v31  ;;  %vm1288_vm7 = vcmp.lt.s32.totalorder %v1269_v30, 1  ;;  %vm1291_vm8 = vcmp.lt.s32.totalorder %v1269_v30, 4  ;;  %vm1289_vm9 = vcmp.lt.s32.totalorder %v1269_v30, 2 }
  0xd2   : > { %v928_v34 = vsel %vm845_vm10, %v927_v33, %v926_v31  ;;  %v1271_v31 = vsub.s32 32, %v1270_v28  ;;  %v1273_v33 = vshll.u32 %v4613_v17, %v1270_v28  ;;  %vm1290_vm10 = vcmp.lt.s32.totalorder %v1269_v30, 3 }
  0xd3   : > { %v931_v35 = vsel %vm844_vm11, %v4845_v7, %v928_v34  ;;  %v1276_v34 = vshll.u32 %v4614_v19, %v1270_v28 }
  0xd4   : > { %4392 = vcosq.f32 %v931_v35  ;;  %v1272_v38 = vshrl.u32 %v4613_v17, %v1271_v31  ;;  %v1274_v39 = vshrl.u32 %v4614_v19, %v1271_v31  ;;  %v1277_v8 = vshrl.u32 %v4615_v21, %v1271_v31 }
  0xd5   : > { %4394 = vsinq.f32 %v931_v35  ;;  %v1279_v35 = vshll.u32 %v4615_v21, %v1270_v28  ;;  %v1280_v40 = vshrl.u32 %v4616_v23, %v1271_v31 }
  0xde   : > { %v4393_v41 = vpop.eup %4392 }
  0xdf   : > { %v4395_v42 = vpop.eup %4394  ;;  %v943_v43 = vxor.u32 2147483648, %v4393_v41 }
  0xe0   : > { %v940_v18 = vxor.u32 2147483648, %v4395_v42 }
  0xe1   : > { %v944_v44 = vsel %vm942_vm12, %v943_v43, %v4395_v42  ;;  %v1047_v45 = vsel %vm1045_vm15, %v943_v43, %v4395_v42  ;;  %v1286_v42 = vshrl.u32 %v4618_v32, %v1271_v31  ;;  %v1304_v43 = vshll.u32 %v1264_v29, 8 }
  0xe2   : > { %v941_v46 = vsel %vm939_vm13, %v4393_v41, %v940_v18  ;;  %v1044_v47 = vsel %vm1042_vm14, %v4393_v41, %v940_v18  ;;  %v1283_v41 = vshrl.u32 %v4617_v25, %v1271_v31  ;;  %v1275_v18 = vor.u32 %v1274_v39, %v1273_v33 }
  0xe3   : > { %v945_v48 = vsel %vm938_vm1, %v941_v46, %v944_v44  ;;  %v1048_v49 = vsel %vm1041_vm3, %v1044_v47, %v1047_v45  ;;  %v1278_v44 = vor.u32 %v1277_v8, %v1276_v34  ;;  %v1281_v45 = vor.u32 %v1280_v40, %v1279_v35 }
  0xe4   : > { %v946_v50 = vsel %vm935_vm4, nan, %v945_v48  ;;  %v1049_v51 = vsel %vm935_vm4, nan, %v1048_v49  ;;  %v1284_v46 = vor.u32 %v1283_v41, %v1282_v36  ;;  %v1287_v47 = vor.u32 %v1286_v42, %v1285_v37 }
  0xe5   : > { %1050 = vst [vmem:[#allocation2 + $0x3] sm:$0x7] %v946_v50  ;;  %1051 = vst [vmem:[#allocation2 + $0xf] sm:$0x7] %v1049_v51  ;;  %v1052_v52 = vmul.f32 2.0, %v946_v50  ;;  %v1292_v48 = vsel %vm1288_vm7, %v1272_v38, %v1275_v18  ;;  %vm1258_vm13 = vcmp.lt.s32.totalorder %v4900_v0, 0 }
  0xe6   : > { %v1293_v49 = vsel %vm1291_vm8, %v1281_v45, 2102212464  ;;  %vm1257_vm14 = vcmp.le.f32.partialorder %v1256_v11, 0.7853982 }
  0xe7   : > { %v1053_v53 = vmul.f32 %v1052_v52, %v1049_v51  ;;  %v1054_v54 = vmul.f32 %v1052_v52, %v946_v50  ;;  %v1296_v50 = vsel %vm1288_vm7, %v1275_v18, %v1278_v44  ;;  %v1300_v51 = vsel %vm1288_vm7, %v1278_v44, %v1281_v45 }
  0xe8   : > { %v1294_v52 = vsel %vm1290_vm10, %v1278_v44, %v1293_v49 }
  0xe9   : > { %v1055_v5 = vsub.f32 1.0, %v1054_v54  ;;  %1056 = vst [vmem:[#allocation2 + $0x6] sm:$0x7] %v1053_v53  ;;  %v1058_v55 = vmul.f32 2.0, %v1053_v53  ;;  %v1301_v54 = vsel %vm1291_vm8, %v1287_v47, 1326507024 }
  0xeb   : > { %v1059_v56 = vmul.f32 %v1058_v55, %v1055_v5  ;;  %v1060_v57 = vmul.f32 %v1058_v55, %v1053_v53  ;;  %1057 = vst [vmem:[#allocation2 + $0x12] sm:$0x7] %v1055_v5  ;;  %v1297_v53 = vsel %vm1291_vm8, %v1284_v46, 920167782  ;;  %v1302_v55 = vsel %vm1290_vm10, %v1284_v46, %v1301_v54 }
  0xec   : > { %v1298_v5 = vsel %vm1290_vm10, %v1281_v45, %v1297_v53  ;;  %vm1348_vm8 = vweird.f32 %v4900_v0 }
  0xed   : > { %v1061_v7 = vsub.f32 1.0, %v1060_v57  ;;  %1062 = vst [vmem:[#allocation2 + $0x9] sm:$0x7] %v1059_v56  ;;  %v1064_v58 = vmul.f32 2.0, %v1059_v56  ;;  %v1299_v57 = vsel %vm1289_vm9, %v1296_v50, %v1298_v5 }
  0xef   : > { %v1065_v59 = vmul.f32 %v1064_v58, %v1061_v7  ;;  %1063 = vst [vmem:[#allocation2 + $0x15] sm:$0x7] %v1061_v7  ;;  %v1066_v60 = vmul.f32 %v1064_v58, %v1059_v56  ;;  %v1295_v56 = vsel %vm1289_vm9, %v1292_v48, %v1294_v52  ;;  %v1303_v7 = vsel %vm1289_vm9, %v1300_v51, %v1302_v55 }
  0xf0   : > { %v4902_v3 = vld [vmem:[#allocation2] sm:$0xff]  ;;  %v1311_v63 = vmul.u32 %v1304_v43, %v1295_v56  ;;  %vm4621_vm9 = vmmov 0  }
  0xf1   : > { %1068 = vst [vmem:[#allocation2 + $0xc] sm:$0x7] %v1065_v59  ;;  %v1067_v61 = vsub.f32 1.0, %v1066_v60  ;;  %1255 = vst [vmem:[#allocation2] sm:$0x7] %v4900_v0  ;;  %v4935_v58 = vmul.u32.u64.low %v1304_v43, %v1303_v7  ;;  %v4936_v59 = vmul.u32.u64.high %v1304_v43, %v1303_v7, %v4935_v58 }
  0xf3   : > { %1069 = vst [vmem:[#allocation2 + $0x18] sm:$0x7] %v1067_v61  ;;  %v4938_v60 = vmul.u32.u64.low %v1304_v43, %v1299_v57  ;;  %v4939_v61 = vmul.u32.u64.high %v1304_v43, %v1299_v57, %v4938_v60 }
  0xf5   : > { %vm1313_vm11 = vc.u32 %v4936_v59, %v4938_v60  ;;  %v1314_v6 = vadd.s32 1, %v4939_v61  ;;  %v1312_v27 = vadd.s32 %v4938_v60, %v4936_v59 }
  0xf6   : > { %v1072_v57 = vld [vmem:[#allocation2 + $0x10] sm:$0xff] }
  0xf7   : > { %v1315_v10 = vsel %vm1313_vm11, %v1314_v6, %v4939_v61 }
  0xf8   : > { %v1316_v12 = vadd.s32 %v1315_v10, %v1311_v63  ;;  %v1071_v56 = vld [vmem:[#allocation2 + $0x8] sm:$0xff] }
  0xfa   : > { %v1317_v13 = vadd.s32 536870912, %v1316_v12 }
  0xfc   : > { %v1318_v14 = vshrl.u32 %v1317_v13, 30 }
  0xfe   : > { %v1319_v15 = vshll.u32 %v1318_v14, 30  ;;  %v1342_v8 = vsub.s32 4, %v1318_v14 }
 0x100   : > { %v1320_v16 = vsub.s32 %v1316_v12, %v1319_v15  ;;  %v1343_v42 = vsel %vm1258_vm13, %v1342_v8, %v1318_v14 }
 0x101   : > { %v1345_v44 = vsel %vm1257_vm14, 0, %v1343_v42 }
 0x102   : > { %v1322_v20 = vsub.s32 0, %v1320_v16  ;;  %v1349_v45 = vadd.s32 3, %v1345_v44  ;;  %v1453_v47 = vand.u32 3, %v1345_v44 }
 0x104   : > { %v3913_v22 = vmin.u32 %v1322_v20, %v1320_v16  ;;  %v1350_v46 = vand.u32 3, %v1349_v45  ;;  %vm1458_vm1 = vcmp.eq.s32.totalorder %v1453_v47, 2  ;;  %vm1455_vm4 = vcmp.eq.s32.totalorder %v1453_v47, 0  ;;  %v1073_v20 = vld [vmem:[#allocation2 + $0x18] sm:$0xf] }
 0x105   : > { %vm1454_vm7 = vcmp.lt.s32.totalorder %v1453_v47, 2 }
 0x106   : > { %v1324_v24 = vclz %v3913_v22  ;;  %vm1355_vm15 = vcmp.eq.s32.totalorder %v1350_v46, 2  ;;  %vm1352_vm3 = vcmp.eq.s32.totalorder %v1350_v46, 0  ;;  %vm1351_vm6 = vcmp.lt.s32.totalorder %v1350_v46, 2 }
 0x108   : > { %v3914_v26 = vadd.s32 4294967294, %v1324_v24 }
 0x10a   : > { %vm3915_vm12 = vcmp.lt.s32.totalorder %v3914_v26, 0 }
 0x10b   : > { %v1327_v28 = vsel %vm3915_vm12, 0, %v3914_v26 }
 0x10c   : > { %v1328_v29 = vsub.s32 32, %v1327_v28  ;;  %v1329_v30 = vshll.u32 %v1320_v16, %v1327_v28  ;;  %v1332_v31 = vsub.s32 4294967266, %v1327_v28 }
 0x10e   : > { %v1330_v33 = vshrl.u32 %v1312_v27, %v1328_v29  ;;  %v1333_v34 = vadd.s32 127, %v1332_v31 }
 0x110   : > { %v1331_v35 = vor.u32 %v1330_v33, %v1329_v30  ;;  %v1334_v36 = vshll.u32 %v1333_v34, 23 }
 0x112   : > { %v1335_v37 = vor.u32 4788187, %v1334_v36  ;;  %v1338_v38 = vcvt.s32.f32 %v1331_v35  ;;  %v1074_v35 = vpack.c.bf16 %v1071_v56, %v4902_v3  ;;  %v4954_v36 = vld [vmem:[%s5537_s3 + $0x8] sm:$0xff]   ;;  %v4620_v3 = vmov 0.0  }
 0x113   : > { %4105 = vmatprep.subr.bf16.mxu0 %v4620_v3  ;;  %4109 = vmatprep.mubr.msk.bf16.mxu0 %vm4621_vm9, %v4620_v3 }
 0x114   : > { %v1336_v39 = vand.u32 2147483647, %v1335_v37  ;;  %v1075_v37 = vpack.c.bf16 %v1073_v20, %v1072_v57 }
 0x116   : > { %v1339_v40 = vmul.f32 %v1338_v38, %v1336_v39  ;;  %v1077_v38 = vsel %vm644_vm2, %v1075_v37, 0 }
 0x118   : > { %v1340_v41 = vxor.u32 2147483648, %v1339_v40 }
 0x11a   : > { %v1341_v43 = vsel %vm1258_vm13, %v1340_v41, %v1339_v40 }
 0x11b   : > { %v1344_v18 = vsel %vm1257_vm14, %v4900_v0, %v1341_v43 }
 0x11c   : > { %4396 = vcosq.f32 %v1344_v18 }
 0x11d   : > { %4398 = vsinq.f32 %v1344_v18 }
 0x126   : > { %v4397_v48 = vpop.eup %4396 }
 0x127   : > { %v4399_v49 = vpop.eup %4398  ;;  %v1356_v50 = vxor.u32 2147483648, %v4397_v48 }
 0x128   : > { %v1353_v11 = vxor.u32 2147483648, %v4399_v49 }
 0x129   : > { %v1357_v51 = vsel %vm1355_vm15, %v1356_v50, %v4399_v49  ;;  %v1460_v52 = vsel %vm1458_vm1, %v1356_v50, %v4399_v49 }
 0x12a   : > { %v1354_v53 = vsel %vm1352_vm3, %v4397_v48, %v1353_v11  ;;  %v1457_v54 = vsel %vm1455_vm4, %v4397_v48, %v1353_v11 }
 0x12b   : > { %v1358_v5 = vsel %vm1351_vm6, %v1354_v53, %v1357_v51  ;;  %v1461_v55 = vsel %vm1454_vm7, %v1457_v54, %v1460_v52 }
 0x12c   : > { %v1359_v7 = vsel %vm1348_vm8, nan, %v1358_v5  ;;  %v1462_v58 = vsel %vm1348_vm8, nan, %v1461_v55 }
 0x12d   : > { %1463 = vst [vmem:[#allocation2 + $0x3] sm:$0x7] %v1359_v7  ;;  %1464 = vst [vmem:[#allocation2 + $0xf] sm:$0x7] %v1462_v58  ;;  %v1465_v59 = vmul.f32 2.0, %v1359_v7 }
 0x12f   : > { %v1466_v60 = vmul.f32 %v1465_v59, %v1462_v58  ;;  %v1467_v61 = vmul.f32 %v1465_v59, %v1359_v7 }
 0x131   : > { %v1468_v63 = vsub.f32 1.0, %v1467_v61  ;;  %1469 = vst [vmem:[#allocation2 + $0x6] sm:$0x7] %v1466_v60  ;;  %v1471_v6 = vmul.f32 2.0, %v1466_v60 }
 0x133   : > { %1470 = vst [vmem:[#allocation2 + $0x12] sm:$0x7] %v1468_v63  ;;  %v1472_v0 = vmul.f32 %v1471_v6, %v1468_v63  ;;  %v1473_v10 = vmul.f32 %v1471_v6, %v1466_v60 }
 0x135   : > { %v1474_v12 = vsub.f32 1.0, %v1473_v10  ;;  %1475 = vst [vmem:[#allocation2 + $0x9] sm:$0x7] %v1472_v0  ;;  %v1477_v13 = vmul.f32 2.0, %v1472_v0 }
 0x137   : > { %1476 = vst [vmem:[#allocation2 + $0x15] sm:$0x7] %v1474_v12  ;;  %v1478_v14 = vmul.f32 %v1477_v13, %v1474_v12  ;;  %v1479_v15 = vmul.f32 %v1477_v13, %v1472_v0 }
 0x138   : > { %v4974_v8 = vld [vmem:[#allocation2] sm:$0xff] }
 0x139   : > { %v1480_v16 = vsub.f32 1.0, %v1479_v15  ;;  %1481 = vst [vmem:[#allocation2 + $0xc] sm:$0x7] %v1478_v14 }
 0x13b   : > { %1482 = vst [vmem:[#allocation2 + $0x18] sm:$0x7] %v1480_v16 }
 0x18a   : > { %v4095_v22 = vpop.f32.mrb[0].mxu0 }
 0x18b   : > { %v682_v24 = vpop.f32.mrb[1].mxu0  ;;  %v699_v27 = vmax.f32 %v4095_v22, 0.0 }
 0x18c   : > { %v4096_v26 = vpop.f32.mrb[2].mxu0  ;;  %v697_v30 = vmax.f32 %v682_v24, 0.0 }
 0x18d   : > { %v700_v28 = vmax.f32 %v4096_v26, 0.0  ;;  %v685_v29 = vpop.f32.mrb[3].mxu0 }
 0x18e   : > { %v698_v31 = vmax.f32 %v685_v29, 0.0 }
 0x18f   : > { %v702_v33 = vpack.c.bf16 %v700_v28, %v699_v27 }
 0x190   : > { %v701_v34 = vpack.c.bf16 %v698_v31, %v697_v30 }
 0x192   : > { %4097 = vmatprep.subr.bf16.mxu1 %v701_v34 }
 0x193   : > { %4098 = vmatpush3.bf16.msra.mxu1 %v701_v34 }
 0x194   : > { %4099 = vmatprep.subr.bf16.mxu1 %v702_v33 }
 0x197   : > { %4100 = vmatpush3.bf16.msra.mxu1 %v702_v33 }
 0x198   : > { %4113 = vmatprep.subr.bf16.mxu1 %v1074_v35 }
 0x19a   : > { %4102 = vmatmul.mubr.msk.bf16.vlgmr.msra.gmra.mrb[0].mxu1 %vm713_vm5, %v4954_v36 }
 0x19b   : > { %4114 = vmatpush3.bf16.msra.mxu1 %v1074_v35  ;;  %4117 = vmatprep.mubr.msk.bf16.mxu1 %vm637_vm0, %v4803_v4  ;;  %v1666_v4 = vmul.f32 2.2, %v4797_v2 }
 0x19c   : > { %4282 = vmatprep.subr.msk.bf16.mxu1 %vm644_vm2, %v1075_v37 }
 0x19d   : > { %v4972_v39 = vadd.f32 %v1666_v4, %v4794_v1 }
 0x19f   : > { %4116 = vmatpush3.bf16.msra.mxu1 %v1077_v38  ;;  %v1672_v40 = vand.u32 2139095040, %v4972_v39  ;;  %1668 = vst [vmem:[#allocation2] sm:$0x7] %v4972_v39  ;;  %v1669_v42 = vand.u32 2147483647, %v4972_v39  ;;  %vm1671_vm3 = vcmp.lt.s32.totalorder %v4972_v39, 0 }
 0x1a0   : > { %4129 = vmatprep.subr.bf16.mxu1 %v4620_v3 }
 0x1a1   : > { %v1673_v41 = vshrl.u32 %v1672_v40, 23  ;;  %v1676_v44 = vand.u32 8388607, %v1669_v42  ;;  %vm1670_vm4 = vcmp.le.f32.partialorder %v1669_v42, 0.7853982 }
 0x1a2   : > { %4118 = vmatmul.mubr.msk.bf16.vlgmr.msra.gmra.mrb[4].mxu1 %vm637_vm0, %v4850_v9 }
 0x1a3   : > { %4133 = vmatprep.mubr.msk.bf16.mxu1 %vm4621_vm9, %v4620_v3  ;;  %v3926_v43 = vadd.s32 4294967169, %v1673_v41  ;;  %v1677_v46 = vor.u32 8388608, %v1676_v44 }
 0x1a5   : > { %v1679_v18 = vadd.s32 1, %v3926_v43  ;;  %v1717_v57 = vshll.u32 %v1677_v46, 8 }
 0x1a7   : > { %vm1680_vm10 = vcmp.gt.s32.totalorder %v1679_v18, 0 }
 0x1a8   : > { %v1681_v45 = vsel %vm1680_vm10, %v1679_v18, 0 }
 0x1a9   : > { %v1683_v2 = vand.u32 31, %v1681_v45  ;;  %v1682_v1 = vshrl.u32 %v1681_v45, 5 }
 0x1ab   : > { %v1684_v47 = vsub.s32 32, %v1683_v2  ;;  %v1686_v48 = vshll.u32 %v4613_v17, %v1683_v2  ;;  %v1689_v49 = vshll.u32 %v4614_v19, %v1683_v2  ;;  %v1692_v50 = vshll.u32 %v4615_v21, %v1683_v2 }
 0x1ac   : > { %v1695_v11 = vshll.u32 %v4616_v23, %v1683_v2  ;;  %v1698_v51 = vshll.u32 %v4617_v25, %v1683_v2  ;;  %vm1701_vm11 = vcmp.lt.s32.totalorder %v1682_v1, 1  ;;  %vm1704_vm12 = vcmp.lt.s32.totalorder %v1682_v1, 4 }
 0x1ad   : > { %v1685_v52 = vshrl.u32 %v4613_v17, %v1684_v47  ;;  %v1687_v53 = vshrl.u32 %v4614_v19, %v1684_v47  ;;  %v1690_v54 = vshrl.u32 %v4615_v21, %v1684_v47  ;;  %v1693_v5 = vshrl.u32 %v4616_v23, %v1684_v47 }
 0x1ae   : > { %v1696_v55 = vshrl.u32 %v4617_v25, %v1684_v47  ;;  %v1699_v56 = vshrl.u32 %v4618_v32, %v1684_v47  ;;  %vm1702_vm13 = vcmp.lt.s32.totalorder %v1682_v1, 2  ;;  %vm1703_vm14 = vcmp.lt.s32.totalorder %v1682_v1, 3 }
 0x1af   : > { %v1688_v7 = vor.u32 %v1687_v53, %v1686_v48  ;;  %v1691_v58 = vor.u32 %v1690_v54, %v1689_v49  ;;  %v1694_v59 = vor.u32 %v1693_v5, %v1692_v50 }
 0x1b0   : > { %v1697_v60 = vor.u32 %v1696_v55, %v1695_v11  ;;  %v1700_v61 = vor.u32 %v1699_v56, %v1698_v51 }
 0x1b1   : > { %v1705_v63 = vsel %vm1701_vm11, %v1685_v52, %v1688_v7  ;;  %v1706_v6 = vsel %vm1704_vm12, %v1694_v59, 2102212464  ;;  %v1709_v0 = vsel %vm1701_vm11, %v1688_v7, %v1691_v58  ;;  %v1713_v10 = vsel %vm1701_vm11, %v1691_v58, %v1694_v59 }
 0x1b2   : > { %v1707_v12 = vsel %vm1703_vm14, %v1691_v58, %v1706_v6  ;;  %v1710_v13 = vsel %vm1704_vm12, %v1697_v60, 920167782  ;;  %v1714_v14 = vsel %vm1704_vm12, %v1700_v61, 1326507024 }
 0x1b3   : > { %v1711_v15 = vsel %vm1703_vm14, %v1694_v59, %v1710_v13  ;;  %v1715_v16 = vsel %vm1703_vm14, %v1697_v60, %v1714_v14  ;;  %v1708_v20 = vsel %vm1702_vm13, %v1705_v63, %v1707_v12 }
 0x1b4   : > { %v1712_v22 = vsel %vm1702_vm13, %v1709_v0, %v1711_v15  ;;  %v1716_v24 = vsel %vm1702_vm13, %v1713_v10, %v1715_v16  ;;  %v1724_v30 = vmul.u32 %v1717_v57, %v1708_v20  ;;  %vm1761_vm13 = vweird.f32 %v4972_v39  ;;  %v1484_v16 = vld [vmem:[#allocation2 + $0x8] sm:$0xff]  ;;  %v5007_v20 = vld [vmem:[#allocation2 + $0x10] sm:$0xff] }
 0x1b5   : > { %v4992_v26 = vmul.u32.u64.low %v1717_v57, %v1716_v24  ;;  %v4993_v27 = vmul.u32.u64.high %v1717_v57, %v1716_v24, %v4992_v26  ;;  %v4995_v28 = vmul.u32.u64.low %v1717_v57, %v1712_v22  ;;  %v4996_v29 = vmul.u32.u64.high %v1717_v57, %v1712_v22, %v4995_v28 }
 0x1b7   : > { %vm1726_vm15 = vc.u32 %v4993_v27, %v4995_v28  ;;  %v1727_v31 = vadd.s32 1, %v4996_v29  ;;  %v1725_v44 = vadd.s32 %v4995_v28, %v4993_v27 }
 0x1b9   : > { %v1728_v33 = vsel %vm1726_vm15, %v1727_v31, %v4996_v29 }
 0x1ba   : > { %v1729_v34 = vadd.s32 %v1728_v33, %v1724_v30 }
 0x1bc   : > { %v1730_v35 = vadd.s32 536870912, %v1729_v34 }
 0x1be   : > { %v1731_v37 = vshrl.u32 %v1730_v35, 30  ;;  %v5009_v35 = vpop.permute.xlu1 %376 }
 0x1c0   : > { %v1732_v38 = vshll.u32 %v1731_v37, 30  ;;  %v1755_v53 = vsub.s32 4, %v1731_v37 }
 0x1c2   : > { %v1733_v4 = vsub.s32 %v1729_v34, %v1732_v38  ;;  %v1756_v55 = vsel %vm1671_vm3, %v1755_v53, %v1731_v37 }
 0x1c3   : > { %v1758_v7 = vsel %vm1670_vm4, 0, %v1756_v55 }
 0x1c4   : > { %v1735_v40 = vsub.s32 0, %v1733_v4  ;;  %v1762_v58 = vadd.s32 3, %v1758_v7  ;;  %v1866_v60 = vand.u32 3, %v1758_v7 }
 0x1c6   : > { %v3927_v41 = vmin.u32 %v1735_v40, %v1733_v4  ;;  %v1763_v59 = vand.u32 3, %v1762_v58  ;;  %vm1871_vm7 = vcmp.eq.s32.totalorder %v1866_v60, 2  ;;  %vm1868_vm10 = vcmp.eq.s32.totalorder %v1866_v60, 0 }
 0x1c7   : > { %vm1867_vm12 = vcmp.lt.s32.totalorder %v1866_v60, 2 }
 0x1c8   : > { %v1737_v43 = vclz %v3927_v41  ;;  %vm1768_vm6 = vcmp.eq.s32.totalorder %v1763_v59, 2  ;;  %vm1765_vm8 = vcmp.eq.s32.totalorder %v1763_v59, 0  ;;  %vm1764_vm11 = vcmp.lt.s32.totalorder %v1763_v59, 2  ;;  %v1486_v41 = vld [vmem:[#allocation2 + $0x18] sm:$0xf] }
 0x1ca   : > { %v3928_v18 = vadd.s32 4294967294, %v1737_v43 }
 0x1cc   : > { %vm3929_vm1 = vcmp.lt.s32.totalorder %v3928_v18, 0 }
 0x1cd   : > { %v1740_v45 = vsel %vm3929_vm1, 0, %v3928_v18  ;;  %v5013_v18 = vpop.permute.xlu1 %381 }
 0x1ce   : > { %v1741_v2 = vsub.s32 32, %v1740_v45  ;;  %v1742_v46 = vshll.u32 %v1733_v4, %v1740_v45  ;;  %v1745_v1 = vsub.s32 4294967266, %v1740_v45  ;;  %v5011_v4 = vpop.permute.xlu0 %366 }
 0x1d0   : > { %v1743_v47 = vshrl.u32 %v1725_v44, %v1741_v2  ;;  %v1746_v48 = vadd.s32 127, %v1745_v1 }
 0x1d2   : > { %v1744_v49 = vor.u32 %v1743_v47, %v1742_v46  ;;  %v1747_v50 = vshll.u32 %v1746_v48, 23  ;;  %v5017_v1 = vpop.permute.xlu0 %371 }
 0x1d4   : > { %v1748_v11 = vor.u32 4788187, %v1747_v50  ;;  %v1751_v51 = vcvt.s32.f32 %v1744_v49 }
 0x1d6   : > { %v1749_v52 = vand.u32 2147483647, %v1748_v11 }
 0x1d8   : > { %v1752_v54 = vmul.f32 %v1751_v51, %v1749_v52 }
 0x1da   : > { %v1753_v5 = vxor.u32 2147483648, %v1752_v54 }
 0x1dc   : > { %v1754_v56 = vsel %vm1671_vm3, %v1753_v5, %v1752_v54 }
 0x1dd   : > { %v1757_v57 = vsel %vm1670_vm4, %v4972_v39, %v1754_v56 }
 0x1de   : > { %4400 = vcosq.f32 %v1757_v57 }
 0x1df   : > { %4402 = vsinq.f32 %v1757_v57 }
 0x1e8   : > { %v4401_v61 = vpop.eup %4400 }
 0x1e9   : > { %v4403_v63 = vpop.eup %4402  ;;  %v1769_v6 = vxor.u32 2147483648, %v4401_v61 }
 0x1ea   : > { %v1766_v42 = vxor.u32 2147483648, %v4403_v63 }
 0x1eb   : > { %v1770_v0 = vsel %vm1768_vm6, %v1769_v6, %v4403_v63  ;;  %v1873_v10 = vsel %vm1871_vm7, %v1769_v6, %v4403_v63  ;;  %v5025_v6 = vld [vmem:[%s5539_s5] sm:$0x3] }
 0x1ec   : > { %v1767_v12 = vsel %vm1765_vm8, %v4401_v61, %v1766_v42  ;;  %v1870_v13 = vsel %vm1868_vm10, %v4401_v61, %v1766_v42  ;;  %v1487_v42 = vpack.c.bf16 %v1484_v16, %v4974_v8  ;;  %v5050_v8 = vld [vmem:[%s4791_s19] sm:$0x7] }
 0x1ed   : > { %v1771_v14 = vsel %vm1764_vm11, %v1767_v12, %v1770_v0  ;;  %v1874_v15 = vsel %vm1867_vm12, %v1870_v13, %v1873_v10  ;;  %v1488_v0 = vpack.c.bf16 %v1486_v41, %v5007_v20  ;;  %v5038_v10 = vld [vmem:[%s5536_s2] sm:$0xff]   ;;  %v2079_v12 = vmul.f32 2.9, %v5050_v8 }
 0x1ee   : > { %v1772_v22 = vsel %vm1761_vm13, nan, %v1771_v14  ;;  %v1875_v24 = vsel %vm1761_vm13, nan, %v1874_v15  ;;  %v5054_v13 = vld [vmem:[%s4780_s10] sm:$0x7] }
 0x1ef   : > { %1876 = vst [vmem:[#allocation2 + $0x3] sm:$0x7] %v1772_v22  ;;  %1877 = vst [vmem:[#allocation2 + $0xf] sm:$0x7] %v1875_v24  ;;  %v1878_v26 = vmul.f32 2.0, %v1772_v22  ;;  %v5057_v14 = vadd.f32 %v5054_v13, %v2079_v12 }
 0x1f1   : > { %v1879_v27 = vmul.f32 %v1878_v26, %v1875_v24  ;;  %v1880_v28 = vmul.f32 %v1878_v26, %v1772_v22  ;;  %v2085_v16 = vand.u32 2139095040, %v5057_v14  ;;  %vm2084_vm8 = vcmp.lt.s32.totalorder %v5057_v14, 0 }
 0x1f3   : > { %v1881_v29 = vsub.f32 1.0, %v1880_v28  ;;  %v1884_v30 = vmul.f32 2.0, %v1879_v27  ;;  %1882 = vst [vmem:[#allocation2 + $0x6] sm:$0x7] %v1879_v27  ;;  %v2086_v20 = vshrl.u32 %v2085_v16, 23 }
 0x1f5   : > { %1883 = vst [vmem:[#allocation2 + $0x12] sm:$0x7] %v1881_v29  ;;  %v1885_v39 = vmul.f32 %v1884_v30, %v1881_v29  ;;  %v1886_v31 = vmul.f32 %v1884_v30, %v1879_v27  ;;  %v3940_v22 = vadd.s32 4294967169, %v2086_v20 }
 0x1f7   : > { %v1887_v33 = vsub.f32 1.0, %v1886_v31  ;;  %1888 = vst [vmem:[#allocation2 + $0x9] sm:$0x7] %v1885_v39  ;;  %v1890_v34 = vmul.f32 2.0, %v1885_v39  ;;  %v2092_v24 = vadd.s32 1, %v3940_v22 }
 0x1f9   : > { %1889 = vst [vmem:[#allocation2 + $0x15] sm:$0x7] %v1887_v33  ;;  %v1891_v37 = vmul.f32 %v1890_v34, %v1887_v33  ;;  %v1892_v38 = vmul.f32 %v1890_v34, %v1885_v39  ;;  %vm2093_vm14 = vcmp.gt.s32.totalorder %v2092_v24, 0 }
 0x1fa   : > { %v5059_v15 = vld [vmem:[#allocation2] sm:$0xff]  ;;  %v2094_v27 = vsel %vm2093_vm14, %v2092_v24, 0 }
 0x1fb   : > { %v1893_v40 = vsub.f32 1.0, %v1892_v38  ;;  %1894 = vst [vmem:[#allocation2 + $0xc] sm:$0x7] %v1891_v37  ;;  %2081 = vst [vmem:[#allocation2] sm:$0x7] %v5057_v14  ;;  %v2096_v28 = vand.u32 31, %v2094_v27 }
 0x1fc   : > { %v2095_v30 = vshrl.u32 %v2094_v27, 5 }
 0x1fd   : > { %1895 = vst [vmem:[#allocation2 + $0x18] sm:$0x7] %v1893_v40  ;;  %v2097_v39 = vsub.s32 32, %v2096_v28  ;;  %v2099_v31 = vshll.u32 %v4613_v17, %v2096_v28  ;;  %v2102_v33 = vshll.u32 %v4614_v19, %v2096_v28  ;;  %v2105_v34 = vshll.u32 %v4615_v21, %v2096_v28 }
 0x1fe   : > { %v2108_v37 = vshll.u32 %v4616_v23, %v2096_v28  ;;  %v2111_v38 = vshll.u32 %v4617_v25, %v2096_v28  ;;  %vm2114_vm15 = vcmp.lt.s32.totalorder %v2095_v30, 1  ;;  %vm2117_vm1 = vcmp.lt.s32.totalorder %v2095_v30, 4 }
 0x1ff   : > { %v2098_v40 = vshrl.u32 %v4613_v17, %v2097_v39  ;;  %v2100_v41 = vshrl.u32 %v4614_v19, %v2097_v39  ;;  %vm2115_vm3 = vcmp.lt.s32.totalorder %v2095_v30, 2  ;;  %vm2116_vm4 = vcmp.lt.s32.totalorder %v2095_v30, 3 }
 0x26d   : > { %v4103_v43 = vpop.f32.mrb[0].mxu1 }
 0x26e   : > { %v763_v44 = vadd.f32 %v4103_v43, %v5009_v35  ;;  %v754_v45 = vpop.f32.mrb[1].mxu1  ;;  %v2103_v43 = vshrl.u32 %v4615_v21, %v2097_v39 }
 0x26f   : > { %v755_v2 = vadd.f32 %v754_v45, %v5011_v4  ;;  %v4104_v46 = vpop.f32.mrb[2].mxu1  ;;  %v2109_v45 = vshrl.u32 %v4617_v25, %v2097_v39 }
 0x270   : > { %v766_v47 = vadd.f32 %v4104_v46, %v5013_v18  ;;  %v757_v48 = vpop.f32.mrb[3].mxu1  ;;  %v771_v50 = vmax.f32 %v763_v44, 0.0  ;;  %v2106_v44 = vshrl.u32 %v4616_v23, %v2097_v39 }
 0x271   : > { %v758_v49 = vadd.f32 %v757_v48, %v5017_v1  ;;  %v769_v51 = vmax.f32 %v755_v2, 0.0  ;;  %v2112_v2 = vshrl.u32 %v4618_v32, %v2097_v39  ;;  %v2104_v48 = vor.u32 %v2103_v43, %v2102_v33 }
 0x272   : > { %v772_v11 = vmax.f32 %v766_v47, 0.0  ;;  %v2101_v47 = vor.u32 %v2100_v41, %v2099_v31 }
 0x273   : > { %v770_v52 = vmax.f32 %v758_v49, 0.0  ;;  %v2107_v49 = vor.u32 %v2106_v44, %v2105_v34 }
 0x274   : > { %v774_v53 = vpack.c.bf16 %v772_v11, %v771_v50  ;;  %v2110_v50 = vor.u32 %v2109_v45, %v2108_v37  ;;  %v2113_v11 = vor.u32 %v2112_v2, %v2111_v38 }
 0x275   : > { %v773_v54 = vpack.c.bf16 %v770_v52, %v769_v51  ;;  %v4119_v5 = vpop.f32.mrb[4].mxu1  ;;  %v2118_v51 = vsel %vm2114_vm15, %v2098_v40, %v2101_v47  ;;  %v2119_v52 = vsel %vm2117_vm1, %v2107_v49, 2102212464 }
 0x276   : > { %v1130_v55 = vmax.f32 %v4119_v5, 0.0  ;;  %v1113_v56 = vpop.f32.mrb[5].mxu1  ;;  %v2120_v5 = vsel %vm2116_vm4, %v2104_v48, %v2119_v52 }
 0x277   : > { %4106 = vmatpush3.bf16.msra.mxu0 %v773_v54  ;;  %v4120_v57 = vpop.f32.mrb[6].mxu1  ;;  %v1128_v59 = vmax.f32 %v1113_v56, 0.0  ;;  %v2126_v54 = vsel %vm2114_vm15, %v2104_v48, %v2107_v49  ;;  %v2127_v56 = vsel %vm2117_vm1, %v2113_v11, 1326507024 }
 0x278   : > { %v1131_v7 = vmax.f32 %v4120_v57, 0.0  ;;  %v1116_v58 = vpop.f32.mrb[7].mxu1  ;;  %4107 = vmatprep.subr.bf16.mxu0 %v4620_v3 }
 0x279   : > { %v1129_v60 = vmax.f32 %v1116_v58, 0.0  ;;  %v2121_v58 = vsel %vm2115_vm3, %v2118_v51, %v2120_v5 }
 0x27a   : > { %v1133_v61 = vpack.c.bf16 %v1131_v7, %v1130_v55  ;;  %v2123_v55 = vsel %vm2117_vm1, %v2110_v50, 920167782  ;;  %v2128_v7 = vsel %vm2116_vm4, %v2110_v50, %v2127_v56 }
 0x27b   : > { %v1132_v63 = vpack.c.bf16 %v1129_v60, %v1128_v59  ;;  %4108 = vmatpush3.bf16.msra.mxu0 %v774_v53  ;;  %v2122_v53 = vsel %vm2114_vm15, %v2101_v47, %v2104_v48  ;;  %v2124_v57 = vsel %vm2116_vm4, %v2107_v49, %v2123_v55  ;;  %v2129_v60 = vsel %vm2115_vm3, %v2126_v54, %v2128_v7 }
 0x27c   : > { %v2125_v59 = vsel %vm2115_vm3, %v2122_v53, %v2124_v57  ;;  %vm2174_vm3 = vweird.f32 %v5057_v14 }
 0x27d   : > { %4121 = vmatprep.subr.bf16.mxu0 %v1132_v63 }
 0x27e   : > { %4110 = vmatmul.mubr.msk.bf16.vlgmr.msra.gmra.mrb[4].mxu0 %vm713_vm5, %v5025_v6 }
 0x27f   : > { %4122 = vmatpush3.bf16.msra.mxu0 %v1132_v63  ;;  %4125 = vmatprep.mubr.msk.bf16.mxu0 %vm713_vm5, %v4894_v62  ;;  %v1490_v62 = vsel %vm644_vm2, %v1488_v0, 0 }
 0x280   : > { %4123 = vmatprep.subr.bf16.mxu0 %v1133_v61 }
 0x283   : > { %4124 = vmatpush3.bf16.msra.mxu0 %v1133_v61 }
 0x284   : > { %4137 = vmatprep.subr.bf16.mxu0 %v1487_v42 }
 0x286   : > { %4126 = vmatmul.mubr.msk.bf16.vlgmr.msra.gmra.mrb[8].mxu0 %vm713_vm5, %v4954_v36 }
 0x287   : > { %4138 = vmatpush3.bf16.msra.mxu0 %v1487_v42  ;;  %4141 = vmatprep.mubr.msk.bf16.mxu0 %vm637_vm0, %v5038_v10 }
 0x288   : > { %4283 = vmatprep.subr.msk.bf16.mxu0 %vm644_vm2, %v1488_v0 }
 0x28b   : > { %4140 = vmatpush3.bf16.msra.mxu0 %v1490_v62 }
 0x28c   : > { %4153 = vmatprep.subr.bf16.mxu0 %v4620_v3 }
 0x28e   : > { %4142 = vmatmul.mubr.msk.bf16.vlgmr.msra.gmra.mrb[12].mxu0 %vm637_vm0, %v4850_v9  ;;  %v2082_v9 = vand.u32 2147483647, %v5057_v14 }
 0x28f   : > { %4157 = vmatprep.mubr.msk.bf16.mxu0 %vm4621_vm9, %v4620_v3 }
 0x290   : > { %v2089_v26 = vand.u32 8388607, %v2082_v9  ;;  %vm2083_vm10 = vcmp.le.f32.partialorder %v2082_v9, 0.7853982 }
 0x292   : > { %v2090_v29 = vor.u32 8388608, %v2089_v26 }
 0x294   : > { %v2130_v46 = vshll.u32 %v2090_v29, 8 }
 0x296   : > { %v5077_v61 = vmul.u32.u64.low %v2130_v46, %v2129_v60  ;;  %v5078_v63 = vmul.u32.u64.high %v2130_v46, %v2129_v60, %v5077_v61  ;;  %v5080_v42 = vmul.u32.u64.low %v2130_v46, %v2125_v59  ;;  %v5081_v0 = vmul.u32.u64.high %v2130_v46, %v2125_v59, %v5080_v42 }
 0x297   : > { %v2137_v62 = vmul.u32 %v2130_v46, %v2121_v58 }
 0x298   : > { %vm2139_vm6 = vc.u32 %v5078_v63, %v5080_v42  ;;  %v2140_v12 = vadd.s32 1, %v5081_v0  ;;  %v2138_v31 = vadd.s32 %v5080_v42, %v5078_v63  ;;  %v1897_v42 = vld [vmem:[#allocation2 + $0x8] sm:$0xff] }
 0x29a   : > { %v2141_v16 = vsel %vm2139_vm6, %v2140_v12, %v5081_v0  ;;  %v5092_v0 = vld [vmem:[#allocation2 + $0x10] sm:$0xff] }
 0x29b   : > { %v2142_v20 = vadd.s32 %v2141_v16, %v2137_v62 }
 0x29d   : > { %v2143_v22 = vadd.s32 536870912, %v2142_v20 }
 0x29f   : > { %v2144_v24 = vshrl.u32 %v2143_v22, 30 }
 0x2a1   : > { %v2145_v26 = vshll.u32 %v2144_v24, 30  ;;  %v2168_v47 = vsub.s32 4, %v2144_v24 }
 0x2a3   : > { %v2146_v27 = vsub.s32 %v2142_v20, %v2145_v26  ;;  %v2169_v50 = vsel %vm2084_vm8, %v2168_v47, %v2144_v24 }
 0x2a4   : > { %v2171_v52 = vsel %vm2083_vm10, 0, %v2169_v50 }
 0x2a5   : > { %v2148_v28 = vsub.s32 0, %v2146_v27  ;;  %v2175_v53 = vadd.s32 3, %v2171_v52  ;;  %v2279_v5 = vand.u32 3, %v2171_v52 }
 0x2a7   : > { %v3941_v29 = vmin.u32 %v2148_v28, %v2146_v27  ;;  %v2176_v54 = vand.u32 3, %v2175_v53  ;;  %vm2284_vm12 = vcmp.eq.s32.totalorder %v2279_v5, 2  ;;  %vm2281_vm14 = vcmp.eq.s32.totalorder %v2279_v5, 0 }
 0x2a8   : > { %vm2280_vm1 = vcmp.lt.s32.totalorder %v2279_v5, 2 }
 0x2a9   : > { %v2150_v30 = vclz %v3941_v29  ;;  %vm2181_vm11 = vcmp.eq.s32.totalorder %v2176_v54, 2  ;;  %vm2178_vm13 = vcmp.eq.s32.totalorder %v2176_v54, 0  ;;  %vm2177_vm15 = vcmp.lt.s32.totalorder %v2176_v54, 2 }
 0x2ab   : > { %v3942_v39 = vadd.s32 4294967294, %v2150_v30 }
 0x2ad   : > { %vm3943_vm7 = vcmp.lt.s32.totalorder %v3942_v39, 0 }
 0x2ae   : > { %v2153_v33 = vsel %vm3943_vm7, 0, %v3942_v39 }
 0x2af   : > { %v2154_v34 = vsub.s32 32, %v2153_v33  ;;  %v2155_v37 = vshll.u32 %v2146_v27, %v2153_v33  ;;  %v2158_v38 = vsub.s32 4294967266, %v2153_v33 }
 0x2b1   : > { %v2156_v40 = vshrl.u32 %v2138_v31, %v2154_v34  ;;  %v2159_v41 = vadd.s32 127, %v2158_v38 }
 0x2b3   : > { %v2157_v43 = vor.u32 %v2156_v40, %v2155_v37  ;;  %v2160_v44 = vshll.u32 %v2159_v41, 23  ;;  %v1899_v40 = vld [vmem:[#allocation2 + $0x18] sm:$0xf] }
 0x2b5   : > { %v2161_v45 = vor.u32 4788187, %v2160_v44  ;;  %v2164_v2 = vcvt.s32.f32 %v2157_v43 }
 0x2b7   : > { %v2162_v46 = vand.u32 2147483647, %v2161_v45 }
 0x2b9   : > { %v2165_v48 = vmul.f32 %v2164_v2, %v2162_v46 }
 0x2bb   : > { %v2166_v49 = vxor.u32 2147483648, %v2165_v48 }
 0x2bd   : > { %v2167_v11 = vsel %vm2084_vm8, %v2166_v49, %v2165_v48 }
 0x2be   : > { %v2170_v51 = vsel %vm2083_vm10, %v5057_v14, %v2167_v11 }
 0x2bf   : > { %4404 = vcosq.f32 %v2170_v51 }
 0x2c0   : > { %4406 = vsinq.f32 %v2170_v51 }
 0x2c9   : > { %v4405_v55 = vpop.eup %4404 }
 0x2ca   : > { %v4407_v56 = vpop.eup %4406  ;;  %v2182_v57 = vxor.u32 2147483648, %v4405_v55 }
 0x2cb   : > { %v2179_v9 = vxor.u32 2147483648, %v4407_v56 }
 0x2cc   : > { %v2183_v7 = vsel %vm2181_vm11, %v2182_v57, %v4407_v56  ;;  %v2286_v58 = vsel %vm2284_vm12, %v2182_v57, %v4407_v56 }
 0x2cd   : > { %v2180_v59 = vsel %vm2178_vm13, %v4405_v55, %v2179_v9  ;;  %v2283_v60 = vsel %vm2281_vm14, %v4405_v55, %v2179_v9 }
 0x2ce   : > { %v2184_v61 = vsel %vm2177_vm15, %v2180_v59, %v2183_v7  ;;  %v2287_v63 = vsel %vm2280_vm1, %v2283_v60, %v2286_v58 }
 0x2cf   : > { %v2185_v62 = vsel %vm2174_vm3, nan, %v2184_v61  ;;  %v2288_v12 = vsel %vm2174_vm3, nan, %v2287_v63  ;;  %v5106_v61 = vld [vmem:[%s5537_s3] sm:$0xff]   ;;  %v1900_v63 = vpack.c.bf16 %v1897_v42, %v5059_v15  ;;  %v5122_v15 = vld [vmem:[%s5536_s2 + $0x8] sm:$0xff]  }
 0x2d0   : > { %v2291_v16 = vmul.f32 2.0, %v2185_v62  ;;  %2289 = vst [vmem:[#allocation2 + $0x3] sm:$0x7] %v2185_v62  ;;  %2290 = vst [vmem:[#allocation2 + $0xf] sm:$0x7] %v2288_v12 }
 0x2d2   : > { %v2292_v20 = vmul.f32 %v2291_v16, %v2288_v12  ;;  %v2293_v22 = vmul.f32 %v2291_v16, %v2185_v62  ;;  %v1901_v62 = vpack.c.bf16 %v1899_v40, %v5092_v0 }
 0x2d4   : > { %v2294_v24 = vsub.f32 1.0, %v2293_v22  ;;  %v2297_v26 = vmul.f32 2.0, %v2292_v20  ;;  %2295 = vst [vmem:[#allocation2 + $0x6] sm:$0x7] %v2292_v20  ;;  %v1903_v12 = vsel %vm644_vm2, %v1901_v62, 0 }
 0x2d6   : > { %v2298_v14 = vmul.f32 %v2297_v26, %v2294_v24  ;;  %v2299_v27 = vmul.f32 %v2297_v26, %v2292_v20  ;;  %2296 = vst [vmem:[#allocation2 + $0x12] sm:$0x7] %v2294_v24 }
 0x2d8   : > { %v2300_v30 = vsub.f32 1.0, %v2299_v27  ;;  %v2303_v39 = vmul.f32 2.0, %v2298_v14  ;;  %2301 = vst [vmem:[#allocation2 + $0x9] sm:$0x7] %v2298_v14 }
 0x2da   : > { %v2304_v34 = vmul.f32 %v2303_v39, %v2300_v30  ;;  %v2305_v37 = vmul.f32 %v2303_v39, %v2298_v14  ;;  %2302 = vst [vmem:[#allocation2 + $0x15] sm:$0x7] %v2300_v30 }
 0x2db   : > { %v5132_v0 = vld [vmem:[#allocation2] sm:$0xff] }
 0x2dc   : > { %v2306_v38 = vsub.f32 1.0, %v2305_v37  ;;  %2307 = vst [vmem:[#allocation2 + $0xc] sm:$0x7] %v2304_v34 }
 0x2de   : > { %2308 = vst [vmem:[#allocation2 + $0x18] sm:$0x7] %v2306_v38 }
 0x351   : > { %v5094_v28 = vpop.f32.mrb[4].mxu0 }
 0x352   : > { %v4111_v29 = vpop.f32.mrb[5].mxu0 }
 0x353   : > { %v815_v31 = vpop.f32.mrb[6].mxu0 }
 0x354   : > { %v4112_v33 = vpop.f32.mrb[7].mxu0 }
 0x359   : > { %v4127_v41 = vpop.f32.mrb[8].mxu0 }
 0x35a   : > { %v1177_v43 = vadd.f32 %v4127_v41, %v5009_v35  ;;  %v1168_v44 = vpop.f32.mrb[9].mxu0 }
 0x35b   : > { %v1169_v45 = vadd.f32 %v1168_v44, %v5011_v4  ;;  %v4128_v2 = vpop.f32.mrb[10].mxu0 }
 0x35c   : > { %v1180_v46 = vadd.f32 %v4128_v2, %v5013_v18  ;;  %v1171_v47 = vpop.f32.mrb[11].mxu0  ;;  %v1185_v49 = vmax.f32 %v1177_v43, 0.0 }
 0x35d   : > { %v1172_v48 = vadd.f32 %v1171_v47, %v5017_v1  ;;  %v1183_v11 = vmax.f32 %v1169_v45, 0.0 }
 0x35e   : > { %v1186_v50 = vmax.f32 %v1180_v46, 0.0 }
 0x35f   : > { %v1184_v51 = vmax.f32 %v1172_v48, 0.0 }
 0x360   : > { %v1188_v52 = vpack.c.bf16 %v1186_v50, %v1185_v49 }
 0x361   : > { %v1187_v53 = vpack.c.bf16 %v1184_v51, %v1183_v11  ;;  %v4143_v54 = vpop.f32.mrb[12].mxu0 }
 0x362   : > { %v1543_v5 = vmax.f32 %v4143_v54, 0.0  ;;  %v1526_v55 = vpop.f32.mrb[13].mxu0 }
 0x363   : > { %4130 = vmatpush3.bf16.msra.mxu1 %v1187_v53  ;;  %v4144_v56 = vpop.f32.mrb[14].mxu0  ;;  %v1541_v7 = vmax.f32 %v1526_v55, 0.0 }
 0x364   : > { %v1544_v57 = vmax.f32 %v4144_v56, 0.0  ;;  %v1529_v9 = vpop.f32.mrb[15].mxu0  ;;  %4131 = vmatprep.subr.bf16.mxu1 %v4620_v3 }
 0x365   : > { %v1542_v58 = vmax.f32 %v1529_v9, 0.0 }
 0x366   : > { %v1546_v59 = vpack.c.bf16 %v1544_v57, %v1543_v5 }
 0x367   : > { %v1545_v60 = vpack.c.bf16 %v1542_v58, %v1541_v7  ;;  %4132 = vmatpush3.bf16.msra.mxu1 %v1188_v52 }
 0x369   : > { %4145 = vmatprep.subr.bf16.mxu1 %v1545_v60 }
 0x36a   : > { %4134 = vmatmul.mubr.msk.bf16.vlgmr.msra.gmra.mrb[8].mxu1 %vm713_vm5, %v5025_v6 }
 0x36b   : > { %4146 = vmatpush3.bf16.msra.mxu1 %v1545_v60  ;;  %4149 = vmatprep.mubr.msk.bf16.mxu1 %vm713_vm5, %v5106_v61 }
 0x36c   : > { %4147 = vmatprep.subr.bf16.mxu1 %v1546_v59 }
 0x36f   : > { %4148 = vmatpush3.bf16.msra.mxu1 %v1546_v59 }
 0x370   : > { %4161 = vmatprep.subr.bf16.mxu1 %v1900_v63 }
 0x372   : > { %4150 = vmatmul.mubr.msk.bf16.vlgmr.msra.gmra.mrb[12].mxu1 %vm713_vm5, %v4954_v36  ;;  %v2492_v36 = vmul.f32 3.6, %v5050_v8 }
 0x373   : > { %4162 = vmatpush3.bf16.msra.mxu1 %v1900_v63  ;;  %4165 = vmatprep.mubr.msk.bf16.mxu1 %vm637_vm0, %v5038_v10 }
 0x374   : > { %4284 = vmatprep.subr.msk.bf16.mxu1 %vm644_vm2, %v1901_v62  ;;  %v5130_v42 = vadd.f32 %v5054_v13, %v2492_v36 }
 0x376   : > { %v2498_v16 = vand.u32 2139095040, %v5130_v42  ;;  %2494 = vst [vmem:[#allocation2] sm:$0x7] %v5130_v42  ;;  %v2495_v22 = vand.u32 2147483647, %v5130_v42  ;;  %vm2497_vm13 = vcmp.lt.s32.totalorder %v5130_v42, 0 }
 0x377   : > { %4164 = vmatpush3.bf16.msra.mxu1 %v1903_v12 }
 0x378   : > { %4177 = vmatprep.subr.bf16.mxu1 %v4620_v3  ;;  %v2499_v20 = vshrl.u32 %v2498_v16, 23  ;;  %v2502_v14 = vand.u32 8388607, %v2495_v22  ;;  %vm2496_vm14 = vcmp.le.f32.partialorder %v2495_v22, 0.7853982 }
 0x37a   : > { %4166 = vmatmul.mubr.msk.bf16.vlgmr.msra.gmra.mrb[16].mxu1 %vm637_vm0, %v5122_v15  ;;  %v3954_v24 = vadd.s32 4294967169, %v2499_v20  ;;  %v2503_v30 = vor.u32 8388608, %v2502_v14 }
 0x37b   : > { %4181 = vmatprep.mubr.msk.bf16.mxu1 %vm4621_vm9, %v4620_v3 }
 0x37c   : > { %v2505_v26 = vadd.s32 1, %v3954_v24  ;;  %v2543_v47 = vshll.u32 %v2503_v30, 8 }
 0x37e   : > { %vm2506_vm4 = vcmp.gt.s32.totalorder %v2505_v26, 0 }
 0x37f   : > { %v2507_v27 = vsel %vm2506_vm4, %v2505_v26, 0 }
 0x380   : > { %v2509_v29 = vand.u32 31, %v2507_v27  ;;  %v2508_v39 = vshrl.u32 %v2507_v27, 5 }
 0x382   : > { %v2510_v31 = vsub.s32 32, %v2509_v29  ;;  %v2512_v33 = vshll.u32 %v4613_v17, %v2509_v29  ;;  %v2515_v34 = vshll.u32 %v4614_v19, %v2509_v29  ;;  %v2518_v37 = vshll.u32 %v4615_v21, %v2509_v29 }
 0x383   : > { %v2521_v38 = vshll.u32 %v4616_v23, %v2509_v29  ;;  %v2524_v40 = vshll.u32 %v4617_v25, %v2509_v29  ;;  %vm2527_vm6 = vcmp.lt.s32.totalorder %v2508_v39, 1  ;;  %vm2530_vm7 = vcmp.lt.s32.totalorder %v2508_v39, 4 }
 0x384   : > { %v2511_v41 = vshrl.u32 %v4613_v17, %v2510_v31  ;;  %v2513_v43 = vshrl.u32 %v4614_v19, %v2510_v31  ;;  %v2516_v44 = vshrl.u32 %v4615_v21, %v2510_v31  ;;  %v2519_v45 = vshrl.u32 %v4616_v23, %v2510_v31 }
 0x385   : > { %v2522_v2 = vshrl.u32 %v4617_v25, %v2510_v31  ;;  %v2525_v46 = vshrl.u32 %v4618_v32, %v2510_v31  ;;  %vm2528_vm8 = vcmp.lt.s32.totalorder %v2508_v39, 2  ;;  %vm2529_vm10 = vcmp.lt.s32.totalorder %v2508_v39, 3 }
 0x386   : > { %v2514_v48 = vor.u32 %v2513_v43, %v2512_v33  ;;  %v2517_v49 = vor.u32 %v2516_v44, %v2515_v34  ;;  %v2520_v50 = vor.u32 %v2519_v45, %v2518_v37 }
 0x387   : > { %v2523_v11 = vor.u32 %v2522_v2, %v2521_v38  ;;  %v2526_v51 = vor.u32 %v2525_v46, %v2524_v40 }
 0x388   : > { %v2531_v52 = vsel %vm2527_vm6, %v2511_v41, %v2514_v48  ;;  %v2532_v53 = vsel %vm2530_vm7, %v2520_v50, 2102212464  ;;  %v2535_v54 = vsel %vm2527_vm6, %v2514_v48, %v2517_v49  ;;  %v2539_v5 = vsel %vm2527_vm6, %v2517_v49, %v2520_v50 }
 0x389   : > { %v2533_v55 = vsel %vm2529_vm10, %v2517_v49, %v2532_v53  ;;  %v2536_v56 = vsel %vm2530_vm7, %v2523_v11, 920167782  ;;  %v2540_v57 = vsel %vm2530_vm7, %v2526_v51, 1326507024 }
 0x38a   : > { %v2537_v9 = vsel %vm2529_vm10, %v2520_v50, %v2536_v56  ;;  %v2541_v7 = vsel %vm2529_vm10, %v2523_v11, %v2540_v57  ;;  %v2534_v58 = vsel %vm2528_vm8, %v2531_v52, %v2533_v55  ;;  %v5164_v56 = vpop.permute.xlu0 %387 }
 0x38b   : > { %v2538_v59 = vsel %vm2528_vm8, %v2535_v54, %v2537_v9  ;;  %v2542_v60 = vsel %vm2528_vm8, %v2539_v5, %v2541_v7  ;;  %v2550_v16 = vmul.u32 %v2543_v47, %v2534_v58  ;;  %v813_v57 = vadd.f32 %v5094_v28, %v5164_v56 }
 0x38c   : > { %v5150_v63 = vmul.u32.u64.low %v2543_v47, %v2542_v60  ;;  %v5151_v62 = vmul.u32.u64.high %v2543_v47, %v2542_v60, %v5150_v63  ;;  %v5153_v12 = vmul.u32.u64.low %v2543_v47, %v2538_v59  ;;  %v5154_v36 = vmul.u32.u64.high %v2543_v47, %v2538_v59, %v5153_v12 }
 0x38d   : > { %v818_v58 = vmax.f32 %v813_v57, 0.0  ;;  %vm2587_vm8 = vweird.f32 %v5130_v42 }
 0x38e   : > { %vm2552_vm11 = vc.u32 %v5151_v62, %v5153_v12  ;;  %v2553_v20 = vadd.s32 1, %v5154_v36  ;;  %v2551_v37 = vadd.s32 %v5153_v12, %v5151_v62 }
 0x38f   : > { %v819_v62 = vsub.f32 0.0, %v818_v58 }
 0x390   : > { %v2554_v24 = vsel %vm2552_vm11, %v2553_v20, %v5154_v36 }
 0x391   : > { %v2555_v26 = vadd.s32 %v2554_v24, %v2550_v16 }
 0x393   : > { %v2556_v14 = vadd.s32 536870912, %v2555_v26 }
 0x395   : > { %v2557_v27 = vshrl.u32 %v2556_v14, 30  ;;  %v5171_v14 = vld [vmem:[#allocation2 + $0x10] sm:$0xff] }
 0x397   : > { %v2558_v29 = vshll.u32 %v2557_v27, 30  ;;  %v2581_v50 = vsub.s32 4, %v2557_v27 }
 0x399   : > { %v2559_v30 = vsub.s32 %v2555_v26, %v2558_v29  ;;  %v2582_v52 = vsel %vm2497_vm13, %v2581_v50, %v2557_v27  ;;  %v5169_v26 = vld [vmem:[#allocation2 + $0x8] sm:$0xff] }
 0x39a   : > { %v2584_v5 = vsel %vm2496_vm14, 0, %v2582_v52 }
 0x39b   : > { %v2561_v39 = vsub.s32 0, %v2559_v30  ;;  %v2588_v55 = vadd.s32 3, %v2584_v5  ;;  %v2692_v7 = vand.u32 3, %v2584_v5 }
 0x39d   : > { %v3955_v31 = vmin.u32 %v2561_v39, %v2559_v30  ;;  %v2589_v9 = vand.u32 3, %v2588_v55  ;;  %vm2697_vm1 = vcmp.eq.s32.totalorder %v2692_v7, 2  ;;  %vm2694_vm4 = vcmp.eq.s32.totalorder %v2692_v7, 0 }
 0x39e   : > { %vm2693_vm7 = vcmp.lt.s32.totalorder %v2692_v7, 2 }
 0x39f   : > { %v2563_v33 = vclz %v3955_v31  ;;  %vm2594_vm15 = vcmp.eq.s32.totalorder %v2589_v9, 2  ;;  %vm2591_vm3 = vcmp.eq.s32.totalorder %v2589_v9, 0  ;;  %vm2590_vm6 = vcmp.lt.s32.totalorder %v2589_v9, 2 }
 0x3a0   : > { %v3897_v31 = vmul.f32 -1.442695, %v813_v57 }
 0x3a1   : > { %v3956_v34 = vadd.s32 4294967294, %v2563_v33 }
 0x3a3   : > { %vm3957_vm12 = vcmp.lt.s32.totalorder %v3956_v34, 0 }
 0x3a4   : > { %v2566_v38 = vsel %vm3957_vm12, 0, %v3956_v34 }
 0x3a5   : > { %v2567_v40 = vsub.s32 32, %v2566_v38  ;;  %v2568_v41 = vshll.u32 %v2559_v30, %v2566_v38  ;;  %v2571_v43 = vsub.s32 4294967266, %v2566_v38  ;;  %v820_v30 = vmul.f32 0.7, %v819_v62 }
 0x3a7   : > { %v2569_v44 = vshrl.u32 %v2551_v37, %v2567_v40  ;;  %v2572_v45 = vadd.s32 127, %v2571_v43 }
 0x3a9   : > { %v2570_v2 = vor.u32 %v2569_v44, %v2568_v41  ;;  %v2573_v46 = vshll.u32 %v2572_v45, 23 }
 0x3ab   : > { %v2574_v47 = vor.u32 4788187, %v2573_v46  ;;  %v2577_v48 = vcvt.s32.f32 %v2570_v2 }
 0x3ad   : > { %v2575_v49 = vand.u32 2147483647, %v2574_v47 }
 0x3af   : > { %v2578_v11 = vmul.f32 %v2577_v48, %v2575_v49 }
 0x3b1   : > { %v2579_v51 = vxor.u32 2147483648, %v2578_v11 }
 0x3b3   : > { %v2580_v53 = vsel %vm2497_vm13, %v2579_v51, %v2578_v11 }
 0x3b4   : > { %v2583_v54 = vsel %vm2496_vm14, %v5130_v42, %v2580_v53  ;;  %v821_v42 = vmul.f32 1.442695, %v820_v30  ;;  %v830_v30 = vlaneseq }
 0x3b5   : > { %4408 = vcosq.f32 %v2583_v54 }
 0x3b6   : > { %4410 = vsinq.f32 %v2583_v54  ;;  %v5174_v54 = vld [vmem:[#allocation2 + $0x18] sm:$0xf] }
 0x3b7   : > { %4412 = vpow2.f32 %v3897_v31 }
 0x3b8   : > { %4414 = vpow2.f32 %v821_v42 }
 0x3bf   : > { %v4409_v59 = vpop.eup %4408 }
 0x3c0   : > { %v4411_v22 = vpop.eup %4410  ;;  %v2595_v60 = vxor.u32 2147483648, %v4409_v59 }
 0x3c1   : > { %v2592_v63 = vxor.u32 2147483648, %v4411_v22  ;;  %v4413_v57 = vpop.eup %4412 }
 0x3c2   : > { %v2596_v12 = vsel %vm2594_vm15, %v2595_v60, %v4411_v22  ;;  %v2699_v36 = vsel %vm2697_vm1, %v2595_v60, %v4411_v22  ;;  %v4415_v60 = vpop.eup %4414 }
 0x3c3   : > { %v2593_v16 = vsel %vm2591_vm3, %v4409_v59, %v2592_v63  ;;  %v2696_v28 = vsel %vm2694_vm4, %v4409_v59, %v2592_v63 }
 0x3c4   : > { %v2597_v20 = vsel %vm2590_vm6, %v2593_v16, %v2596_v12  ;;  %v2700_v24 = vsel %vm2693_vm7, %v2696_v28, %v2699_v36  ;;  %v827_v12 = vadd.f32 1.0, %v4413_v57 }
 0x3c5   : > { %v2598_v27 = vsel %vm2587_vm8, nan, %v2597_v20  ;;  %v2701_v29 = vsel %vm2587_vm8, nan, %v2700_v24  ;;  %v823_v20 = vsub.f32 1.0, %v4415_v60 }
 0x3c6   : > { %v2704_v39 = vmul.f32 2.0, %v2598_v27  ;;  %2702 = vst [vmem:[#allocation2 + $0x3] sm:$0x7] %v2598_v27  ;;  %2703 = vst [vmem:[#allocation2 + $0xf] sm:$0x7] %v2701_v29 }
 0x3c8   : > { %v2705_v33 = vmul.f32 %v2704_v39, %v2701_v29  ;;  %v2706_v34 = vmul.f32 %v2704_v39, %v2598_v27 }
 0x3ca   : > { %v2707_v37 = vsub.f32 1.0, %v2706_v34  ;;  %v2710_v38 = vmul.f32 2.0, %v2705_v33  ;;  %2708 = vst [vmem:[#allocation2 + $0x6] sm:$0x7] %v2705_v33 }
 0x3cc   : > { %v2711_v40 = vmul.f32 %v2710_v38, %v2707_v37  ;;  %v2712_v41 = vmul.f32 %v2710_v38, %v2705_v33  ;;  %2709 = vst [vmem:[#allocation2 + $0x12] sm:$0x7] %v2707_v37  ;;  %v838_v38 = vsub.f32 1.0, %v823_v20 }
 0x3ce   : > { %v2713_v2 = vsub.f32 1.0, %v2712_v41  ;;  %v2716_v46 = vmul.f32 2.0, %v2711_v40  ;;  %2714 = vst [vmem:[#allocation2 + $0x9] sm:$0x7] %v2711_v40  ;;  %v831_v41 = vshrl.u32 %v830_v30, 7 }
 0x3d0   : > { %v2717_v11 = vmul.f32 %v2716_v46, %v2713_v2  ;;  %v2718_v51 = vmul.f32 %v2716_v46, %v2711_v40  ;;  %2715 = vst [vmem:[#allocation2 + $0x15] sm:$0x7] %v2713_v2 }
 0x3d2   : > { %v2719_v53 = vsub.f32 1.0, %v2718_v51  ;;  %2720 = vst [vmem:[#allocation2 + $0xc] sm:$0x7] %v2717_v11  ;;  %v5181_v11 = vsub.s32 3, %v831_v41 }
 0x3d4   : > { %2721 = vst [vmem:[#allocation2 + $0x18] sm:$0x7] %v2719_v53 }
 0x43d   : > { %v1223_v43 = vpop.f32.mrb[8].mxu1 }
 0x43e   : > { %v1224_v44 = vadd.f32 %v1223_v43, %v5164_v56  ;;  %v4135_v45 = vpop.f32.mrb[9].mxu1 }
 0x43f   : > { %v1226_v47 = vpop.f32.mrb[10].mxu1 }
 0x440   : > { %v1229_v48 = vmax.f32 %v1224_v44, 0.0  ;;  %v3911_v49 = vmul.f32 -1.442695, %v1224_v44  ;;  %v4136_v50 = vpop.f32.mrb[11].mxu1 }
 0x442   : > { %v1230_v52 = vsub.f32 0.0, %v1229_v48  ;;  %4416 = vpow2.f32 %v3911_v49  ;;  %v839_v48 = vadd.f32 1e-10, %v838_v38 }
 0x444   : > { %v1231_v5 = vmul.f32 0.7, %v1230_v52 }
 0x445   : > { %v4151_v55 = vpop.f32.mrb[12].mxu1 }
 0x446   : > { %v1232_v9 = vmul.f32 1.442695, %v1231_v5  ;;  %v1590_v7 = vadd.f32 %v4151_v55, %v5009_v35  ;;  %v1581_v58 = vpop.f32.mrb[13].mxu1  ;;  %v836_v5 = vmul.f32 0.1, %v823_v20 }
 0x447   : > { %v1582_v59 = vadd.f32 %v1581_v58, %v5011_v4  ;;  %v4152_v22 = vpop.f32.mrb[14].mxu1  ;;  %v2313_v58 = vpack.c.bf16 %v5169_v26, %v5132_v0  ;;  %v2905_v26 = vmul.f32 4.3, %v5050_v8 }
 0x448   : > { %4418 = vpow2.f32 %v1232_v9  ;;  %v1593_v63 = vadd.f32 %v4152_v22, %v5013_v18  ;;  %v1584_v62 = vpop.f32.mrb[15].mxu1  ;;  %v1598_v16 = vmax.f32 %v1590_v7, 0.0  ;;  %v833_v7 = vrot.slane %v823_v20, %v5181_v11 }
 0x449   : > { %v1585_v36 = vadd.f32 %v1584_v62, %v5017_v1  ;;  %v1596_v24 = vmax.f32 %v1582_v59, 0.0  ;;  %4420 = vrcp.f32 %v827_v12  ;;  %v2314_v12 = vpack.c.bf16 %v5174_v54, %v5171_v14  ;;  %v5219_v54 = vld [vmem:[#allocation2] sm:$0xff] }
 0x44a   : > { %v1599_v28 = vmax.f32 %v1593_v63, 0.0  ;;  %v5217_v14 = vadd.f32 %v5054_v13, %v2905_v26 }
 0x44b   : > { %v1597_v27 = vmax.f32 %v1585_v36, 0.0  ;;  %v5202_v36 = vld [vmem:[%s5537_s3 + $0x8] sm:$0xff]   ;;  %v2316_v0 = vsel %vm644_vm2, %v2314_v12, 0 }
 0x44c   : > { %v4417_v29 = vpop.eup %4416  ;;  %v1601_v39 = vpack.c.bf16 %v1599_v28, %v1598_v16  ;;  %2907 = vst [vmem:[#allocation2] sm:$0x7] %v5217_v14  ;;  %v2908_v28 = vand.u32 2147483647, %v5217_v14  ;;  %vm2910_vm3 = vcmp.lt.s32.totalorder %v5217_v14, 0 }
 0x44d   : > { %v1239_v31 = vadd.f32 1.0, %v4417_v29  ;;  %v1600_v33 = vpack.c.bf16 %v1597_v27, %v1596_v24  ;;  %v4167_v34 = vpop.f32.mrb[16].mxu1 }
 0x44e   : > { %v1956_v42 = vmax.f32 %v4167_v34, 0.0  ;;  %v1939_v37 = vpop.f32.mrb[17].mxu1  ;;  %v2915_v27 = vand.u32 8388607, %v2908_v28  ;;  %vm2909_vm4 = vcmp.le.f32.partialorder %v2908_v28, 0.7853982 }
 0x44f   : > { %4422 = vrcp.f32 %v1239_v31  ;;  %4154 = vmatpush3.bf16.msra.mxu0 %v1600_v33  ;;  %v4168_v40 = vpop.f32.mrb[18].mxu1  ;;  %v1954_v45 = vmax.f32 %v1939_v37, 0.0 }
 0x450   : > { %v1957_v43 = vmax.f32 %v4168_v40, 0.0  ;;  %v1942_v44 = vpop.f32.mrb[19].mxu1  ;;  %4155 = vmatprep.subr.bf16.mxu0 %v4620_v3  ;;  %v2916_v30 = vor.u32 8388608, %v2915_v27 }
 0x451   : > { %v1955_v2 = vmax.f32 %v1942_v44, 0.0 }
 0x452   : > { %v4419_v46 = vpop.eup %4418  ;;  %v1959_v47 = vpack.c.bf16 %v1957_v43, %v1956_v42 }
 0x453   : > { %v1234_v49 = vsub.f32 1.0, %v4419_v46  ;;  %v1958_v50 = vpack.c.bf16 %v1955_v2, %v1954_v45  ;;  %4156 = vmatpush3.bf16.msra.mxu0 %v1601_v39  ;;  %v4421_v53 = vpop.eup %4420  ;;  %v2956_v2 = vshll.u32 %v2916_v30, 8 }
 0x454   : > { %v834_v60 = vmul.f32 %v4421_v53, %v833_v7 }
 0x455   : > { %v1235_v51 = vmul.f32 %v1234_v49, %v839_v48  ;;  %v1250_v52 = vsub.f32 1.0, %v1234_v49  ;;  %4169 = vmatprep.subr.bf16.mxu0 %v1958_v50 }
 0x456   : > { %4158 = vmatmul.mubr.msk.bf16.vlgmr.msra.gmra.mrb[16].mxu0 %vm713_vm5, %v5025_v6 }
 0x457   : > { %v1245_v55 = vrot.slane %v1235_v51, %v5181_v11  ;;  %v1248_v57 = vmul.f32 0.8, %v1235_v51  ;;  %v1251_v9 = vadd.f32 1e-10, %v1250_v52  ;;  %4170 = vmatpush3.bf16.msra.mxu0 %v1958_v50  ;;  %4173 = vmatprep.mubr.msk.bf16.mxu0 %vm713_vm5, %v5106_v61 }
 0x458   : > { %4171 = vmatprep.subr.bf16.mxu0 %v1959_v47 }
 0x459   : > { %v4423_v59 = vpop.eup %4422  ;;  %v5191_v22 = vadd.f32 %v1248_v57, %v836_v5  ;;  %v5193_v6 = vmul.f32 %v1251_v9, %v839_v48 }
 0x45a   : > { %v1246_v63 = vmul.f32 %v4423_v59, %v1245_v55 }
 0x45b   : > { %4172 = vmatpush3.bf16.msra.mxu0 %v1959_v47 }
 0x45c   : > { %v5195_v62 = vadd.f32 %v1246_v63, %v834_v60  ;;  %4185 = vmatprep.subr.bf16.mxu0 %v2313_v58 }
 0x45e   : > { %4174 = vmatmul.mubr.msk.bf16.vlgmr.msra.gmra.mrb[20].mxu0 %vm713_vm5, %v5202_v36 }
 0x45f   : > { %4186 = vmatpush3.bf16.msra.mxu0 %v2313_v58  ;;  %4189 = vmatprep.mubr.msk.bf16.mxu0 %vm637_vm0, %v5038_v10  ;;  %v2911_v10 = vand.u32 2139095040, %v5217_v14 }
 0x460   : > { %4285 = vmatprep.subr.msk.bf16.mxu0 %vm644_vm2, %v2314_v12 }
 0x461   : > { %v2912_v16 = vshrl.u32 %v2911_v10, 23 }
 0x463   : > { %4188 = vmatpush3.bf16.msra.mxu0 %v2316_v0  ;;  %v3968_v20 = vadd.s32 4294967169, %v2912_v16 }
 0x464   : > { %4201 = vmatprep.subr.bf16.mxu0 %v4620_v3 }
 0x465   : > { %v2918_v24 = vadd.s32 1, %v3968_v20 }
 0x466   : > { %4190 = vmatmul.mubr.msk.bf16.vlgmr.msra.gmra.mrb[24].mxu0 %vm637_vm0, %v5122_v15 }
 0x467   : > { %4205 = vmatprep.mubr.msk.bf16.mxu0 %vm4621_vm9, %v4620_v3  ;;  %vm2919_vm10 = vcmp.gt.s32.totalorder %v2918_v24, 0 }
 0x468   : > { %v2920_v29 = vsel %vm2919_vm10, %v2918_v24, 0 }
 0x469   : > { %v2922_v8 = vand.u32 31, %v2920_v29  ;;  %v2921_v13 = vshrl.u32 %v2920_v29, 5 }
 0x46b   : > { %v2923_v39 = vsub.s32 32, %v2922_v8  ;;  %v2925_v31 = vshll.u32 %v4613_v17, %v2922_v8  ;;  %v2928_v33 = vshll.u32 %v4614_v19, %v2922_v8  ;;  %v2931_v34 = vshll.u32 %v4615_v21, %v2922_v8 }
 0x46c   : > { %v2934_v42 = vshll.u32 %v4616_v23, %v2922_v8  ;;  %v2937_v37 = vshll.u32 %v4617_v25, %v2922_v8  ;;  %vm2940_vm11 = vcmp.lt.s32.totalorder %v2921_v13, 1  ;;  %vm2943_vm12 = vcmp.lt.s32.totalorder %v2921_v13, 4 }
 0x46d   : > { %v2924_v38 = vshrl.u32 %v4613_v17, %v2923_v39  ;;  %v2926_v40 = vshrl.u32 %v4614_v19, %v2923_v39  ;;  %v2929_v41 = vshrl.u32 %v4615_v21, %v2923_v39  ;;  %v2932_v43 = vshrl.u32 %v4616_v23, %v2923_v39 }
 0x46e   : > { %v2935_v44 = vshrl.u32 %v4617_v25, %v2923_v39  ;;  %v2938_v45 = vshrl.u32 %v4618_v32, %v2923_v39  ;;  %vm2941_vm13 = vcmp.lt.s32.totalorder %v2921_v13, 2  ;;  %vm2942_vm14 = vcmp.lt.s32.totalorder %v2921_v13, 3 }
 0x46f   : > { %v2927_v46 = vor.u32 %v2926_v40, %v2925_v31  ;;  %v2930_v47 = vor.u32 %v2929_v41, %v2928_v33  ;;  %v2933_v48 = vor.u32 %v2932_v43, %v2931_v34 }
 0x470   : > { %v2936_v49 = vor.u32 %v2935_v44, %v2934_v42  ;;  %v2939_v50 = vor.u32 %v2938_v45, %v2937_v37 }
 0x471   : > { %v2944_v51 = vsel %vm2940_vm11, %v2924_v38, %v2927_v46  ;;  %v2945_v52 = vsel %vm2943_vm12, %v2933_v48, 2102212464  ;;  %v2948_v53 = vsel %vm2940_vm11, %v2927_v46, %v2930_v47  ;;  %v2952_v5 = vsel %vm2940_vm11, %v2930_v47, %v2933_v48 }
 0x472   : > { %v2946_v55 = vsel %vm2942_vm14, %v2930_v47, %v2945_v52  ;;  %v2949_v57 = vsel %vm2943_vm12, %v2936_v49, 920167782  ;;  %v2953_v9 = vsel %vm2943_vm12, %v2939_v50, 1326507024 }
 0x473   : > { %v2950_v7 = vsel %vm2942_vm14, %v2933_v48, %v2949_v57  ;;  %v2954_v58 = vsel %vm2942_vm14, %v2936_v49, %v2953_v9  ;;  %v2947_v59 = vsel %vm2941_vm13, %v2944_v51, %v2946_v55 }
 0x474   : > { %v2951_v60 = vsel %vm2941_vm13, %v2948_v53, %v2950_v7  ;;  %v2955_v63 = vsel %vm2941_vm13, %v2952_v5, %v2954_v58  ;;  %v2963_v16 = vmul.u32 %v2956_v2, %v2947_v59  ;;  %vm3000_vm13 = vweird.f32 %v5217_v14 }
 0x475   : > { %v5237_v12 = vmul.u32.u64.low %v2956_v2, %v2955_v63  ;;  %v5238_v0 = vmul.u32.u64.high %v2956_v2, %v2955_v63, %v5237_v12  ;;  %v5240_v26 = vmul.u32.u64.low %v2956_v2, %v2951_v60  ;;  %v5241_v10 = vmul.u32.u64.high %v2956_v2, %v2951_v60, %v5240_v26 }
 0x477   : > { %vm2965_vm15 = vc.u32 %v5238_v0, %v5240_v26  ;;  %v2966_v20 = vadd.s32 1, %v5241_v10  ;;  %v2964_v42 = vadd.s32 %v5240_v26, %v5238_v0 }
 0x479   : > { %v2967_v24 = vsel %vm2965_vm15, %v2966_v20, %v5241_v10  ;;  %v5252_v20 = vld [vmem:[#allocation2 + $0x8] sm:$0xff] }
 0x47a   : > { %v2968_v27 = vadd.s32 %v2967_v24, %v2963_v16 }
 0x47c   : > { %v2969_v29 = vadd.s32 536870912, %v2968_v27 }
 0x47e   : > { %v2970_v8 = vshrl.u32 %v2969_v29, 30  ;;  %v5254_v29 = vld [vmem:[#allocation2 + $0x10] sm:$0xff] }
 0x480   : > { %v2971_v30 = vshll.u32 %v2970_v8, 30  ;;  %v2994_v49 = vsub.s32 4, %v2970_v8 }
 0x482   : > { %v2972_v13 = vsub.s32 %v2968_v27, %v2971_v30  ;;  %v2995_v52 = vsel %vm2910_vm3, %v2994_v49, %v2970_v8 }
 0x483   : > { %v2997_v55 = vsel %vm2909_vm4, 0, %v2995_v52 }
 0x484   : > { %v2974_v39 = vsub.s32 0, %v2972_v13  ;;  %v3001_v57 = vadd.s32 3, %v2997_v55  ;;  %v3105_v7 = vand.u32 3, %v2997_v55 }
 0x486   : > { %v3969_v31 = vmin.u32 %v2974_v39, %v2972_v13  ;;  %v3002_v9 = vand.u32 3, %v3001_v57  ;;  %vm3110_vm7 = vcmp.eq.s32.totalorder %v3105_v7, 2  ;;  %vm3107_vm10 = vcmp.eq.s32.totalorder %v3105_v7, 0 }
 0x487   : > { %vm3106_vm12 = vcmp.lt.s32.totalorder %v3105_v7, 2 }
 0x488   : > { %v2976_v33 = vclz %v3969_v31  ;;  %vm3007_vm6 = vcmp.eq.s32.totalorder %v3002_v9, 2  ;;  %vm3004_vm8 = vcmp.eq.s32.totalorder %v3002_v9, 0  ;;  %vm3003_vm11 = vcmp.lt.s32.totalorder %v3002_v9, 2 }
 0x48a   : > { %v3970_v34 = vadd.s32 4294967294, %v2976_v33 }
 0x48c   : > { %vm3971_vm1 = vcmp.lt.s32.totalorder %v3970_v34, 0 }
 0x48d   : > { %v2979_v37 = vsel %vm3971_vm1, 0, %v3970_v34 }
 0x48e   : > { %v2980_v38 = vsub.s32 32, %v2979_v37  ;;  %v2981_v40 = vshll.u32 %v2972_v13, %v2979_v37  ;;  %v2984_v41 = vsub.s32 4294967266, %v2979_v37 }
 0x490   : > { %v2982_v43 = vshrl.u32 %v2964_v42, %v2980_v38  ;;  %v2985_v44 = vadd.s32 127, %v2984_v41 }
 0x492   : > { %v2983_v45 = vor.u32 %v2982_v43, %v2981_v40  ;;  %v2986_v2 = vshll.u32 %v2985_v44, 23 }
 0x494   : > { %v2987_v46 = vor.u32 4788187, %v2986_v2  ;;  %v2990_v47 = vcvt.s32.f32 %v2983_v45 }
 0x496   : > { %v2988_v48 = vand.u32 2147483647, %v2987_v46 }
 0x498   : > { %v2991_v50 = vmul.f32 %v2990_v47, %v2988_v48  ;;  %v2725_v48 = vld [vmem:[#allocation2 + $0x18] sm:$0xf] }
 0x49a   : > { %v2992_v51 = vxor.u32 2147483648, %v2991_v50 }
 0x49c   : > { %v2993_v53 = vsel %vm2910_vm3, %v2992_v51, %v2991_v50 }
 0x49d   : > { %v2996_v5 = vsel %vm2909_vm4, %v5217_v14, %v2993_v53 }
 0x49e   : > { %4424 = vcosq.f32 %v2996_v5 }
 0x49f   : > { %4426 = vsinq.f32 %v2996_v5 }
 0x4a8   : > { %v4425_v58 = vpop.eup %4424 }
 0x4a9   : > { %v4427_v59 = vpop.eup %4426  ;;  %v3008_v60 = vxor.u32 2147483648, %v4425_v58 }
 0x4aa   : > { %v3005_v28 = vxor.u32 2147483648, %v4427_v59 }
 0x4ab   : > { %v3009_v63 = vsel %vm3007_vm6, %v3008_v60, %v4427_v59  ;;  %v3112_v12 = vsel %vm3110_vm7, %v3008_v60, %v4427_v59 }
 0x4ac   : > { %v3006_v0 = vsel %vm3004_vm8, %v4425_v58, %v3005_v28  ;;  %v3109_v26 = vsel %vm3107_vm10, %v4425_v58, %v3005_v28 }
 0x4ad   : > { %v3010_v10 = vsel %vm3003_vm11, %v3006_v0, %v3009_v63  ;;  %v3113_v16 = vsel %vm3106_vm12, %v3109_v26, %v3112_v12 }
 0x4ae   : > { %v3011_v24 = vsel %vm3000_vm13, nan, %v3010_v10  ;;  %v3114_v27 = vsel %vm3000_vm13, nan, %v3113_v16 }
 0x4af   : > { %3115 = vst [vmem:[#allocation2 + $0x3] sm:$0x7] %v3011_v24  ;;  %v3117_v8 = vmul.f32 2.0, %v3011_v24  ;;  %3116 = vst [vmem:[#allocation2 + $0xf] sm:$0x7] %v3114_v27 }
 0x4b1   : > { %v3118_v30 = vmul.f32 %v3117_v8, %v3114_v27  ;;  %v3119_v13 = vmul.f32 %v3117_v8, %v3011_v24 }
 0x4b3   : > { %v3120_v39 = vsub.f32 1.0, %v3119_v13  ;;  %v3123_v31 = vmul.f32 2.0, %v3118_v30  ;;  %3121 = vst [vmem:[#allocation2 + $0x6] sm:$0x7] %v3118_v30 }
 0x4b5   : > { %v3124_v14 = vmul.f32 %v3123_v31, %v3120_v39  ;;  %v3125_v33 = vmul.f32 %v3123_v31, %v3118_v30  ;;  %3122 = vst [vmem:[#allocation2 + $0x12] sm:$0x7] %v3120_v39 }
 0x4b7   : > { %v3126_v34 = vsub.f32 1.0, %v3125_v33  ;;  %v3129_v42 = vmul.f32 2.0, %v3124_v14  ;;  %3127 = vst [vmem:[#allocation2 + $0x9] sm:$0x7] %v3124_v14 }
 0x4b9   : > { %v3130_v41 = vmul.f32 %v3129_v42, %v3126_v34  ;;  %v3131_v43 = vmul.f32 %v3129_v42, %v3124_v14  ;;  %3128 = vst [vmem:[#allocation2 + $0x15] sm:$0x7] %v3126_v34 }
 0x4bb   : > { %v3132_v47 = vsub.f32 1.0, %v3131_v43  ;;  %3133 = vst [vmem:[#allocation2 + $0xc] sm:$0x7] %v3130_v41 }
 0x4bd   : > { %3134 = vst [vmem:[#allocation2 + $0x18] sm:$0x7] %v3132_v47 }
 0x529   : > { %v1636_v37 = vpop.f32.mrb[16].mxu0 }
 0x52a   : > { %v1637_v38 = vadd.f32 %v1636_v37, %v5164_v56  ;;  %v4159_v40 = vpop.f32.mrb[17].mxu0 }
 0x52b   : > { %v1639_v44 = vpop.f32.mrb[18].mxu0  ;;  %v5266_v40 = vld [vmem:[%s5539_s5] sm:$0x3] }
 0x52c   : > { %v1642_v45 = vmax.f32 %v1637_v38, 0.0  ;;  %v3925_v2 = vmul.f32 -1.442695, %v1637_v38  ;;  %v4160_v46 = vpop.f32.mrb[19].mxu0 }
 0x52e   : > { %v1643_v49 = vsub.f32 0.0, %v1642_v45  ;;  %4428 = vpow2.f32 %v3925_v2  ;;  %v2726_v45 = vpack.c.bf16 %v5252_v20, %v5219_v54  ;;  %v4477_v20 = vld [vmem:[%s4780_s10] sm:$0x7]  ;;  %s3748_s10 = sshll.u32 %s5454_s22, 4  ;;  %s5469_s10 = int_to_ptr.vmem [resolvable:$true] %s3748_s10 }
 0x530   : > { %v1644_v50 = vmul.f32 0.7, %v1643_v49 }
 0x531   : > { %v4175_v51 = vpop.f32.mrb[20].mxu0 }
 0x532   : > { %v1645_v52 = vmul.f32 1.442695, %v1644_v50  ;;  %v2003_v53 = vadd.f32 %v4175_v51, %v5009_v35  ;;  %v1994_v5 = vpop.f32.mrb[21].mxu0 }
 0x533   : > { %v1995_v55 = vadd.f32 %v1994_v5, %v5011_v4  ;;  %v4176_v57 = vpop.f32.mrb[22].mxu0 }
 0x534   : > { %4430 = vpow2.f32 %v1645_v52  ;;  %v2006_v9 = vadd.f32 %v4176_v57, %v5013_v18  ;;  %v1997_v7 = vpop.f32.mrb[23].mxu0  ;;  %v2011_v59 = vmax.f32 %v2003_v53, 0.0 }
 0x535   : > { %v1998_v58 = vadd.f32 %v1997_v7, %v5017_v1  ;;  %v2009_v28 = vmax.f32 %v1995_v55, 0.0 }
 0x536   : > { %v2012_v60 = vmax.f32 %v2006_v9, 0.0 }
 0x537   : > { %v2010_v63 = vmax.f32 %v1998_v58, 0.0 }
 0x538   : > { %v4429_v12 = vpop.eup %4428  ;;  %v2014_v0 = vpack.c.bf16 %v2012_v60, %v2011_v59 }
 0x539   : > { %v1652_v26 = vadd.f32 1.0, %v4429_v12  ;;  %v2013_v10 = vpack.c.bf16 %v2010_v63, %v2009_v28  ;;  %v4191_v16 = vpop.f32.mrb[24].mxu0 }
 0x53a   : > { %v2369_v24 = vmax.f32 %v4191_v16, 0.0  ;;  %v2352_v27 = vpop.f32.mrb[25].mxu0 }
 0x53b   : > { %4432 = vrcp.f32 %v1652_v26  ;;  %4178 = vmatpush3.bf16.msra.mxu1 %v2013_v10  ;;  %v4192_v8 = vpop.f32.mrb[26].mxu0  ;;  %v2367_v39 = vmax.f32 %v2352_v27, 0.0 }
 0x53c   : > { %v2370_v30 = vmax.f32 %v4192_v8, 0.0  ;;  %v2355_v13 = vpop.f32.mrb[27].mxu0  ;;  %4179 = vmatprep.subr.bf16.mxu1 %v4620_v3 }
 0x53d   : > { %v2368_v31 = vmax.f32 %v2355_v13, 0.0 }
 0x53e   : > { %v4431_v14 = vpop.eup %4430  ;;  %v2372_v33 = vpack.c.bf16 %v2370_v30, %v2369_v24 }
 0x53f   : > { %v1647_v34 = vsub.f32 1.0, %v4431_v14  ;;  %v2371_v42 = vpack.c.bf16 %v2368_v31, %v2367_v39  ;;  %4180 = vmatpush3.bf16.msra.mxu1 %v2014_v0 }
 0x541   : > { %v1648_v37 = vmul.f32 %v1647_v34, %v5193_v6  ;;  %v1663_v38 = vsub.f32 1.0, %v1647_v34  ;;  %4193 = vmatprep.subr.bf16.mxu1 %v2371_v42 }
 0x542   : > { %4182 = vmatmul.mubr.msk.bf16.vlgmr.msra.gmra.mrb[20].mxu1 %vm713_vm5, %v5266_v40 }
 0x543   : > { %v1658_v41 = vrot.slane %v1648_v37, %v5181_v11  ;;  %v1661_v43 = vmul.f32 1.5, %v1648_v37  ;;  %v1664_v44 = vadd.f32 1e-10, %v1663_v38  ;;  %4194 = vmatpush3.bf16.msra.mxu1 %v2371_v42  ;;  %4197 = vmatprep.mubr.msk.bf16.mxu1 %vm713_vm5, %v5106_v61  ;;  %v2727_v61 = vpack.c.bf16 %v2725_v48, %v5254_v29  ;;  %v5305_v48 = vld [vmem:[#allocation2] sm:$0xff] }
 0x544   : > { %4195 = vmatprep.subr.bf16.mxu1 %v2372_v33 }
 0x545   : > { %v4433_v2 = vpop.eup %4432  ;;  %v5276_v46 = vadd.f32 %v1661_v43, %v5191_v22  ;;  %v5279_v47 = vmul.f32 %v1664_v44, %v5193_v6  ;;  %v5290_v22 = vld [vmem:[%s5536_s2] sm:$0xff]   ;;  %v2729_v6 = vsel %vm644_vm2, %v2727_v61, 0 }
 0x546   : > { %v1659_v49 = vmul.f32 %v4433_v2, %v1658_v41 }
 0x547   : > { %4196 = vmatpush3.bf16.msra.mxu1 %v2372_v33 }
 0x548   : > { %v5282_v50 = vadd.f32 %v1659_v49, %v5195_v62  ;;  %4209 = vmatprep.subr.bf16.mxu1 %v2726_v45  ;;  %v4476_v62 = vld [vmem:[%s4791_s19] sm:$0x7]  ;;  %s4515_s19 = sshll.u32 %s4622_s16, 4  ;;  %s4516_s19 = int_to_ptr.vmem [resolvable:$false] %s4515_s19 }
 0x549   : > { %v3318_v54 = vmul.f32 5.0, %v4476_v62  ;;  %s4517_s24 = scalar_lea.vmem %s4516_s19, 32  ;;  %p4518_p10 = scmp.lt.s32.totalorder %s5462_s15, %s4516_s19 }
 0x54a   : > { %4198 = vmatmul.mubr.msk.bf16.vlgmr.msra.gmra.mrb[24].mxu1 %vm713_vm5, %v5202_v36  ;;  %p4519_p2 = scmp.lt.s32.totalorder %s4517_s24, %s4511_s0 }
 0x54b   : > { %4210 = vmatpush3.bf16.msra.mxu1 %v2726_v45  ;;  %4213 = vmatprep.mubr.msk.bf16.mxu1 %vm637_vm0, %v5290_v22  ;;  %v5303_v29 = vadd.f32 %v4477_v20, %v3318_v54 }
 0x54c   : > { %4286 = vmatprep.subr.msk.bf16.mxu1 %vm644_vm2, %v2727_v61  ;;  %p4520_p4 = por %p4519_p2, %p4518_p10 }
 0x54d   : > { %3320 = vst [vmem:[#allocation2] sm:$0x7] %v5303_v29  ;;  %v3324_v51 = vand.u32 2139095040, %v5303_v29  ;;  %v3321_v53 = vand.u32 2147483647, %v5303_v29  ;;  %vm3323_vm8 = vcmp.lt.s32.totalorder %v5303_v29, 0 }
 0x54e   : > { %p4521_p5 = pnand %p4520_p4, %p4514_p7 }
 0x54f   : > { %4212 = vmatpush3.bf16.msra.mxu1 %v2729_v6  ;;  %v3325_v52 = vshrl.u32 %v3324_v51, 23  ;;  %vm3322_vm10 = vcmp.le.f32.partialorder %v3321_v53, 0.7853982 }
 0x550   : > { %4225 = vmatprep.subr.bf16.mxu1 %v4620_v3 }
 0x551   : > { %v3982_v5 = vadd.s32 4294967169, %v3325_v52 }
 0x552   : > { %4214 = vmatmul.mubr.msk.bf16.vlgmr.msra.gmra.mrb[28].mxu1 %vm637_vm0, %v5122_v15  ;;  %v3328_v15 = vand.u32 8388607, %v3321_v53 }
 0x553   : > { %4229 = vmatprep.mubr.msk.bf16.mxu1 %vm4621_vm9, %v4620_v3  ;;  %v3331_v55 = vadd.s32 1, %v3982_v5 }
 0x554   : > { %v3329_v7 = vor.u32 8388608, %v3328_v15 }
 0x555   : > { %vm3332_vm14 = vcmp.gt.s32.totalorder %v3331_v55, 0 }
 0x556   : > { %v3333_v57 = vsel %vm3332_vm14, %v3331_v55, 0  ;;  %v3369_v30 = vshll.u32 %v3329_v7, 8 }
 0x557   : > { %v3335_v9 = vand.u32 31, %v3333_v57  ;;  %v3334_v58 = vshrl.u32 %v3333_v57, 5 }
 0x559   : > { %v3336_v59 = vsub.s32 32, %v3335_v9  ;;  %v3338_v60 = vshll.u32 %v4613_v17, %v3335_v9  ;;  %v3341_v28 = vshll.u32 %v4614_v19, %v3335_v9  ;;  %v3344_v63 = vshll.u32 %v4615_v21, %v3335_v9 }
 0x55a   : > { %v3347_v12 = vshll.u32 %v4616_v23, %v3335_v9  ;;  %v3350_v0 = vshll.u32 %v4617_v25, %v3335_v9  ;;  %vm3353_vm15 = vcmp.lt.s32.totalorder %v3334_v58, 1  ;;  %vm3356_vm1 = vcmp.lt.s32.totalorder %v3334_v58, 4 }
 0x55b   : > { %v3337_v26 = vshrl.u32 %v4613_v17, %v3336_v59  ;;  %v3339_v10 = vshrl.u32 %v4614_v19, %v3336_v59  ;;  %v3342_v16 = vshrl.u32 %v4615_v21, %v3336_v59  ;;  %v3345_v24 = vshrl.u32 %v4616_v23, %v3336_v59 }
 0x55c   : > { %v3348_v27 = vshrl.u32 %v4617_v25, %v3336_v59  ;;  %v3351_v8 = vshrl.u32 %v4618_v32, %v3336_v59  ;;  %vm3354_vm3 = vcmp.lt.s32.totalorder %v3334_v58, 2  ;;  %vm3355_vm4 = vcmp.lt.s32.totalorder %v3334_v58, 3 }
 0x55d   : > { %v3340_v13 = vor.u32 %v3339_v10, %v3338_v60  ;;  %v3343_v39 = vor.u32 %v3342_v16, %v3341_v28  ;;  %v3346_v31 = vor.u32 %v3345_v24, %v3344_v63 }
 0x55e   : > { %v3349_v14 = vor.u32 %v3348_v27, %v3347_v12  ;;  %v3352_v33 = vor.u32 %v3351_v8, %v3350_v0 }
 0x55f   : > { %v3357_v17 = vsel %vm3353_vm15, %v3337_v26, %v3340_v13  ;;  %v3358_v19 = vsel %vm3356_vm1, %v3346_v31, 2102212464  ;;  %v3361_v34 = vsel %vm3353_vm15, %v3340_v13, %v3343_v39  ;;  %v3365_v21 = vsel %vm3353_vm15, %v3343_v39, %v3346_v31 }
 0x560   : > { %v3359_v42 = vsel %vm3355_vm4, %v3343_v39, %v3358_v19  ;;  %v3362_v23 = vsel %vm3356_vm1, %v3349_v14, 920167782  ;;  %v3366_v37 = vsel %vm3356_vm1, %v3352_v33, 1326507024 }
 0x561   : > { %v3363_v25 = vsel %vm3355_vm4, %v3346_v31, %v3362_v23  ;;  %v3367_v38 = vsel %vm3355_vm4, %v3349_v14, %v3366_v37  ;;  %v3360_v32 = vsel %vm3354_vm3, %v3357_v17, %v3359_v42 }
 0x562   : > { %v3364_v41 = vsel %vm3354_vm3, %v3361_v34, %v3363_v25  ;;  %v3368_v43 = vsel %vm3354_vm3, %v3365_v21, %v3367_v38  ;;  %v3376_v61 = vmul.u32 %v3369_v30, %v3360_v32  ;;  %vm3413_vm3 = vweird.f32 %v5303_v29 }
 0x563   : > { %v5323_v44 = vmul.u32.u64.low %v3369_v30, %v3368_v43  ;;  %v5324_v45 = vmul.u32.u64.high %v3369_v30, %v3368_v43, %v5323_v44  ;;  %v5326_v2 = vmul.u32.u64.low %v3369_v30, %v3364_v41  ;;  %v5327_v49 = vmul.u32.u64.high %v3369_v30, %v3364_v41, %v5326_v2  ;;  %v5338_v43 = vld [vmem:[#allocation2 + $0x8] sm:$0xff] }
 0x565   : > { %vm3378_vm6 = vc.u32 %v5324_v45, %v5326_v2  ;;  %v3379_v6 = vadd.s32 1, %v5327_v49  ;;  %v3377_v7 = vadd.s32 %v5326_v2, %v5324_v45  ;;  %v5340_v2 = vld [vmem:[#allocation2 + $0x10] sm:$0xff] }
 0x567   : > { %v3380_v62 = vsel %vm3378_vm6, %v3379_v6, %v5327_v49 }
 0x568   : > { %v3381_v54 = vadd.s32 %v3380_v62, %v3376_v61 }
 0x56a   : > { %v3382_v20 = vadd.s32 536870912, %v3381_v54 }
 0x56c   : > { %v3383_v51 = vshrl.u32 %v3382_v20, 30 }
 0x56e   : > { %v3384_v52 = vshll.u32 %v3383_v51, 30  ;;  %v3407_v27 = vsub.s32 4, %v3383_v51 }
 0x570   : > { %v3385_v5 = vsub.s32 %v3381_v54, %v3384_v52  ;;  %v3408_v13 = vsel %vm3323_vm8, %v3407_v27, %v3383_v51 }
 0x571   : > { %v3410_v14 = vsel %vm3322_vm10, 0, %v3408_v13 }
 0x572   : > { %v3387_v55 = vsub.s32 0, %v3385_v5  ;;  %v3414_v33 = vadd.s32 3, %v3410_v14  ;;  %v3518_v19 = vand.u32 3, %v3410_v14 }
 0x574   : > { %v3983_v15 = vmin.u32 %v3387_v55, %v3385_v5  ;;  %v3415_v17 = vand.u32 3, %v3414_v33  ;;  %vm3523_vm12 = vcmp.eq.s32.totalorder %v3518_v19, 2  ;;  %vm3520_vm14 = vcmp.eq.s32.totalorder %v3518_v19, 0 }
 0x575   : > { %vm3519_vm1 = vcmp.lt.s32.totalorder %v3518_v19, 2 }
 0x576   : > { %v3389_v57 = vclz %v3983_v15  ;;  %vm3420_vm11 = vcmp.eq.s32.totalorder %v3415_v17, 2  ;;  %vm3417_vm13 = vcmp.eq.s32.totalorder %v3415_v17, 0  ;;  %vm3416_vm15 = vcmp.lt.s32.totalorder %v3415_v17, 2 }
 0x578   : > { %v3984_v9 = vadd.s32 4294967294, %v3389_v57 }
 0x57a   : > { %vm3985_vm7 = vcmp.lt.s32.totalorder %v3984_v9, 0 }
 0x57b   : > { %v3392_v58 = vsel %vm3985_vm7, 0, %v3984_v9 }
 0x57c   : > { %v3393_v59 = vsub.s32 32, %v3392_v58  ;;  %v3394_v60 = vshll.u32 %v3385_v5, %v3392_v58  ;;  %v3397_v28 = vsub.s32 4294967266, %v3392_v58 }
 0x57e   : > { %v3395_v63 = vshrl.u32 %v3377_v7, %v3393_v59  ;;  %v3398_v12 = vadd.s32 127, %v3397_v28 }
 0x580   : > { %v3396_v0 = vor.u32 %v3395_v63, %v3394_v60  ;;  %v3399_v26 = vshll.u32 %v3398_v12, 23  ;;  %v3138_v63 = vld [vmem:[#allocation2 + $0x18] sm:$0xf] }
 0x582   : > { %v3400_v10 = vor.u32 4788187, %v3399_v26  ;;  %v3403_v16 = vcvt.s32.f32 %v3396_v0 }
 0x584   : > { %v3401_v24 = vand.u32 2147483647, %v3400_v10 }
 0x586   : > { %v3404_v8 = vmul.f32 %v3403_v16, %v3401_v24 }
 0x588   : > { %v3405_v30 = vxor.u32 2147483648, %v3404_v8 }
 0x58a   : > { %v3406_v39 = vsel %vm3323_vm8, %v3405_v30, %v3404_v8 }
 0x58b   : > { %v3409_v31 = vsel %vm3322_vm10, %v5303_v29, %v3406_v39 }
 0x58c   : > { %4434 = vcosq.f32 %v3409_v31 }
 0x58d   : > { %4436 = vsinq.f32 %v3409_v31 }
 0x596   : > { %v4435_v34 = vpop.eup %4434 }
 0x597   : > { %v4437_v21 = vpop.eup %4436  ;;  %v3421_v42 = vxor.u32 2147483648, %v4435_v34 }
 0x598   : > { %v3418_v53 = vxor.u32 2147483648, %v4437_v21 }
 0x599   : > { %v3422_v23 = vsel %vm3420_vm11, %v3421_v42, %v4437_v21  ;;  %v3525_v37 = vsel %vm3523_vm12, %v3421_v42, %v4437_v21 }
 0x59a   : > { %v3419_v25 = vsel %vm3417_vm13, %v4435_v34, %v3418_v53  ;;  %v3522_v38 = vsel %vm3520_vm14, %v4435_v34, %v3418_v53 }
 0x59b   : > { %v3423_v32 = vsel %vm3416_vm15, %v3419_v25, %v3422_v23  ;;  %v3526_v41 = vsel %vm3519_vm1, %v3522_v38, %v3525_v37 }
 0x59c   : > { %v3424_v44 = vsel %vm3413_vm3, nan, %v3423_v32  ;;  %v3527_v45 = vsel %vm3413_vm3, nan, %v3526_v41 }
 0x59d   : > { %3528 = vst [vmem:[#allocation2 + $0x3] sm:$0x7] %v3424_v44  ;;  %v3530_v49 = vmul.f32 2.0, %v3424_v44  ;;  %3529 = vst [vmem:[#allocation2 + $0xf] sm:$0x7] %v3527_v45 }
 0x59f   : > { %v3531_v61 = vmul.f32 %v3530_v49, %v3527_v45  ;;  %v3532_v6 = vmul.f32 %v3530_v49, %v3424_v44 }
 0x5a1   : > { %v3533_v62 = vsub.f32 1.0, %v3532_v6  ;;  %v3536_v54 = vmul.f32 2.0, %v3531_v61  ;;  %3534 = vst [vmem:[#allocation2 + $0x6] sm:$0x7] %v3531_v61 }
 0x5a3   : > { %v3537_v29 = vmul.f32 %v3536_v54, %v3533_v62  ;;  %v3538_v20 = vmul.f32 %v3536_v54, %v3531_v61  ;;  %3535 = vst [vmem:[#allocation2 + $0x12] sm:$0x7] %v3533_v62 }
 0x5a5   : > { %v3539_v51 = vsub.f32 1.0, %v3538_v20  ;;  %3540 = vst [vmem:[#allocation2 + $0x9] sm:$0x7] %v3537_v29  ;;  %v3542_v52 = vmul.f32 2.0, %v3537_v29 }
 0x5a7   : > { %v3543_v57 = vmul.f32 %v3542_v52, %v3539_v51  ;;  %v3544_v9 = vmul.f32 %v3542_v52, %v3537_v29  ;;  %3541 = vst [vmem:[#allocation2 + $0x15] sm:$0x7] %v3539_v51  ;;  %v5355_v52 = vld [vmem:[%s5537_s3] sm:$0xff]  }
 0x5a9   : > { %v3545_v28 = vsub.f32 1.0, %v3544_v9  ;;  %3546 = vst [vmem:[#allocation2 + $0xc] sm:$0x7] %v3543_v57 }
 0x5ab   : > { %3547 = vst [vmem:[#allocation2 + $0x18] sm:$0x7] %v3545_v28 }
 0x615   : > { %v2049_v5 = vpop.f32.mrb[20].mxu1 }
 0x616   : > { %v2050_v55 = vadd.f32 %v2049_v5, %v5164_v56  ;;  %v4183_v15 = vpop.f32.mrb[21].mxu1  ;;  %v3139_v5 = vpack.c.bf16 %v5338_v43, %v5305_v48 }
 0x617   : > { %v2052_v7 = vpop.f32.mrb[22].mxu1 }
 0x618   : > { %v2055_v58 = vmax.f32 %v2050_v55, 0.0  ;;  %v3939_v59 = vmul.f32 -1.442695, %v2050_v55  ;;  %v4184_v60 = vpop.f32.mrb[23].mxu1 }
 0x61a   : > { %v2056_v12 = vsub.f32 0.0, %v2055_v58  ;;  %4438 = vpow2.f32 %v3939_v59  ;;  %v3140_v58 = vpack.c.bf16 %v3138_v63, %v5340_v2 }
 0x61c   : > { %v2057_v0 = vmul.f32 0.7, %v2056_v12 }
 0x61d   : > { %v4199_v26 = vpop.f32.mrb[24].mxu1 }
 0x61e   : > { %v2058_v10 = vmul.f32 1.442695, %v2057_v0  ;;  %v2416_v16 = vadd.f32 %v4199_v26, %v5009_v35  ;;  %v2407_v24 = vpop.f32.mrb[25].mxu1 }
 0x61f   : > { %v2408_v27 = vadd.f32 %v2407_v24, %v5011_v4  ;;  %v4200_v8 = vpop.f32.mrb[26].mxu1 }
 0x620   : > { %4440 = vpow2.f32 %v2058_v10  ;;  %v2419_v30 = vadd.f32 %v4200_v8, %v5013_v18  ;;  %v2410_v13 = vpop.f32.mrb[27].mxu1  ;;  %v2424_v31 = vmax.f32 %v2416_v16, 0.0 }
 0x621   : > { %v2411_v39 = vadd.f32 %v2410_v13, %v5017_v1  ;;  %v2422_v33 = vmax.f32 %v2408_v27, 0.0 }
 0x622   : > { %v2425_v14 = vmax.f32 %v2419_v30, 0.0 }
 0x623   : > { %v2423_v17 = vmax.f32 %v2411_v39, 0.0 }
 0x624   : > { %v4439_v19 = vpop.eup %4438  ;;  %v2427_v34 = vpack.c.bf16 %v2425_v14, %v2424_v31 }
 0x625   : > { %v2065_v21 = vadd.f32 1.0, %v4439_v19  ;;  %v2426_v42 = vpack.c.bf16 %v2423_v17, %v2422_v33  ;;  %v4215_v53 = vpop.f32.mrb[28].mxu1 }
 0x626   : > { %v2782_v23 = vmax.f32 %v4215_v53, 0.0  ;;  %v2765_v37 = vpop.f32.mrb[29].mxu1 }
 0x627   : > { %4442 = vrcp.f32 %v2065_v21  ;;  %4202 = vmatpush3.bf16.msra.mxu0 %v2426_v42  ;;  %v4216_v25 = vpop.f32.mrb[30].mxu1  ;;  %v2780_v41 = vmax.f32 %v2765_v37, 0.0 }
 0x628   : > { %v2783_v38 = vmax.f32 %v4216_v25, 0.0  ;;  %v2768_v32 = vpop.f32.mrb[31].mxu1  ;;  %4203 = vmatprep.subr.bf16.mxu0 %v4620_v3 }
 0x629   : > { %v2781_v44 = vmax.f32 %v2768_v32, 0.0 }
 0x62a   : > { %v4441_v45 = vpop.eup %4440  ;;  %v2785_v49 = vpack.c.bf16 %v2783_v38, %v2782_v23 }
 0x62b   : > { %v2060_v61 = vsub.f32 1.0, %v4441_v45  ;;  %v2784_v6 = vpack.c.bf16 %v2781_v44, %v2780_v41  ;;  %4204 = vmatpush3.bf16.msra.mxu0 %v2427_v34 }
 0x62d   : > { %v2061_v62 = vmul.f32 %v2060_v61, %v5279_v47  ;;  %v2076_v54 = vsub.f32 1.0, %v2060_v61  ;;  %4217 = vmatprep.subr.bf16.mxu0 %v2784_v6 }
 0x62e   : > { %4206 = vmatmul.mubr.msk.bf16.vlgmr.msra.gmra.mrb[28].mxu0 %vm713_vm5, %v5266_v40 }
 0x62f   : > { %v2071_v29 = vrot.slane %v2061_v62, %v5181_v11  ;;  %v2074_v20 = vmul.f32 2.2, %v2061_v62  ;;  %v2077_v51 = vadd.f32 1e-10, %v2076_v54  ;;  %4218 = vmatpush3.bf16.msra.mxu0 %v2784_v6  ;;  %4221 = vmatprep.mubr.msk.bf16.mxu0 %vm713_vm5, %v5355_v52  ;;  %v3548_v54 = vld [vmem:[#allocation2] sm:$0xff] }
 0x630   : > { %4219 = vmatprep.subr.bf16.mxu0 %v2785_v49 }
 0x631   : > { %v4443_v55 = vpop.eup %4442  ;;  %v5362_v15 = vadd.f32 %v2074_v20, %v5276_v46  ;;  %v5365_v57 = vmul.f32 %v2077_v51, %v5279_v47  ;;  %v3142_v46 = vsel %vm644_vm2, %v3140_v58, 0  ;;  %v5381_v47 = vld [vmem:[%s5536_s2 + $0x8] sm:$0xff]  }
 0x632   : > { %v2072_v9 = vmul.f32 %v4443_v55, %v2071_v29  ;;  %v3549_v29 = vld [vmem:[#allocation2 + $0x8] sm:$0xff] }
 0x633   : > { %4220 = vmatpush3.bf16.msra.mxu0 %v2785_v49  ;;  %v3552_v55 = vpack.c.bf16 %v3549_v29, %v3548_v54 }
 0x634   : > { %v5368_v7 = vadd.f32 %v2072_v9, %v5282_v50  ;;  %4233 = vmatprep.subr.bf16.mxu0 %v3139_v5 }
 0x636   : > { %4222 = vmatmul.mubr.msk.bf16.vlgmr.msra.gmra.mrb[32].mxu0 %vm713_vm5, %v5202_v36 }
 0x637   : > { %4234 = vmatpush3.bf16.msra.mxu0 %v3139_v5  ;;  %4237 = vmatprep.mubr.msk.bf16.mxu0 %vm637_vm0, %v5290_v22 }
 0x638   : > { %4287 = vmatprep.subr.msk.bf16.mxu0 %vm644_vm2, %v3140_v58 }
 0x63b   : > { %4236 = vmatpush3.bf16.msra.mxu0 %v3142_v46  ;;  %v3550_v46 = vld [vmem:[#allocation2 + $0x10] sm:$0xff] }
 0x63c   : > { %4249 = vmatprep.subr.bf16.mxu0 %v4620_v3 }
 0x63e   : > { %4238 = vmatmul.mubr.msk.bf16.vlgmr.msra.gmra.mrb[36].mxu0 %vm637_vm0, %v5381_v47 }
 0x63f   : > { %4253 = vmatprep.mubr.msk.bf16.mxu0 %vm4621_vm9, %v4620_v3 }
 0x701   : > { %v2462_v50 = vpop.f32.mrb[28].mxu0 }
 0x702   : > { %v2463_v48 = vadd.f32 %v2462_v50, %v5164_v56  ;;  %v4207_v43 = vpop.f32.mrb[29].mxu0  ;;  %v3551_v50 = vld [vmem:[#allocation2 + $0x18] sm:$0xf] }
 0x703   : > { %v2465_v2 = vpop.f32.mrb[30].mxu0 }
 0x704   : > { %v2468_v59 = vmax.f32 %v2463_v48, 0.0  ;;  %v3953_v60 = vmul.f32 -1.442695, %v2463_v48  ;;  %v4208_v28 = vpop.f32.mrb[31].mxu0 }
 0x706   : > { %v2469_v63 = vsub.f32 0.0, %v2468_v59  ;;  %4444 = vpow2.f32 %v3953_v60  ;;  %v3553_v59 = vpack.c.bf16 %v3551_v50, %v3550_v46  ;;  %v4480_v50 = vld [vmem:[%s5537_s3 + $0x8] sm:$0xff]  }
 0x708   : > { %v2470_v12 = vmul.f32 0.7, %v2469_v63 }
 0x709   : > { %v4223_v0 = vpop.f32.mrb[32].mxu0 }
 0x70a   : > { %v2471_v26 = vmul.f32 1.442695, %v2470_v12  ;;  %v2829_v10 = vadd.f32 %v4223_v0, %v5009_v35  ;;  %v2820_v16 = vpop.f32.mrb[33].mxu0 }
 0x70b   : > { %v2821_v24 = vadd.f32 %v2820_v16, %v5011_v4  ;;  %v4224_v27 = vpop.f32.mrb[34].mxu0 }
 0x70c   : > { %4446 = vpow2.f32 %v2471_v26  ;;  %v2832_v8 = vadd.f32 %v4224_v27, %v5013_v18  ;;  %v2823_v30 = vpop.f32.mrb[35].mxu0  ;;  %v2837_v39 = vmax.f32 %v2829_v10, 0.0 }
 0x70d   : > { %v2824_v13 = vadd.f32 %v2823_v30, %v5017_v1  ;;  %v2835_v14 = vmax.f32 %v2821_v24, 0.0 }
 0x70e   : > { %v2838_v31 = vmax.f32 %v2832_v8, 0.0 }
 0x70f   : > { %v2836_v33 = vmax.f32 %v2824_v13, 0.0 }
 0x710   : > { %v4445_v17 = vpop.eup %4444  ;;  %v2840_v19 = vpack.c.bf16 %v2838_v31, %v2837_v39 }
 0x711   : > { %v2478_v34 = vadd.f32 1.0, %v4445_v17  ;;  %v2839_v21 = vpack.c.bf16 %v2836_v33, %v2835_v14  ;;  %v4239_v42 = vpop.f32.mrb[36].mxu0 }
 0x712   : > { %v3195_v53 = vmax.f32 %v4239_v42, 0.0  ;;  %v3178_v23 = vpop.f32.mrb[37].mxu0 }
 0x713   : > { %4448 = vrcp.f32 %v2478_v34  ;;  %4226 = vmatpush3.bf16.msra.mxu1 %v2839_v21  ;;  %v4240_v37 = vpop.f32.mrb[38].mxu0  ;;  %v3193_v32 = vmax.f32 %v3178_v23, 0.0 }
 0x714   : > { %v3196_v25 = vmax.f32 %v4240_v37, 0.0  ;;  %v3181_v38 = vpop.f32.mrb[39].mxu0  ;;  %4227 = vmatprep.subr.bf16.mxu1 %v4620_v3 }
 0x715   : > { %v3194_v41 = vmax.f32 %v3181_v38, 0.0 }
 0x716   : > { %v4447_v44 = vpop.eup %4446  ;;  %v3198_v45 = vpack.c.bf16 %v3196_v25, %v3195_v53 }
 0x717   : > { %v2473_v49 = vsub.f32 1.0, %v4447_v44  ;;  %v3197_v61 = vpack.c.bf16 %v3194_v41, %v3193_v32  ;;  %4228 = vmatpush3.bf16.msra.mxu1 %v2840_v19 }
 0x719   : > { %v2474_v6 = vmul.f32 %v2473_v49, %v5365_v57  ;;  %v2489_v62 = vsub.f32 1.0, %v2473_v49  ;;  %4241 = vmatprep.subr.bf16.mxu1 %v3197_v61 }
 0x71a   : > { %4230 = vmatmul.mubr.msk.bf16.vlgmr.msra.gmra.mrb[32].mxu1 %vm713_vm5, %v5266_v40 }
 0x71b   : > { %v2484_v20 = vrot.slane %v2474_v6, %v5181_v11  ;;  %v2487_v51 = vmul.f32 2.9, %v2474_v6  ;;  %v2490_v5 = vadd.f32 1e-10, %v2489_v62  ;;  %4242 = vmatpush3.bf16.msra.mxu1 %v3197_v61  ;;  %4245 = vmatprep.mubr.msk.bf16.mxu1 %vm713_vm5, %v5355_v52 }
 0x71c   : > { %4243 = vmatprep.subr.bf16.mxu1 %v3198_v45 }
 0x71d   : > { %v4449_v9 = vpop.eup %4448  ;;  %v5400_v58 = vadd.f32 %v2487_v51, %v5362_v15  ;;  %v5403_v48 = vmul.f32 %v2490_v5, %v5365_v57  ;;  %v3555_v15 = vsel %vm644_vm2, %v3553_v59, 0 }
 0x71e   : > { %v2485_v43 = vmul.f32 %v4449_v9, %v2484_v20 }
 0x71f   : > { %4244 = vmatpush3.bf16.msra.mxu1 %v3198_v45 }
 0x720   : > { %v5406_v2 = vadd.f32 %v2485_v43, %v5368_v7  ;;  %4257 = vmatprep.subr.bf16.mxu1 %v3552_v55 }
 0x722   : > { %4246 = vmatmul.mubr.msk.bf16.vlgmr.msra.gmra.mrb[36].mxu1 %vm713_vm5, %v5202_v36 }
 0x723   : > { %4258 = vmatpush3.bf16.msra.mxu1 %v3552_v55  ;;  %4261 = vmatprep.mubr.msk.bf16.mxu1 %vm637_vm0, %v5290_v22 }
 0x724   : > { %4288 = vmatprep.subr.msk.bf16.mxu1 %vm644_vm2, %v3553_v59 }
 0x727   : > { %4260 = vmatpush3.bf16.msra.mxu1 %v3555_v15 }
 0x728   : > { %4273 = vmatprep.subr.bf16.mxu1 %v4620_v3 }
 0x72a   : > { %4262 = vmatmul.mubr.msk.bf16.vlgmr.msra.gmra.mrb[40].mxu1 %vm637_vm0, %v5381_v47 }
 0x72b   : > { %4277 = vmatprep.mubr.msk.bf16.mxu1 %vm4621_vm9, %v4620_v3 }
 0x7ed   : > { %v2875_v57 = vpop.f32.mrb[32].mxu1 }
 0x7ee   : > { %v2876_v36 = vadd.f32 %v2875_v57, %v5164_v56  ;;  %v4231_v7 = vpop.f32.mrb[33].mxu1 }
 0x7ef   : > { %v2878_v60 = vpop.f32.mrb[34].mxu1 }
 0x7f0   : > { %v2881_v28 = vmax.f32 %v2876_v36, 0.0  ;;  %v3967_v22 = vmul.f32 -1.442695, %v2876_v36  ;;  %v4232_v63 = vpop.f32.mrb[35].mxu1 }
 0x7f2   : > { %v2882_v12 = vsub.f32 0.0, %v2881_v28  ;;  %4450 = vpow2.f32 %v3967_v22 }
 0x7f4   : > { %v2883_v0 = vmul.f32 0.7, %v2882_v12 }
 0x7f5   : > { %v4247_v26 = vpop.f32.mrb[36].mxu1 }
 0x7f6   : > { %v2884_v10 = vmul.f32 1.442695, %v2883_v0  ;;  %v3242_v16 = vadd.f32 %v4247_v26, %v5009_v35  ;;  %v3233_v24 = vpop.f32.mrb[37].mxu1 }
 0x7f7   : > { %v3234_v47 = vadd.f32 %v3233_v24, %v5011_v4  ;;  %v4248_v27 = vpop.f32.mrb[38].mxu1 }
 0x7f8   : > { %4452 = vpow2.f32 %v2884_v10  ;;  %v3245_v8 = vadd.f32 %v4248_v27, %v5013_v18  ;;  %v3236_v30 = vpop.f32.mrb[39].mxu1  ;;  %v3250_v39 = vmax.f32 %v3242_v16, 0.0 }
 0x7f9   : > { %v3237_v13 = vadd.f32 %v3236_v30, %v5017_v1  ;;  %v3248_v14 = vmax.f32 %v3234_v47, 0.0 }
 0x7fa   : > { %v3251_v31 = vmax.f32 %v3245_v8, 0.0 }
 0x7fb   : > { %v3249_v33 = vmax.f32 %v3237_v13, 0.0 }
 0x7fc   : > { %v4451_v17 = vpop.eup %4450  ;;  %v3253_v19 = vpack.c.bf16 %v3251_v31, %v3250_v39 }
 0x7fd   : > { %v2891_v34 = vadd.f32 1.0, %v4451_v17  ;;  %v3252_v21 = vpack.c.bf16 %v3249_v33, %v3248_v14  ;;  %v4263_v42 = vpop.f32.mrb[40].mxu1 }
 0x7fe   : > { %v3608_v53 = vmax.f32 %v4263_v42, 0.0  ;;  %v3591_v23 = vpop.f32.mrb[41].mxu1 }
 0x7ff   : > { %4454 = vrcp.f32 %v2891_v34  ;;  %4250 = vmatpush3.bf16.msra.mxu0 %v3252_v21  ;;  %v4264_v37 = vpop.f32.mrb[42].mxu1  ;;  %v3606_v32 = vmax.f32 %v3591_v23, 0.0 }
 0x800   : > { %v3609_v25 = vmax.f32 %v4264_v37, 0.0  ;;  %v3594_v38 = vpop.f32.mrb[43].mxu1  ;;  %4251 = vmatprep.subr.bf16.mxu0 %v4620_v3 }
 0x801   : > { %v3607_v41 = vmax.f32 %v3594_v38, 0.0 }
 0x802   : > { %v4453_v44 = vpop.eup %4452  ;;  %v3611_v45 = vpack.c.bf16 %v3609_v25, %v3608_v53 }
 0x803   : > { %v2886_v49 = vsub.f32 1.0, %v4453_v44  ;;  %v3610_v61 = vpack.c.bf16 %v3607_v41, %v3606_v32  ;;  %4252 = vmatpush3.bf16.msra.mxu0 %v3253_v19 }
 0x805   : > { %v2887_v6 = vmul.f32 %v2886_v49, %v5403_v48  ;;  %v2902_v62 = vsub.f32 1.0, %v2886_v49  ;;  %4265 = vmatprep.subr.bf16.mxu0 %v3610_v61 }
 0x806   : > { %4254 = vmatmul.mubr.msk.bf16.vlgmr.msra.gmra.mrb[40].mxu0 %vm713_vm5, %v5266_v40 }
 0x807   : > { %v2897_v54 = vrot.slane %v2887_v6, %v5181_v11  ;;  %v2900_v29 = vmul.f32 3.6, %v2887_v6  ;;  %v2903_v20 = vadd.f32 1e-10, %v2902_v62  ;;  %4266 = vmatpush3.bf16.msra.mxu0 %v3610_v61  ;;  %4269 = vmatprep.mubr.msk.bf16.mxu0 %vm713_vm5, %v5355_v52 }
 0x808   : > { %4267 = vmatprep.subr.bf16.mxu0 %v3611_v45 }
 0x809   : > { %v4455_v51 = vpop.eup %4454  ;;  %v2901_v5 = vadd.f32 %v2900_v29, %v5400_v58  ;;  %v2904_v55 = vmul.f32 %v2903_v20, %v5403_v48 }
 0x80a   : > { %v2898_v9 = vmul.f32 %v4455_v51, %v2897_v54 }
 0x80b   : > { %4268 = vmatpush3.bf16.msra.mxu0 %v3611_v45 }
 0x80c   : > { %v2899_v46 = vadd.f32 %v2898_v9, %v5406_v2 }
 0x80e   : > { %4270 = vmatmul.mubr.msk.bf16.vlgmr.msra.gmra.mrb[44].mxu0 %vm713_vm5, %v4480_v50 }
 0x8d9   : > { %v3288_v43 = vpop.f32.mrb[40].mxu0 }
 0x8da   : > { %v3289_v59 = vadd.f32 %v3288_v43, %v5164_v56  ;;  %v4255_v52 = vpop.f32.mrb[41].mxu0 }
 0x8db   : > { %v3291_v15 = vpop.f32.mrb[42].mxu0 }
 0x8dc   : > { %v3294_v57 = vmax.f32 %v3289_v59, 0.0  ;;  %v3981_v36 = vmul.f32 -1.442695, %v3289_v59  ;;  %v4256_v58 = vpop.f32.mrb[43].mxu0 }
 0x8de   : > { %v3295_v7 = vsub.f32 0.0, %v3294_v57  ;;  %4456 = vpow2.f32 %v3981_v36 }
 0x8e0   : > { %v3296_v48 = vmul.f32 0.7, %v3295_v7 }
 0x8e1   : > { %v4271_v60 = vpop.f32.mrb[44].mxu0 }
 0x8e2   : > { %v3297_v28 = vmul.f32 1.442695, %v3296_v48  ;;  %v3655_v2 = vadd.f32 %v4271_v60, %v5009_v35  ;;  %v3646_v22 = vpop.f32.mrb[45].mxu0 }
 0x8e3   : > { %v3647_v63 = vadd.f32 %v3646_v22, %v5011_v4  ;;  %v4272_v12 = vpop.f32.mrb[46].mxu0 }
 0x8e4   : > { %4458 = vpow2.f32 %v3297_v28  ;;  %v3658_v0 = vadd.f32 %v4272_v12, %v5013_v18  ;;  %v3649_v26 = vpop.f32.mrb[47].mxu0  ;;  %v3663_v16 = vmax.f32 %v3655_v2, 0.0 }
 0x8e5   : > { %v3650_v10 = vadd.f32 %v3649_v26, %v5017_v1  ;;  %v3661_v47 = vmax.f32 %v3647_v63, 0.0 }
 0x8e6   : > { %v3664_v24 = vmax.f32 %v3658_v0, 0.0 }
 0x8e7   : > { %v3662_v27 = vmax.f32 %v3650_v10, 0.0 }
 0x8e8   : > { %v4457_v8 = vpop.eup %4456  ;;  %v3666_v30 = vpack.c.bf16 %v3664_v24, %v3663_v16 }
 0x8e9   : > { %v3304_v13 = vadd.f32 1.0, %v4457_v8  ;;  %v3665_v39 = vpack.c.bf16 %v3662_v27, %v3661_v47 }
 0x8eb   : > { %4460 = vrcp.f32 %v3304_v13  ;;  %4274 = vmatpush3.bf16.msra.mxu1 %v3665_v39 }
 0x8ec   : > { %4275 = vmatprep.subr.bf16.mxu1 %v4620_v3 }
 0x8ee   : > { %v4459_v35 = vpop.eup %4458 }
 0x8ef   : > { %v3299_v4 = vsub.f32 1.0, %v4459_v35  ;;  %4276 = vmatpush3.bf16.msra.mxu1 %v3666_v30 }
 0x8f1   : > { %v3300_v31 = vmul.f32 %v3299_v4, %v2904_v55  ;;  %v3315_v18 = vsub.f32 1.0, %v3299_v4 }
 0x8f2   : > { %4278 = vmatmul.mubr.msk.bf16.vlgmr.msra.gmra.mrb[44].mxu1 %vm713_vm5, %v5266_v40 }
 0x8f3   : > { %v3310_v1 = vrot.slane %v3300_v31, %v5181_v11  ;;  %v3313_v14 = vmul.f32 4.3, %v3300_v31  ;;  %v3316_v33 = vadd.f32 1e-10, %v3315_v18 }
 0x8f5   : > { %v4461_v17 = vpop.eup %4460  ;;  %v3317_v19 = vmul.f32 %v3316_v33, %v2904_v55  ;;  %v3314_v34 = vadd.f32 %v3313_v14, %v2901_v5 }
 0x8f6   : > { %v3311_v21 = vmul.f32 %v4461_v17, %v3310_v1 }
 0x8f8   : > { %v3312_v42 = vadd.f32 %v3311_v21, %v2899_v46 }
 0x9c5   : > { %v3701_v53 = vpop.f32.mrb[44].mxu1 }
 0x9c6   : > { %v3702_v3 = vadd.f32 %v3701_v53, %v5164_v56  ;;  %v4279_v23 = vpop.f32.mrb[45].mxu1 }
 0x9c7   : > { %v3704_v37 = vpop.f32.mrb[46].mxu1 }
 0x9c8   : > { %v3707_v25 = vmax.f32 %v3702_v3, 0.0  ;;  %v3995_v38 = vmul.f32 -1.442695, %v3702_v3  ;;  %v4280_v32 = vpop.f32.mrb[47].mxu1 }
 0x9ca   : > { %v3708_v40 = vsub.f32 0.0, %v3707_v25  ;;  %4462 = vpow2.f32 %v3995_v38 }
 0x9cc   : > { %v3709_v41 = vmul.f32 1e+10, %v3708_v40 }
 0x9ce   : > { %v3710_v44 = vmul.f32 1.442695, %v3709_v41 }
 0x9d0   : > { %4464 = vpow2.f32 %v3710_v44 }
 0x9d4   : > { %v4463_v45 = vpop.eup %4462 }
 0x9d5   : > { %v3717_v49 = vadd.f32 1.0, %v4463_v45 }
 0x9d7   : > { %4466 = vrcp.f32 %v3717_v49 }
 0x9da   : > { %v4465_v61 = vpop.eup %4464 }
 0x9db   : > { %v3712_v6 = vsub.f32 1.0, %v4465_v61 }
 0x9dd   : > { %v3713_v56 = vmul.f32 %v3712_v6, %v3317_v19 }
 0x9df   : > { %v3723_v62 = vrot.slane %v3713_v56, %v5181_v11  ;;  %v3726_v54 = vmul.f32 5.0, %v3713_v56 }
 0x9e1   : > { %v4467_v29 = vpop.eup %4466  ;;  %v3727_v20 = vadd.f32 %v3726_v54, %v3314_v34 }
 0x9e2   : > { %v3724_v11 = vmul.f32 %v4467_v29, %v3723_v62 }
 0x9e3   : > { %3729 = vst [vmem:[%s343_s25 - $0x3] sm:$0x8] %v3727_v20 }
 0x9e4   : > { %v3725_v51 = vadd.f32 %v3724_v11, %v3312_v42 }
 0x9e5   : > { %4524 = shalt.err (!%p4521_p5)
}
 0x9e6   : > { %s4525_s25 = scalar_lea.hbm %s5460_s26, 16  ;;  %s4529_s9 = scalar_lea.hbm %s5542_s8, 32 }
 0x9e7   : > { %p4526_p8 = scmp.ne.s32.totalorder %s5460_s26, %s4525_s25  ;;  %p4530_p1 = scmp.lt.u32.totalorder %s5460_s26, %s5542_s8 }
 0x9e8   : > { %p4531_p3 = scmp.lt.u32.totalorder %s4529_s9, %s4525_s25  ;;  %p4533_p6 = scmp.lt.u32.totalorder %s4525_s25, %s5460_s26 }
 0x9e9   : > { %p4527_p9 = pnand %p4526_p8, %p5553_p12 }
 0x9ea   : > { %p4532_p11 = por %p4531_p3, %p4530_p1 }
 0x9eb   : > { %p4528_p0 = pneg %p4527_p9 }
 0x9ec   : > { %p4534_p13 = por %p4533_p6, %p4532_p11 }
 0x9ee   : > { %p4535_p7 = pnand %p4534_p13, %p4528_p0 }
 0x9f0   : > { %4538 = shalt.err (!%p4535_p7)
}
 0x9f1   : > { %4324 = dma.vmem_to_hbm [thread:$0]  (%p5553_p12), %s5462_s15, 16, %s5460_s26, %s3736_s23   ;;  %3728 = vst [vmem:[%s5454_s22] sm:$0x7] %v3725_v51 }
 0x9f2   : > { %s3731_s0 = scalar_lea.sflag [#allocation5], %s4774_s13  ;;  %s4539_s24 = scalar_lea.vmem %s5469_s10, 64 }
 0x9f3   : > { %p4540_p10 = scmp.ne.s32.totalorder %s5469_s10, %s4539_s24  ;;  %s4623_s25 = smov [#allocation6]  }
 0x9f4   : > { %s4543_s20 = sshll.u32 %s4623_s25, 4  ;;  %s4544_s20 = int_to_ptr.vmem [resolvable:$false] %s4543_s20 }
 0x9f5   : > { %p4541_p2 = pnand %p4540_p10, %p5553_p12  ;;  %s4545_s12 = scalar_lea.vmem %s4544_s20, 128 }
 0x9f6   : > { %p4546_p5 = scmp.lt.s32.totalorder %s5469_s10, %s4544_s20  ;;  %p4547_p8 = scmp.lt.s32.totalorder %s4545_s12, %s4539_s24 }
 0x9f7   : > { %p4542_p4 = pneg %p4541_p2 }
 0x9f8   : > { %p4548_p9 = por %p4547_p8, %p4546_p5 }
 0x9fa   : > { %p4549_p0 = pnand %p4548_p9, %p4542_p4 }
 0x9fc   : > { %4552 = shalt.err (!%p4549_p0)
}
 0x9fd   : > { %s4553_s13 = scalar_lea.hbm %s5467_s21, 64  ;;  %s4557_s26 = scalar_lea.hbm %s5541_s7, 128 }
 0x9fe   : > { %p4554_p1 = scmp.ne.s32.totalorder %s5467_s21, %s4553_s13  ;;  %p4558_p6 = scmp.lt.u32.totalorder %s5467_s21, %s5541_s7 }
 0x9ff   : > { %p4559_p13 = scmp.lt.u32.totalorder %s4557_s26, %s4553_s13  ;;  %p4561_p10 = scmp.lt.u32.totalorder %s4553_s13, %s5467_s21 }
 0xa00   : > { %p4555_p3 = pnand %p4554_p1, %p5553_p12 }
 0xa01   : > { %p4560_p7 = por %p4559_p13, %p4558_p6 }
 0xa02   : > { %p4556_p11 = pneg %p4555_p3 }
 0xa03   : > { %p4562_p2 = por %p4561_p10, %p4560_p7 }
 0xa05   : > { %p4563_p4 = pnand %p4562_p2, %p4556_p11 }
 0xa07   : > { %4566 = shalt.err (!%p4563_p4)
}
 0xa08   : > { %4323 = dma.vmem_to_hbm [thread:$0]  (%p5553_p12), %s5469_s10, 64, %s5467_s21, %s3731_s0  }
 0xa09 PF: > { %s3773_s16 = sand.u32 1, %s4597_s27   ;;  %p5554_p5 = scmp.ne.s32.totalorder %s5548_s18, 0 }
 0xa0a   : > { %p5555_p8 = scmp.ge.s32.totalorder %s4609_s30, 2  ;;  %s3774_s19 = scalar_lea.sflag [#allocation5], %s3773_s16 }
 0xa0c   : > { %p4332_p9 = pnand %p5555_p8, %p5554_p5 }
 0xa0e   : > { %4588 = dma.done.wait (!%p4332_p9), %s3774_s19, 64  }
 0xa0f   : > { %4590 = vsyncadd (!%p4332_p9), %s3774_s19, 4294967232  ;;  %s3783_s24 = scalar_lea.sflag [#allocation8], %s3773_s16 }
 0xa10   : > { %4592 = dma.done.wait (!%p4332_p9), %s3783_s24, 16  }
 0xa11   : > { %4594 = vsyncadd (!%p4332_p9), %s3783_s24, 4294967280  ;;  %p25_p12 = scmp.ge.s32.totalorder %s4694_s11, 4   ;;  %s5556_s27 = smov %s4601_s28 }
 0xa12   : > { %s5557_s28 = smov %s4605_s29  ;;  %s5558_s29 = smov %s4706_s14 }
 0xa13   : > { %s5559_s30 = smov %s4694_s11  ;;  %27 = sbr.rel (!%p25_p12) target bundleno = 9 (0x9), region = 113 }
 0xa1a   :  { %3787 = vsyncpa [#allocation4], 1 }
 0xa1b   :  { %3789 = vsyncpa [#allocation4 + $0x1], 1 }
 0xa1c   :  { %3790 = vsyncpa [#allocation5], 1 }
 0xa1d   :  { %3792 = vsyncpa [#allocation5 + $0x1], 1 }
 0xa1e   :  { %3793 = vsyncpa [#allocation8], 1 }
 0xa1f   :  { %3795 = vsyncpa [#allocation8 + $0x1], 1 }

</bundles_post_ra>
